<compile_context>
chip_gen: v6e
topology: v6e:2x2x1
jax: 0.10.0
libtpu: 0.0.40
codegen_flags: <defaults>
</compile_context>

<pallas_src>
import functools

import jax
import jax.numpy as jnp
from jax import lax
from jax.experimental import pallas as pl
from jax.experimental.pallas import tpu as pltpu

H = 100          # logical LSTM hidden size (as in the PyTorch module)
HP = 128         # padded hidden size inside the kernel (lane-aligned gate slices)
BT = 8           # batch tile (sublane-aligned); batch is zero-padded to a multiple of BT
CMAX = 128       # widest conv channel count -> im2col scratch is (rows, 3*CMAX)
BN_EPS = 1e-5


# ----------------------------------------------------------------------------
# Single fused kernel: conv stack -> 2-layer LSTM (wavefront) -> MLP head + sigmoid.
# Activations are time-major flattened per batch tile: row = t * BT + b.
# ----------------------------------------------------------------------------
def _fused_kernel(x_ref,
                  cw1_ref, cb1_ref, cw2_ref, cb2_ref, cw3_ref, cb3_ref,
                  wih1_ref, whh1_ref, bl1_ref, w2_ref, bl2_ref,
                  hw1_ref, hb1_ref, hw2_ref, hb2_ref, hw3_ref, hb3_ref,
                  o_ref,
                  pad_scr, g_scr,
                  *, T0):
    f32 = jnp.float32
    nf = x_ref.shape[-1]

    def conv_bn_relu(y, w_ref, b_ref):
        """3-tap conv (padding=1) along time with BN folded: one im2col MXU matmul.

        One timestep == BT rows.  Tap k is stored into column block k of pad_scr at
        row offset (2-k)*BT; reading the slab at row base BT then yields, per output
        row r, [y[r-BT] | y[r] | y[r+BT]] = taps t-1, t, t+1.  Only the two BT-row
        halos are zeroed (not the whole scratch).
        """
        R, cin = y.shape
        mdt = w_ref.dtype
        pad_scr[2 * BT:2 * BT + R, 0:cin] = y                 # tap k=0  (t-1)
        pad_scr[BT:BT + R, cin:2 * cin] = y                   # tap k=1  (t)
        pad_scr[0:R, 2 * cin:3 * cin] = y                     # tap k=2  (t+1)
        pad_scr[BT:2 * BT, 0:cin] = jnp.zeros((BT, cin), f32)            # top halo (t=-1)
        pad_scr[R:R + BT, 2 * cin:3 * cin] = jnp.zeros((BT, cin), f32)   # bottom halo (t=T)
        slab = pad_scr[BT:BT + R, 0:3 * cin]
        out = jnp.dot(slab.astype(mdt), w_ref[...], preferred_element_type=f32)
        return jnp.maximum(out + b_ref[...], 0.0)

    def maxpool2(y):
        """MaxPool1d(kernel=2, stride=2) along time: pairwise max, no matmuls."""
        R, C = y.shape
        T = R // BT
        yr = y.reshape(T // 2, 2 * BT, C)
        return jnp.maximum(yr[:, :BT, :], yr[:, BT:, :]).reshape((T // 2) * BT, C)

    # ---- CNN feature extractor (dropout1..3 identity in eval mode) ----
    x = x_ref[...].reshape(T0 * BT, nf)
    h = conv_bn_relu(x, cw1_ref, cb1_ref)            # (T*BT,   64)
    h = maxpool2(h)                                  # (T/2*BT, 64)
    h = conv_bn_relu(h, cw2_ref, cb2_ref)            # (T/2*BT, 128)
    h = maxpool2(h)                                  # (T/4*BT, 128)
    h = conv_bn_relu(h, cw3_ref, cb3_ref)            # (T/4*BT, 64)

    Tc = T0 // 4
    mdt = whh1_ref.dtype

    def lstm_cell(g, c):                             # PyTorch gate order: i, f, g, o
        i_g = jax.nn.sigmoid(g[:, 0 * HP:1 * HP])
        f_g = jax.nn.sigmoid(g[:, 1 * HP:2 * HP])
        g_g = jnp.tanh(g[:, 2 * HP:3 * HP])
        o_g = jax.nn.sigmoid(g[:, 3 * HP:4 * HP])
        c_new = f_g * c + i_g * g_g
        return o_g * jnp.tanh(c_new), c_new

    # Layer-1 input projection hoisted out of the recurrence: one big MXU matmul.
    g_scr[...] = (jnp.dot(h.astype(mdt), wih1_ref[...], preferred_element_type=f32)
                  + bl1_ref[...])

    whh1 = whh1_ref[...]
    w2 = w2_ref[...]
    bl2 = bl2_ref[...]
    z = jnp.zeros((BT, HP), f32)

    # Wavefront-interleaved 2-layer recurrence: step t computes layer-1 h1_t and
    # layer-2 h2_{t-1}; both per-step matmuls depend only on step t-1 results, so the
    # sequential matmul chain is ~Tc long instead of ~2*Tc.  Layer-2's input +
    # recurrent projections are fused into a single (BT, 2*HP) x (2*HP, 4*HP) dot.
    def step(t, carry):
        h1_prev, c1_prev, h2_prev, c2_prev = carry
        row = pl.multiple_of(t * BT, BT)
        g1 = g_scr[pl.ds(row, BT), :] + jnp.dot(h1_prev.astype(mdt), whh1,
                                                preferred_element_type=f32)
        h1_new, c1_new = lstm_cell(g1, c1_prev)
        g2 = jnp.dot(jnp.concatenate([h1_prev, h2_prev], axis=1).astype(mdt), w2,
                     preferred_element_type=f32) + bl2
        h2_new, c2_new = lstm_cell(g2, c2_prev)
        keep = t > 0                                 # step 0 has no h1_{-1}: keep zero state
        h2_new = jnp.where(keep, h2_new, 0.0)
        c2_new = jnp.where(keep, c2_new, 0.0)
        return (h1_new, c1_new, h2_new, c2_new)

    unroll = True if Tc <= 16 else 8                 # bounded unroll limits vreg pressure
    h1_last, _, h2_prev, c2_prev = lax.fori_loop(0, Tc, step, (z, z, z, z),
                                                 unroll=unroll)

    # Epilogue: last layer-2 step (t = Tc-1).  Inter-layer dropout identity in eval mode.
    g2 = jnp.dot(jnp.concatenate([h1_last, h2_prev], axis=1).astype(mdt), w2,
                 preferred_element_type=f32) + bl2
    h2_last, _ = lstm_cell(g2, c2_prev)

    # ---- classifier head (dropout4/5 identity; n_classes == 2 -> sigmoid) ----
    a = jnp.maximum(jnp.dot(h2_last, hw1_ref[...], preferred_element_type=f32)
                    + hb1_ref[...], 0.0)
    a = jnp.maximum(jnp.dot(a, hw2_ref[...], preferred_element_type=f32)
                    + hb2_ref[...], 0.0)
    logit = jnp.dot(a, hw3_ref[...], preferred_element_type=f32) + hb3_ref[...]
    o_ref[...] = jax.nn.sigmoid(logit)


# ----------------------------------------------------------------------------
# Wrapper: trace-time BN folding / hidden & batch padding, then one pallas_call
# over a parallel batch-tile grid.
# ----------------------------------------------------------------------------
def _pad_gate_cols(w):
    """(in, 4*H) -> (in, 4*HP): zero-pad each of the i,f,g,o blocks from H to HP lanes."""
    blocks = [jnp.pad(w[:, g * H:(g + 1) * H], ((0, 0), (0, HP - H))) for g in range(4)]
    return jnp.concatenate(blocks, axis=1)


def _pad_rows(w, rows):
    return jnp.pad(w, ((0, rows - w.shape[0]), (0, 0)))


def cnn_lstm_forward(x, params, *, matmul_dtype=jnp.float32):
    """x: (B, sequence_length, n_features) -> (B, 1) sigmoid probability.

    matmul_dtype=jnp.bfloat16 feeds the MXU in bf16 on v6e/v7x (only the dot inputs are
    cast; all elementwise / gate math stays f32, which is also the v5e-safe choice).
    """
    B, T0, nf = x.shape
    assert T0 % 4 == 0, "sequence_length must be divisible by 4 (two MaxPool1d(2) stages)"
    Tc = T0 // 4
    BPAD = ((B + BT - 1) // BT) * BT
    n_tiles = BPAD // BT

    # Fold eval-mode BatchNorm into the conv weight/bias; reshape conv weights into the
    # im2col layout (3*cin, cout).
    def fold_bn(block, cin):
        w, b, gamma, beta, mean, var = block
        s = gamma * lax.rsqrt(var + BN_EPS)                   # (1, cout)
        wf = (w * s).reshape(3 * cin, w.shape[-1]).astype(matmul_dtype)
        return wf, (b - mean) * s + beta

    cw1, cb1 = fold_bn(params["conv1"], nf)
    cw2, cb2 = fold_bn(params["conv2"], 64)
    cw3, cb3 = fold_bn(params["conv3"], 128)

    # LSTM: pad hidden 100 -> 128 (padded gate biases are 0 so the padded h/c lanes stay
    # exactly zero through the recurrence) and fuse layer-2's input + recurrent weights.
    wih1, whh1, bl1, wih2, whh2, bl2 = params["lstm"]
    wih1p = _pad_gate_cols(wih1).astype(matmul_dtype)                     # (64, 512)
    whh1p = _pad_rows(_pad_gate_cols(whh1), HP).astype(matmul_dtype)      # (128, 512)
    bl1p = _pad_gate_cols(bl1)                                            # (1, 512)
    w2f = jnp.concatenate([_pad_rows(_pad_gate_cols(wih2), HP),
                           _pad_rows(_pad_gate_cols(whh2), HP)],
                          axis=0).astype(matmul_dtype)                    # (256, 512)
    bl2p = _pad_gate_cols(bl2)                                            # (1, 512)

    hw1, hb1, hw2, hb2, hw3, hb3 = params["head"]
    hw1p = _pad_rows(hw1, HP)                                             # (128, 64)

    # Zero-pad the batch to a multiple of BT (padded samples never mix with real ones:
    # all conv shifts are whole-timestep == whole BT-row shifts) and lay the input out
    # time-major as (T, BPAD, nf) so each grid step takes one BT-wide batch tile.
    xp = jnp.pad(x, ((0, BPAD - B), (0, 0), (0, 0)))
    x_tm = jnp.transpose(xp, (1, 0, 2))                                   # (T0, BPAD, nf)

    weights = (cw1, cb1, cw2, cb2, cw3, cb3,
               wih1p, whh1p, bl1p, w2f, bl2p,
               hw1p, hb1, hw2, hb2, hw3, hb3)

    def full_spec(a):
        nd = a.ndim
        return pl.BlockSpec(a.shape, lambda i, _nd=nd: (0,) * _nd)

    in_specs = ([pl.BlockSpec((T0, BT, nf), lambda i: (0, i, 0))]
                + [full_spec(w) for w in weights])
    out_spec = pl.BlockSpec((BT, 1), lambda i: (i, 0))

    scratch_shapes = [
        pltpu.VMEM(((T0 + 2) * BT, 3 * CMAX), jnp.float32),   # im2col slab (+ 2*BT halo rows)
        pltpu.VMEM((Tc * BT, 4 * HP), jnp.float32),           # hoisted layer-1 gate pre-acts
    ]

    # Scoped-VMEM budget: scratches + (double-buffered) weights + a few live (R, C)
    # activation slabs, with 2x headroom; floor 32 MiB, cap 128 MiB.
    scratch_b = ((T0 + 2) * BT * 3 * CMAX + Tc * BT * 4 * HP) * 4
    weight_b = sum(int(w.size) * jnp.dtype(w.dtype).itemsize for w in weights)
    act_b = 4 * T0 * BT * CMAX * 4
    io_b = (T0 * BT * CMAX + BT * CMAX) * 4
    budget = 2 * (scratch_b + 2 * weight_b + act_b + io_b)
    vmem_limit = int(min(max(budget, 32 << 20), 128 << 20))

    out = pl.pallas_call(
        functools.partial(_fused_kernel, T0=T0),
        grid=(n_tiles,),
        out_shape=jax.ShapeDtypeStruct((BPAD, 1), jnp.float32),
        in_specs=in_specs,
        out_specs=out_spec,
        scratch_shapes=scratch_shapes,
        compiler_params=pltpu.CompilerParams(
            dimension_semantics=("parallel",),        # batch tiles shard across TCs on v7x
            vmem_limit_bytes=vmem_limit),
    )(x_tm, *weights)
    return out[:B]


# ----------------------------------------------------------------------------
# Deterministic parameter init (logical PyTorch shapes; conv weights stored as
# (k, Cin, Cout) and linear/LSTM weights as (in, out) — transposed vs. torch, and
# the LSTM bias is the sum b_ih + b_hh; real checkpoints must be converted).
# ----------------------------------------------------------------------------
def init_params(key, n_features=6):
    keys = iter(jax.random.split(key, 32))

    def rnd(shape, scale):
        return scale * jax.random.normal(next(keys), shape, jnp.float32)

    def conv_block(cin, cout):
        w = rnd((3, cin, cout), (3 * cin) ** -0.5)
        b = rnd((1, cout), 0.05)
        gamma = 1.0 + rnd((1, cout), 0.1)
        beta = rnd((1, cout), 0.1)
        mean = rnd((1, cout), 0.1)
        var = 1.0 + 0.2 * jnp.abs(rnd((1, cout), 1.0))
        return (w, b, gamma, beta, mean, var)

    params = {
        "conv1": conv_block(n_features, 64),
        "conv2": conv_block(64, 128),
        "conv3": conv_block(128, 64),
    }

    def lstm_layer(cin):
        wih = rnd((cin, 4 * H), cin ** -0.5)
        whh = rnd((H, 4 * H), H ** -0.5)
        b = rnd((1, 4 * H), 0.05)
        return wih, whh, b

    wih1, whh1, b1 = lstm_layer(64)
    wih2, whh2, b2 = lstm_layer(H)
    params["lstm"] = (wih1, whh1, b1, wih2, whh2, b2)

    params["head"] = (
        rnd((H, 64), H ** -0.5), rnd((1, 64), 0.05),
        rnd((64, 32), 64 ** -0.5), rnd((1, 32), 0.05),
        rnd((32, 1), 32 ** -0.5), rnd((1, 1), 0.05),
    )
    return params


if __name__ == "__main__":
    B = 2
    SEQ_LEN = 16      # sequence_length (divisible by 4, small for the demo)
    N_FEATURES = 6

    key = jax.random.PRNGKey(0)
    pkey, xkey = jax.random.split(key)
    params = init_params(pkey, n_features=N_FEATURES)
    x = jax.random.normal(xkey, (B, SEQ_LEN, N_FEATURES), jnp.float32)

    fwd = jax.jit(cnn_lstm_forward)
    out = jax.block_until_ready(fwd(x, params))

    assert out.shape == (B, 1), out.shape
    assert bool(jnp.all(jnp.isfinite(out)))
    assert bool(jnp.all((out >= 0.0) & (out <= 1.0)))   # sigmoid output
    print("KERNEL_OK")
</pallas_src>

<mosaic_0001>
module attributes {stable_mosaic.version = 11 : i64} {
  func.func @_fused_kernel(%arg0: i32, %arg1: memref<16x8x6xf32, #tpu.memory_space<vmem>>, %arg2: memref<18x64xf32, #tpu.memory_space<vmem>>, %arg3: memref<1x64xf32, #tpu.memory_space<vmem>>, %arg4: memref<192x128xf32, #tpu.memory_space<vmem>>, %arg5: memref<1x128xf32, #tpu.memory_space<vmem>>, %arg6: memref<384x64xf32, #tpu.memory_space<vmem>>, %arg7: memref<1x64xf32, #tpu.memory_space<vmem>>, %arg8: memref<64x512xf32, #tpu.memory_space<vmem>>, %arg9: memref<128x512xf32, #tpu.memory_space<vmem>>, %arg10: memref<1x512xf32, #tpu.memory_space<vmem>>, %arg11: memref<256x512xf32, #tpu.memory_space<vmem>>, %arg12: memref<1x512xf32, #tpu.memory_space<vmem>>, %arg13: memref<128x64xf32, #tpu.memory_space<vmem>>, %arg14: memref<1x64xf32, #tpu.memory_space<vmem>>, %arg15: memref<64x32xf32, #tpu.memory_space<vmem>>, %arg16: memref<1x32xf32, #tpu.memory_space<vmem>>, %arg17: memref<32x1xf32, #tpu.memory_space<vmem>>, %arg18: memref<1x1xf32, #tpu.memory_space<vmem>>, %arg19: memref<8x1xf32, #tpu.memory_space<vmem>>, %arg20: memref<144x384xf32, #tpu.memory_space<vmem>>, %arg21: memref<32x512xf32, #tpu.memory_space<vmem>>) attributes {dimension_semantics = [#tpu.dimension_semantics<parallel>], iteration_bounds = array<i64: 1>, scalar_prefetch = 0 : i64, scratch_operands = 2 : i64, tpu.core_type = #tpu.core_type<tc>, window_params = [{transform_indices = @transform_0, window_bounds = array<i64: 16, 8, 6>}, {pipeline_mode = #tpu.pipeline_mode<synchronous>, transform_indices = @transform_1, window_bounds = array<i64: 18, 64>}, {pipeline_mode = #tpu.pipeline_mode<synchronous>, transform_indices = @transform_2, window_bounds = array<i64: 1, 64>}, {pipeline_mode = #tpu.pipeline_mode<synchronous>, transform_indices = @transform_3, window_bounds = array<i64: 192, 128>}, {pipeline_mode = #tpu.pipeline_mode<synchronous>, transform_indices = @transform_4, window_bounds = array<i64: 1, 128>}, {pipeline_mode = #tpu.pipeline_mode<synchronous>, transform_indices = @transform_5, window_bounds = array<i64: 384, 64>}, {pipeline_mode = #tpu.pipeline_mode<synchronous>, transform_indices = @transform_6, window_bounds = array<i64: 1, 64>}, {pipeline_mode = #tpu.pipeline_mode<synchronous>, transform_indices = @transform_7, window_bounds = array<i64: 64, 512>}, {pipeline_mode = #tpu.pipeline_mode<synchronous>, transform_indices = @transform_8, window_bounds = array<i64: 128, 512>}, {pipeline_mode = #tpu.pipeline_mode<synchronous>, transform_indices = @transform_9, window_bounds = array<i64: 1, 512>}, {pipeline_mode = #tpu.pipeline_mode<synchronous>, transform_indices = @transform_10, window_bounds = array<i64: 256, 512>}, {pipeline_mode = #tpu.pipeline_mode<synchronous>, transform_indices = @transform_11, window_bounds = array<i64: 1, 512>}, {pipeline_mode = #tpu.pipeline_mode<synchronous>, transform_indices = @transform_12, window_bounds = array<i64: 128, 64>}, {pipeline_mode = #tpu.pipeline_mode<synchronous>, transform_indices = @transform_13, window_bounds = array<i64: 1, 64>}, {pipeline_mode = #tpu.pipeline_mode<synchronous>, transform_indices = @transform_14, window_bounds = array<i64: 64, 32>}, {pipeline_mode = #tpu.pipeline_mode<synchronous>, transform_indices = @transform_15, window_bounds = array<i64: 1, 32>}, {pipeline_mode = #tpu.pipeline_mode<synchronous>, transform_indices = @transform_16, window_bounds = array<i64: 32, 1>}, {pipeline_mode = #tpu.pipeline_mode<synchronous>, transform_indices = @transform_17, window_bounds = array<i64: 1, 1>}, {transform_indices = @transform_18, window_bounds = array<i64: 8, 1>}]} {
    %c0 = arith.constant 0 : index
    %c0_0 = arith.constant 0 : index
    %c0_1 = arith.constant 0 : index
    %0 = vector.load %arg1[%c0, %c0_0, %c0_1] : memref<16x8x6xf32, #tpu.memory_space<vmem>>, vector<16x8x6xf32>
    %1 = vector.shape_cast %0 : vector<16x8x6xf32> to vector<128x6xf32>
    %c16 = arith.constant 16 : index
    %c0_2 = arith.constant 0 : index
    %2 = vector.load %arg20[%c16, %c0_2] : memref<144x384xf32, #tpu.memory_space<vmem>>, vector<128x6xf32>
    tpu.vector_store %arg20[%c16, %c0_2], %1 {strides = array<i32>} : memref<144x384xf32, #tpu.memory_space<vmem>>, vector<128x6xf32>,
    %c8 = arith.constant 8 : index
    %c6 = arith.constant 6 : index
    %3 = vector.load %arg20[%c8, %c6] : memref<144x384xf32, #tpu.memory_space<vmem>>, vector<128x6xf32>
    tpu.vector_store %arg20[%c8, %c6], %1 {strides = array<i32>} : memref<144x384xf32, #tpu.memory_space<vmem>>, vector<128x6xf32>,
    %c0_3 = arith.constant 0 : index
    %c12 = arith.constant 12 : index
    %4 = vector.load %arg20[%c0_3, %c12] : memref<144x384xf32, #tpu.memory_space<vmem>>, vector<128x6xf32>
    tpu.vector_store %arg20[%c0_3, %c12], %1 {strides = array<i32>} : memref<144x384xf32, #tpu.memory_space<vmem>>, vector<128x6xf32>,
    %cst = arith.constant 0.000000e+00 : f32
    %5 = vector.broadcast %cst : f32 to vector<8x6xf32>
    %c8_4 = arith.constant 8 : index
    %c0_5 = arith.constant 0 : index
    %6 = vector.load %arg20[%c8_4, %c0_5] : memref<144x384xf32, #tpu.memory_space<vmem>>, vector<8x6xf32>
    tpu.vector_store %arg20[%c8_4, %c0_5], %5 {strides = array<i32>} : memref<144x384xf32, #tpu.memory_space<vmem>>, vector<8x6xf32>,
    %cst_6 = arith.constant 0.000000e+00 : f32
    %7 = vector.broadcast %cst_6 : f32 to vector<8x6xf32>
    %c128 = arith.constant 128 : index
    %c12_7 = arith.constant 12 : index
    %8 = vector.load %arg20[%c128, %c12_7] : memref<144x384xf32, #tpu.memory_space<vmem>>, vector<8x6xf32>
    tpu.vector_store %arg20[%c128, %c12_7], %7 {strides = array<i32>} : memref<144x384xf32, #tpu.memory_space<vmem>>, vector<8x6xf32>,
    %c8_8 = arith.constant 8 : index
    %c0_9 = arith.constant 0 : index
    %9 = vector.load %arg20[%c8_8, %c0_9] : memref<144x384xf32, #tpu.memory_space<vmem>>, vector<128x18xf32>
    %c0_10 = arith.constant 0 : index
    %c0_11 = arith.constant 0 : index
    %10 = vector.load %arg2[%c0_10, %c0_11] : memref<18x64xf32, #tpu.memory_space<vmem>>, vector<18x64xf32>
    %cst_12 = arith.constant dense<0.000000e+00> : vector<128x64xf32>
    %11 = tpu.matmul %9, %10, %cst_12 {dimension_numbers = #tpu.dot_dimension_numbers<[1], [0], [0], [1], [0, 0, 1, 1], [], []>} : vector<128x18xf32>, vector<18x64xf32>, vector<128x64xf32> -> vector<128x64xf32>
    %c0_13 = arith.constant 0 : index
    %c0_14 = arith.constant 0 : index
    %12 = vector.load %arg3[%c0_13, %c0_14] : memref<1x64xf32, #tpu.memory_space<vmem>>, vector<1x64xf32>
    %13 = vector.broadcast %12 : vector<1x64xf32> to vector<128x64xf32>
    %14 = arith.addf %11, %13 : vector<128x64xf32>
    %cst_15 = arith.constant 0.000000e+00 : f32
    %15 = vector.broadcast %cst_15 : f32 to vector<128x64xf32>
    %16 = arith.maximumf %14, %15 : vector<128x64xf32>
    %17 = vector.shape_cast %16 : vector<128x64xf32> to vector<8x16x64xf32>
    %18 = vector.extract_strided_slice %17 {offsets = [0, 0, 0], sizes = [8, 8, 64], strides = [1, 1, 1]} : vector<8x16x64xf32> to vector<8x8x64xf32>
    %19 = vector.extract_strided_slice %17 {offsets = [0, 8, 0], sizes = [8, 8, 64], strides = [1, 1, 1]} : vector<8x16x64xf32> to vector<8x8x64xf32>
    %20 = arith.maximumf %18, %19 : vector<8x8x64xf32>
    %21 = vector.shape_cast %20 : vector<8x8x64xf32> to vector<64x64xf32>
    %c16_16 = arith.constant 16 : index
    %c0_17 = arith.constant 0 : index
    %22 = vector.load %arg20[%c16_16, %c0_17] : memref<144x384xf32, #tpu.memory_space<vmem>>, vector<64x64xf32>
    tpu.vector_store %arg20[%c16_16, %c0_17], %21 {strides = array<i32>} : memref<144x384xf32, #tpu.memory_space<vmem>>, vector<64x64xf32>,
    %c8_18 = arith.constant 8 : index
    %c64 = arith.constant 64 : index
    %23 = vector.load %arg20[%c8_18, %c64] : memref<144x384xf32, #tpu.memory_space<vmem>>, vector<64x64xf32>
    tpu.vector_store %arg20[%c8_18, %c64], %21 {strides = array<i32>} : memref<144x384xf32, #tpu.memory_space<vmem>>, vector<64x64xf32>,
    %c0_19 = arith.constant 0 : index
    %c128_20 = arith.constant 128 : index
    %24 = vector.load %arg20[%c0_19, %c128_20] : memref<144x384xf32, #tpu.memory_space<vmem>>, vector<64x64xf32>
    tpu.vector_store %arg20[%c0_19, %c128_20], %21 {strides = array<i32>} : memref<144x384xf32, #tpu.memory_space<vmem>>, vector<64x64xf32>,
    %cst_21 = arith.constant 0.000000e+00 : f32
    %25 = vector.broadcast %cst_21 : f32 to vector<8x64xf32>
    %c8_22 = arith.constant 8 : index
    %c0_23 = arith.constant 0 : index
    %26 = vector.load %arg20[%c8_22, %c0_23] : memref<144x384xf32, #tpu.memory_space<vmem>>, vector<8x64xf32>
    tpu.vector_store %arg20[%c8_22, %c0_23], %25 {strides = array<i32>} : memref<144x384xf32, #tpu.memory_space<vmem>>, vector<8x64xf32>,
    %cst_24 = arith.constant 0.000000e+00 : f32
    %27 = vector.broadcast %cst_24 : f32 to vector<8x64xf32>
    %c64_25 = arith.constant 64 : index
    %c128_26 = arith.constant 128 : index
    %28 = vector.load %arg20[%c64_25, %c128_26] : memref<144x384xf32, #tpu.memory_space<vmem>>, vector<8x64xf32>
    tpu.vector_store %arg20[%c64_25, %c128_26], %27 {strides = array<i32>} : memref<144x384xf32, #tpu.memory_space<vmem>>, vector<8x64xf32>,
    %c8_27 = arith.constant 8 : index
    %c0_28 = arith.constant 0 : index
    %29 = vector.load %arg20[%c8_27, %c0_28] : memref<144x384xf32, #tpu.memory_space<vmem>>, vector<64x192xf32>
    %c0_29 = arith.constant 0 : index
    %c0_30 = arith.constant 0 : index
    %30 = vector.load %arg4[%c0_29, %c0_30] : memref<192x128xf32, #tpu.memory_space<vmem>>, vector<192x128xf32>
    %cst_31 = arith.constant dense<0.000000e+00> : vector<64x128xf32>
    %31 = tpu.matmul %29, %30, %cst_31 {dimension_numbers = #tpu.dot_dimension_numbers<[1], [0], [0], [1], [0, 0, 1, 1], [], []>} : vector<64x192xf32>, vector<192x128xf32>, vector<64x128xf32> -> vector<64x128xf32>
    %c0_32 = arith.constant 0 : index
    %c0_33 = arith.constant 0 : index
    %32 = vector.load %arg5[%c0_32, %c0_33] : memref<1x128xf32, #tpu.memory_space<vmem>>, vector<1x128xf32>
    %33 = vector.broadcast %32 : vector<1x128xf32> to vector<64x128xf32>
    %34 = arith.addf %31, %33 : vector<64x128xf32>
    %cst_34 = arith.constant 0.000000e+00 : f32
    %35 = vector.broadcast %cst_34 : f32 to vector<64x128xf32>
    %36 = arith.maximumf %34, %35 : vector<64x128xf32>
    %37 = vector.shape_cast %36 : vector<64x128xf32> to vector<4x16x128xf32>
    %38 = vector.extract_strided_slice %37 {offsets = [0, 0, 0], sizes = [4, 8, 128], strides = [1, 1, 1]} : vector<4x16x128xf32> to vector<4x8x128xf32>
    %39 = vector.extract_strided_slice %37 {offsets = [0, 8, 0], sizes = [4, 8, 128], strides = [1, 1, 1]} : vector<4x16x128xf32> to vector<4x8x128xf32>
    %40 = arith.maximumf %38, %39 : vector<4x8x128xf32>
    %41 = vector.shape_cast %40 : vector<4x8x128xf32> to vector<32x128xf32>
    %c16_35 = arith.constant 16 : index
    %c0_36 = arith.constant 0 : index
    %42 = vector.load %arg20[%c16_35, %c0_36] : memref<144x384xf32, #tpu.memory_space<vmem>>, vector<32x128xf32>
    tpu.vector_store %arg20[%c16_35, %c0_36], %41 {strides = array<i32>} : memref<144x384xf32, #tpu.memory_space<vmem>>, vector<32x128xf32>,
    %c8_37 = arith.constant 8 : index
    %c128_38 = arith.constant 128 : index
    %43 = vector.load %arg20[%c8_37, %c128_38] : memref<144x384xf32, #tpu.memory_space<vmem>>, vector<32x128xf32>
    tpu.vector_store %arg20[%c8_37, %c128_38], %41 {strides = array<i32>} : memref<144x384xf32, #tpu.memory_space<vmem>>, vector<32x128xf32>,
    %c0_39 = arith.constant 0 : index
    %c256 = arith.constant 256 : index
    %44 = vector.load %arg20[%c0_39, %c256] : memref<144x384xf32, #tpu.memory_space<vmem>>, vector<32x128xf32>
    tpu.vector_store %arg20[%c0_39, %c256], %41 {strides = array<i32>} : memref<144x384xf32, #tpu.memory_space<vmem>>, vector<32x128xf32>,
    %cst_40 = arith.constant 0.000000e+00 : f32
    %45 = vector.broadcast %cst_40 : f32 to vector<8x128xf32>
    %c8_41 = arith.constant 8 : index
    %c0_42 = arith.constant 0 : index
    %46 = vector.load %arg20[%c8_41, %c0_42] : memref<144x384xf32, #tpu.memory_space<vmem>>, vector<8x128xf32>
    tpu.vector_store %arg20[%c8_41, %c0_42], %45 {strides = array<i32>} : memref<144x384xf32, #tpu.memory_space<vmem>>, vector<8x128xf32>,
    %cst_43 = arith.constant 0.000000e+00 : f32
    %47 = vector.broadcast %cst_43 : f32 to vector<8x128xf32>
    %c32 = arith.constant 32 : index
    %c256_44 = arith.constant 256 : index
    %48 = vector.load %arg20[%c32, %c256_44] : memref<144x384xf32, #tpu.memory_space<vmem>>, vector<8x128xf32>
    tpu.vector_store %arg20[%c32, %c256_44], %47 {strides = array<i32>} : memref<144x384xf32, #tpu.memory_space<vmem>>, vector<8x128xf32>,
    %c8_45 = arith.constant 8 : index
    %c0_46 = arith.constant 0 : index
    %49 = vector.load %arg20[%c8_45, %c0_46] : memref<144x384xf32, #tpu.memory_space<vmem>>, vector<32x384xf32>
    %c0_47 = arith.constant 0 : index
    %c0_48 = arith.constant 0 : index
    %50 = vector.load %arg6[%c0_47, %c0_48] : memref<384x64xf32, #tpu.memory_space<vmem>>, vector<384x64xf32>
    %cst_49 = arith.constant dense<0.000000e+00> : vector<32x64xf32>
    %51 = tpu.matmul %49, %50, %cst_49 {dimension_numbers = #tpu.dot_dimension_numbers<[1], [0], [0], [1], [0, 0, 1, 1], [], []>} : vector<32x384xf32>, vector<384x64xf32>, vector<32x64xf32> -> vector<32x64xf32>
    %c0_50 = arith.constant 0 : index
    %c0_51 = arith.constant 0 : index
    %52 = vector.load %arg7[%c0_50, %c0_51] : memref<1x64xf32, #tpu.memory_space<vmem>>, vector<1x64xf32>
    %53 = vector.broadcast %52 : vector<1x64xf32> to vector<32x64xf32>
    %54 = arith.addf %51, %53 : vector<32x64xf32>
    %cst_52 = arith.constant 0.000000e+00 : f32
    %55 = vector.broadcast %cst_52 : f32 to vector<32x64xf32>
    %56 = arith.maximumf %54, %55 : vector<32x64xf32>
    %c0_53 = arith.constant 0 : index
    %c0_54 = arith.constant 0 : index
    %57 = vector.load %arg8[%c0_53, %c0_54] : memref<64x512xf32, #tpu.memory_space<vmem>>, vector<64x512xf32>
    %cst_55 = arith.constant dense<0.000000e+00> : vector<32x512xf32>
    %58 = tpu.matmul %56, %57, %cst_55 {dimension_numbers = #tpu.dot_dimension_numbers<[1], [0], [0], [1], [0, 0, 1, 1], [], []>} : vector<32x64xf32>, vector<64x512xf32>, vector<32x512xf32> -> vector<32x512xf32>
    %c0_56 = arith.constant 0 : index
    %c0_57 = arith.constant 0 : index
    %59 = vector.load %arg10[%c0_56, %c0_57] : memref<1x512xf32, #tpu.memory_space<vmem>>, vector<1x512xf32>
    %60 = vector.broadcast %59 : vector<1x512xf32> to vector<32x512xf32>
    %61 = arith.addf %58, %60 : vector<32x512xf32>
    %c0_58 = arith.constant 0 : index
    %c0_59 = arith.constant 0 : index
    %62 = vector.load %arg21[%c0_58, %c0_59] : memref<32x512xf32, #tpu.memory_space<vmem>>, vector<32x512xf32>
    tpu.vector_store %arg21[%c0_58, %c0_59], %61 {strides = array<i32>} : memref<32x512xf32, #tpu.memory_space<vmem>>, vector<32x512xf32>,
    %c0_60 = arith.constant 0 : index
    %c0_61 = arith.constant 0 : index
    %63 = vector.load %arg9[%c0_60, %c0_61] : memref<128x512xf32, #tpu.memory_space<vmem>>, vector<128x512xf32>
    %c0_62 = arith.constant 0 : index
    %c0_63 = arith.constant 0 : index
    %64 = vector.load %arg11[%c0_62, %c0_63] : memref<256x512xf32, #tpu.memory_space<vmem>>, vector<256x512xf32>
    %c0_64 = arith.constant 0 : index
    %c0_65 = arith.constant 0 : index
    %65 = vector.load %arg12[%c0_64, %c0_65] : memref<1x512xf32, #tpu.memory_space<vmem>>, vector<1x512xf32>
    %cst_66 = arith.constant 0.000000e+00 : f32
    %66 = vector.broadcast %cst_66 : f32 to vector<8x128xf32>
    %c0_i32 = arith.constant 0 : i32
    %c8_i32 = arith.constant 8 : i32
    %67 = arith.muli %c0_i32, %c8_i32 : i32
    %68 = tpu.assume_multiple %67, 8 : i32
    %69 = arith.index_cast %68 : i32 to index
    %c0_67 = arith.constant 0 : index
    %70 = vector.load %arg21[%69, %c0_67] : memref<32x512xf32, #tpu.memory_space<vmem>>, vector<8x512xf32>
    %cst_68 = arith.constant dense<0.000000e+00> : vector<8x512xf32>
    %71 = tpu.matmul %66, %63, %cst_68 {dimension_numbers = #tpu.dot_dimension_numbers<[1], [0], [0], [1], [0, 0, 1, 1], [], []>} : vector<8x128xf32>, vector<128x512xf32>, vector<8x512xf32> -> vector<8x512xf32>
    %72 = arith.addf %70, %71 : vector<8x512xf32>
    %73 = vector.extract_strided_slice %72 {offsets = [0, 0], sizes = [8, 128], strides = [1, 1]} : vector<8x512xf32> to vector<8x128xf32>
    %74 = arith.negf %73 : vector<8x128xf32>
    %75 = math.exp %74 : vector<8x128xf32>
    %cst_69 = arith.constant 1.000000e+00 : f32
    %76 = vector.broadcast %cst_69 : f32 to vector<8x128xf32>
    %77 = arith.addf %76, %75 : vector<8x128xf32>
    %78 = arith.divf %76, %77 : vector<8x128xf32>
    %79 = vector.extract_strided_slice %72 {offsets = [0, 128], sizes = [8, 128], strides = [1, 1]} : vector<8x512xf32> to vector<8x128xf32>
    %80 = arith.negf %79 : vector<8x128xf32>
    %81 = math.exp %80 : vector<8x128xf32>
    %cst_70 = arith.constant 1.000000e+00 : f32
    %82 = vector.broadcast %cst_70 : f32 to vector<8x128xf32>
    %83 = arith.addf %82, %81 : vector<8x128xf32>
    %84 = arith.divf %82, %83 : vector<8x128xf32>
    %85 = vector.extract_strided_slice %72 {offsets = [0, 256], sizes = [8, 128], strides = [1, 1]} : vector<8x512xf32> to vector<8x128xf32>
    %86 = math.tanh %85 : vector<8x128xf32>
    %87 = vector.extract_strided_slice %72 {offsets = [0, 384], sizes = [8, 128], strides = [1, 1]} : vector<8x512xf32> to vector<8x128xf32>
    %88 = arith.negf %87 : vector<8x128xf32>
    %89 = math.exp %88 : vector<8x128xf32>
    %cst_71 = arith.constant 1.000000e+00 : f32
    %90 = vector.broadcast %cst_71 : f32 to vector<8x128xf32>
    %91 = arith.addf %90, %89 : vector<8x128xf32>
    %92 = arith.divf %90, %91 : vector<8x128xf32>
    %93 = arith.mulf %84, %66 : vector<8x128xf32>
    %94 = arith.mulf %78, %86 : vector<8x128xf32>
    %95 = arith.addf %93, %94 : vector<8x128xf32>
    %96 = math.tanh %95 : vector<8x128xf32>
    %97 = arith.mulf %92, %96 : vector<8x128xf32>
    %98 = tpu.concatenate %66, %66 in 1 : vector<8x128xf32>, vector<8x128xf32> -> vector<8x256xf32>
    %cst_72 = arith.constant dense<0.000000e+00> : vector<8x512xf32>
    %99 = tpu.matmul %98, %64, %cst_72 {dimension_numbers = #tpu.dot_dimension_numbers<[1], [0], [0], [1], [0, 0, 1, 1], [], []>} : vector<8x256xf32>, vector<256x512xf32>, vector<8x512xf32> -> vector<8x512xf32>
    %100 = vector.broadcast %65 : vector<1x512xf32> to vector<8x512xf32>
    %101 = arith.addf %99, %100 : vector<8x512xf32>
    %102 = vector.extract_strided_slice %101 {offsets = [0, 0], sizes = [8, 128], strides = [1, 1]} : vector<8x512xf32> to vector<8x128xf32>
    %103 = arith.negf %102 : vector<8x128xf32>
    %104 = math.exp %103 : vector<8x128xf32>
    %cst_73 = arith.constant 1.000000e+00 : f32
    %105 = vector.broadcast %cst_73 : f32 to vector<8x128xf32>
    %106 = arith.addf %105, %104 : vector<8x128xf32>
    %107 = arith.divf %105, %106 : vector<8x128xf32>
    %108 = vector.extract_strided_slice %101 {offsets = [0, 128], sizes = [8, 128], strides = [1, 1]} : vector<8x512xf32> to vector<8x128xf32>
    %109 = arith.negf %108 : vector<8x128xf32>
    %110 = math.exp %109 : vector<8x128xf32>
    %cst_74 = arith.constant 1.000000e+00 : f32
    %111 = vector.broadcast %cst_74 : f32 to vector<8x128xf32>
    %112 = arith.addf %111, %110 : vector<8x128xf32>
    %113 = arith.divf %111, %112 : vector<8x128xf32>
    %114 = vector.extract_strided_slice %101 {offsets = [0, 256], sizes = [8, 128], strides = [1, 1]} : vector<8x512xf32> to vector<8x128xf32>
    %115 = math.tanh %114 : vector<8x128xf32>
    %116 = vector.extract_strided_slice %101 {offsets = [0, 384], sizes = [8, 128], strides = [1, 1]} : vector<8x512xf32> to vector<8x128xf32>
    %117 = arith.negf %116 : vector<8x128xf32>
    %118 = math.exp %117 : vector<8x128xf32>
    %cst_75 = arith.constant 1.000000e+00 : f32
    %119 = vector.broadcast %cst_75 : f32 to vector<8x128xf32>
    %120 = arith.addf %119, %118 : vector<8x128xf32>
    %121 = arith.divf %119, %120 : vector<8x128xf32>
    %122 = arith.mulf %113, %66 : vector<8x128xf32>
    %123 = arith.mulf %107, %115 : vector<8x128xf32>
    %124 = arith.addf %122, %123 : vector<8x128xf32>
    %125 = math.tanh %124 : vector<8x128xf32>
    %126 = arith.mulf %121, %125 : vector<8x128xf32>
    %c0_i32_76 = arith.constant 0 : i32
    %127 = arith.cmpi sgt, %c0_i32, %c0_i32_76 : i32
    %cst_77 = arith.constant 0.000000e+00 : f32
    %128 = vector.broadcast %cst_77 : f32 to vector<8x128xf32>
    %129 = arith.select %127, %126, %128 : vector<8x128xf32>
    %cst_78 = arith.constant 0.000000e+00 : f32
    %130 = vector.broadcast %cst_78 : f32 to vector<8x128xf32>
    %131 = arith.select %127, %124, %130 : vector<8x128xf32>
    %c1_i32 = arith.constant 1 : i32
    %c8_i32_79 = arith.constant 8 : i32
    %132 = arith.muli %c1_i32, %c8_i32_79 : i32
    %133 = tpu.assume_multiple %132, 8 : i32
    %134 = arith.index_cast %133 : i32 to index
    %c0_80 = arith.constant 0 : index
    %135 = vector.load %arg21[%134, %c0_80] : memref<32x512xf32, #tpu.memory_space<vmem>>, vector<8x512xf32>
    %cst_81 = arith.constant dense<0.000000e+00> : vector<8x512xf32>
    %136 = tpu.matmul %97, %63, %cst_81 {dimension_numbers = #tpu.dot_dimension_numbers<[1], [0], [0], [1], [0, 0, 1, 1], [], []>} : vector<8x128xf32>, vector<128x512xf32>, vector<8x512xf32> -> vector<8x512xf32>
    %137 = arith.addf %135, %136 : vector<8x512xf32>
    %138 = vector.extract_strided_slice %137 {offsets = [0, 0], sizes = [8, 128], strides = [1, 1]} : vector<8x512xf32> to vector<8x128xf32>
    %139 = arith.negf %138 : vector<8x128xf32>
    %140 = math.exp %139 : vector<8x128xf32>
    %cst_82 = arith.constant 1.000000e+00 : f32
    %141 = vector.broadcast %cst_82 : f32 to vector<8x128xf32>
    %142 = arith.addf %141, %140 : vector<8x128xf32>
    %143 = arith.divf %141, %142 : vector<8x128xf32>
    %144 = vector.extract_strided_slice %137 {offsets = [0, 128], sizes = [8, 128], strides = [1, 1]} : vector<8x512xf32> to vector<8x128xf32>
    %145 = arith.negf %144 : vector<8x128xf32>
    %146 = math.exp %145 : vector<8x128xf32>
    %cst_83 = arith.constant 1.000000e+00 : f32
    %147 = vector.broadcast %cst_83 : f32 to vector<8x128xf32>
    %148 = arith.addf %147, %146 : vector<8x128xf32>
    %149 = arith.divf %147, %148 : vector<8x128xf32>
    %150 = vector.extract_strided_slice %137 {offsets = [0, 256], sizes = [8, 128], strides = [1, 1]} : vector<8x512xf32> to vector<8x128xf32>
    %151 = math.tanh %150 : vector<8x128xf32>
    %152 = vector.extract_strided_slice %137 {offsets = [0, 384], sizes = [8, 128], strides = [1, 1]} : vector<8x512xf32> to vector<8x128xf32>
    %153 = arith.negf %152 : vector<8x128xf32>
    %154 = math.exp %153 : vector<8x128xf32>
    %cst_84 = arith.constant 1.000000e+00 : f32
    %155 = vector.broadcast %cst_84 : f32 to vector<8x128xf32>
    %156 = arith.addf %155, %154 : vector<8x128xf32>
    %157 = arith.divf %155, %156 : vector<8x128xf32>
    %158 = arith.mulf %149, %95 : vector<8x128xf32>
    %159 = arith.mulf %143, %151 : vector<8x128xf32>
    %160 = arith.addf %158, %159 : vector<8x128xf32>
    %161 = math.tanh %160 : vector<8x128xf32>
    %162 = arith.mulf %157, %161 : vector<8x128xf32>
    %163 = tpu.concatenate %97, %129 in 1 : vector<8x128xf32>, vector<8x128xf32> -> vector<8x256xf32>
    %cst_85 = arith.constant dense<0.000000e+00> : vector<8x512xf32>
    %164 = tpu.matmul %163, %64, %cst_85 {dimension_numbers = #tpu.dot_dimension_numbers<[1], [0], [0], [1], [0, 0, 1, 1], [], []>} : vector<8x256xf32>, vector<256x512xf32>, vector<8x512xf32> -> vector<8x512xf32>
    %165 = vector.broadcast %65 : vector<1x512xf32> to vector<8x512xf32>
    %166 = arith.addf %164, %165 : vector<8x512xf32>
    %167 = vector.extract_strided_slice %166 {offsets = [0, 0], sizes = [8, 128], strides = [1, 1]} : vector<8x512xf32> to vector<8x128xf32>
    %168 = arith.negf %167 : vector<8x128xf32>
    %169 = math.exp %168 : vector<8x128xf32>
    %cst_86 = arith.constant 1.000000e+00 : f32
    %170 = vector.broadcast %cst_86 : f32 to vector<8x128xf32>
    %171 = arith.addf %170, %169 : vector<8x128xf32>
    %172 = arith.divf %170, %171 : vector<8x128xf32>
    %173 = vector.extract_strided_slice %166 {offsets = [0, 128], sizes = [8, 128], strides = [1, 1]} : vector<8x512xf32> to vector<8x128xf32>
    %174 = arith.negf %173 : vector<8x128xf32>
    %175 = math.exp %174 : vector<8x128xf32>
    %cst_87 = arith.constant 1.000000e+00 : f32
    %176 = vector.broadcast %cst_87 : f32 to vector<8x128xf32>
    %177 = arith.addf %176, %175 : vector<8x128xf32>
    %178 = arith.divf %176, %177 : vector<8x128xf32>
    %179 = vector.extract_strided_slice %166 {offsets = [0, 256], sizes = [8, 128], strides = [1, 1]} : vector<8x512xf32> to vector<8x128xf32>
    %180 = math.tanh %179 : vector<8x128xf32>
    %181 = vector.extract_strided_slice %166 {offsets = [0, 384], sizes = [8, 128], strides = [1, 1]} : vector<8x512xf32> to vector<8x128xf32>
    %182 = arith.negf %181 : vector<8x128xf32>
    %183 = math.exp %182 : vector<8x128xf32>
    %cst_88 = arith.constant 1.000000e+00 : f32
    %184 = vector.broadcast %cst_88 : f32 to vector<8x128xf32>
    %185 = arith.addf %184, %183 : vector<8x128xf32>
    %186 = arith.divf %184, %185 : vector<8x128xf32>
    %187 = arith.mulf %178, %131 : vector<8x128xf32>
    %188 = arith.mulf %172, %180 : vector<8x128xf32>
    %189 = arith.addf %187, %188 : vector<8x128xf32>
    %190 = math.tanh %189 : vector<8x128xf32>
    %191 = arith.mulf %186, %190 : vector<8x128xf32>
    %c0_i32_89 = arith.constant 0 : i32
    %192 = arith.cmpi sgt, %c1_i32, %c0_i32_89 : i32
    %cst_90 = arith.constant 0.000000e+00 : f32
    %193 = vector.broadcast %cst_90 : f32 to vector<8x128xf32>
    %194 = arith.select %192, %191, %193 : vector<8x128xf32>
    %cst_91 = arith.constant 0.000000e+00 : f32
    %195 = vector.broadcast %cst_91 : f32 to vector<8x128xf32>
    %196 = arith.select %192, %189, %195 : vector<8x128xf32>
    %c2_i32 = arith.constant 2 : i32
    %c8_i32_92 = arith.constant 8 : i32
    %197 = arith.muli %c2_i32, %c8_i32_92 : i32
    %198 = tpu.assume_multiple %197, 8 : i32
    %199 = arith.index_cast %198 : i32 to index
    %c0_93 = arith.constant 0 : index
    %200 = vector.load %arg21[%199, %c0_93] : memref<32x512xf32, #tpu.memory_space<vmem>>, vector<8x512xf32>
    %cst_94 = arith.constant dense<0.000000e+00> : vector<8x512xf32>
    %201 = tpu.matmul %162, %63, %cst_94 {dimension_numbers = #tpu.dot_dimension_numbers<[1], [0], [0], [1], [0, 0, 1, 1], [], []>} : vector<8x128xf32>, vector<128x512xf32>, vector<8x512xf32> -> vector<8x512xf32>
    %202 = arith.addf %200, %201 : vector<8x512xf32>
    %203 = vector.extract_strided_slice %202 {offsets = [0, 0], sizes = [8, 128], strides = [1, 1]} : vector<8x512xf32> to vector<8x128xf32>
    %204 = arith.negf %203 : vector<8x128xf32>
    %205 = math.exp %204 : vector<8x128xf32>
    %cst_95 = arith.constant 1.000000e+00 : f32
    %206 = vector.broadcast %cst_95 : f32 to vector<8x128xf32>
    %207 = arith.addf %206, %205 : vector<8x128xf32>
    %208 = arith.divf %206, %207 : vector<8x128xf32>
    %209 = vector.extract_strided_slice %202 {offsets = [0, 128], sizes = [8, 128], strides = [1, 1]} : vector<8x512xf32> to vector<8x128xf32>
    %210 = arith.negf %209 : vector<8x128xf32>
    %211 = math.exp %210 : vector<8x128xf32>
    %cst_96 = arith.constant 1.000000e+00 : f32
    %212 = vector.broadcast %cst_96 : f32 to vector<8x128xf32>
    %213 = arith.addf %212, %211 : vector<8x128xf32>
    %214 = arith.divf %212, %213 : vector<8x128xf32>
    %215 = vector.extract_strided_slice %202 {offsets = [0, 256], sizes = [8, 128], strides = [1, 1]} : vector<8x512xf32> to vector<8x128xf32>
    %216 = math.tanh %215 : vector<8x128xf32>
    %217 = vector.extract_strided_slice %202 {offsets = [0, 384], sizes = [8, 128], strides = [1, 1]} : vector<8x512xf32> to vector<8x128xf32>
    %218 = arith.negf %217 : vector<8x128xf32>
    %219 = math.exp %218 : vector<8x128xf32>
    %cst_97 = arith.constant 1.000000e+00 : f32
    %220 = vector.broadcast %cst_97 : f32 to vector<8x128xf32>
    %221 = arith.addf %220, %219 : vector<8x128xf32>
    %222 = arith.divf %220, %221 : vector<8x128xf32>
    %223 = arith.mulf %214, %160 : vector<8x128xf32>
    %224 = arith.mulf %208, %216 : vector<8x128xf32>
    %225 = arith.addf %223, %224 : vector<8x128xf32>
    %226 = math.tanh %225 : vector<8x128xf32>
    %227 = arith.mulf %222, %226 : vector<8x128xf32>
    %228 = tpu.concatenate %162, %194 in 1 : vector<8x128xf32>, vector<8x128xf32> -> vector<8x256xf32>
    %cst_98 = arith.constant dense<0.000000e+00> : vector<8x512xf32>
    %229 = tpu.matmul %228, %64, %cst_98 {dimension_numbers = #tpu.dot_dimension_numbers<[1], [0], [0], [1], [0, 0, 1, 1], [], []>} : vector<8x256xf32>, vector<256x512xf32>, vector<8x512xf32> -> vector<8x512xf32>
    %230 = vector.broadcast %65 : vector<1x512xf32> to vector<8x512xf32>
    %231 = arith.addf %229, %230 : vector<8x512xf32>
    %232 = vector.extract_strided_slice %231 {offsets = [0, 0], sizes = [8, 128], strides = [1, 1]} : vector<8x512xf32> to vector<8x128xf32>
    %233 = arith.negf %232 : vector<8x128xf32>
    %234 = math.exp %233 : vector<8x128xf32>
    %cst_99 = arith.constant 1.000000e+00 : f32
    %235 = vector.broadcast %cst_99 : f32 to vector<8x128xf32>
    %236 = arith.addf %235, %234 : vector<8x128xf32>
    %237 = arith.divf %235, %236 : vector<8x128xf32>
    %238 = vector.extract_strided_slice %231 {offsets = [0, 128], sizes = [8, 128], strides = [1, 1]} : vector<8x512xf32> to vector<8x128xf32>
    %239 = arith.negf %238 : vector<8x128xf32>
    %240 = math.exp %239 : vector<8x128xf32>
    %cst_100 = arith.constant 1.000000e+00 : f32
    %241 = vector.broadcast %cst_100 : f32 to vector<8x128xf32>
    %242 = arith.addf %241, %240 : vector<8x128xf32>
    %243 = arith.divf %241, %242 : vector<8x128xf32>
    %244 = vector.extract_strided_slice %231 {offsets = [0, 256], sizes = [8, 128], strides = [1, 1]} : vector<8x512xf32> to vector<8x128xf32>
    %245 = math.tanh %244 : vector<8x128xf32>
    %246 = vector.extract_strided_slice %231 {offsets = [0, 384], sizes = [8, 128], strides = [1, 1]} : vector<8x512xf32> to vector<8x128xf32>
    %247 = arith.negf %246 : vector<8x128xf32>
    %248 = math.exp %247 : vector<8x128xf32>
    %cst_101 = arith.constant 1.000000e+00 : f32
    %249 = vector.broadcast %cst_101 : f32 to vector<8x128xf32>
    %250 = arith.addf %249, %248 : vector<8x128xf32>
    %251 = arith.divf %249, %250 : vector<8x128xf32>
    %252 = arith.mulf %243, %196 : vector<8x128xf32>
    %253 = arith.mulf %237, %245 : vector<8x128xf32>
    %254 = arith.addf %252, %253 : vector<8x128xf32>
    %255 = math.tanh %254 : vector<8x128xf32>
    %256 = arith.mulf %251, %255 : vector<8x128xf32>
    %c0_i32_102 = arith.constant 0 : i32
    %257 = arith.cmpi sgt, %c2_i32, %c0_i32_102 : i32
    %cst_103 = arith.constant 0.000000e+00 : f32
    %258 = vector.broadcast %cst_103 : f32 to vector<8x128xf32>
    %259 = arith.select %257, %256, %258 : vector<8x128xf32>
    %cst_104 = arith.constant 0.000000e+00 : f32
    %260 = vector.broadcast %cst_104 : f32 to vector<8x128xf32>
    %261 = arith.select %257, %254, %260 : vector<8x128xf32>
    %c3_i32 = arith.constant 3 : i32
    %c8_i32_105 = arith.constant 8 : i32
    %262 = arith.muli %c3_i32, %c8_i32_105 : i32
    %263 = tpu.assume_multiple %262, 8 : i32
    %264 = arith.index_cast %263 : i32 to index
    %c0_106 = arith.constant 0 : index
    %265 = vector.load %arg21[%264, %c0_106] : memref<32x512xf32, #tpu.memory_space<vmem>>, vector<8x512xf32>
    %cst_107 = arith.constant dense<0.000000e+00> : vector<8x512xf32>
    %266 = tpu.matmul %227, %63, %cst_107 {dimension_numbers = #tpu.dot_dimension_numbers<[1], [0], [0], [1], [0, 0, 1, 1], [], []>} : vector<8x128xf32>, vector<128x512xf32>, vector<8x512xf32> -> vector<8x512xf32>
    %267 = arith.addf %265, %266 : vector<8x512xf32>
    %268 = vector.extract_strided_slice %267 {offsets = [0, 0], sizes = [8, 128], strides = [1, 1]} : vector<8x512xf32> to vector<8x128xf32>
    %269 = arith.negf %268 : vector<8x128xf32>
    %270 = math.exp %269 : vector<8x128xf32>
    %cst_108 = arith.constant 1.000000e+00 : f32
    %271 = vector.broadcast %cst_108 : f32 to vector<8x128xf32>
    %272 = arith.addf %271, %270 : vector<8x128xf32>
    %273 = arith.divf %271, %272 : vector<8x128xf32>
    %274 = vector.extract_strided_slice %267 {offsets = [0, 128], sizes = [8, 128], strides = [1, 1]} : vector<8x512xf32> to vector<8x128xf32>
    %275 = arith.negf %274 : vector<8x128xf32>
    %276 = math.exp %275 : vector<8x128xf32>
    %cst_109 = arith.constant 1.000000e+00 : f32
    %277 = vector.broadcast %cst_109 : f32 to vector<8x128xf32>
    %278 = arith.addf %277, %276 : vector<8x128xf32>
    %279 = arith.divf %277, %278 : vector<8x128xf32>
    %280 = vector.extract_strided_slice %267 {offsets = [0, 256], sizes = [8, 128], strides = [1, 1]} : vector<8x512xf32> to vector<8x128xf32>
    %281 = math.tanh %280 : vector<8x128xf32>
    %282 = vector.extract_strided_slice %267 {offsets = [0, 384], sizes = [8, 128], strides = [1, 1]} : vector<8x512xf32> to vector<8x128xf32>
    %283 = arith.negf %282 : vector<8x128xf32>
    %284 = math.exp %283 : vector<8x128xf32>
    %cst_110 = arith.constant 1.000000e+00 : f32
    %285 = vector.broadcast %cst_110 : f32 to vector<8x128xf32>
    %286 = arith.addf %285, %284 : vector<8x128xf32>
    %287 = arith.divf %285, %286 : vector<8x128xf32>
    %288 = arith.mulf %279, %225 : vector<8x128xf32>
    %289 = arith.mulf %273, %281 : vector<8x128xf32>
    %290 = arith.addf %288, %289 : vector<8x128xf32>
    %291 = math.tanh %290 : vector<8x128xf32>
    %292 = arith.mulf %287, %291 : vector<8x128xf32>
    %293 = tpu.concatenate %227, %259 in 1 : vector<8x128xf32>, vector<8x128xf32> -> vector<8x256xf32>
    %cst_111 = arith.constant dense<0.000000e+00> : vector<8x512xf32>
    %294 = tpu.matmul %293, %64, %cst_111 {dimension_numbers = #tpu.dot_dimension_numbers<[1], [0], [0], [1], [0, 0, 1, 1], [], []>} : vector<8x256xf32>, vector<256x512xf32>, vector<8x512xf32> -> vector<8x512xf32>
    %295 = vector.broadcast %65 : vector<1x512xf32> to vector<8x512xf32>
    %296 = arith.addf %294, %295 : vector<8x512xf32>
    %297 = vector.extract_strided_slice %296 {offsets = [0, 0], sizes = [8, 128], strides = [1, 1]} : vector<8x512xf32> to vector<8x128xf32>
    %298 = arith.negf %297 : vector<8x128xf32>
    %299 = math.exp %298 : vector<8x128xf32>
    %cst_112 = arith.constant 1.000000e+00 : f32
    %300 = vector.broadcast %cst_112 : f32 to vector<8x128xf32>
    %301 = arith.addf %300, %299 : vector<8x128xf32>
    %302 = arith.divf %300, %301 : vector<8x128xf32>
    %303 = vector.extract_strided_slice %296 {offsets = [0, 128], sizes = [8, 128], strides = [1, 1]} : vector<8x512xf32> to vector<8x128xf32>
    %304 = arith.negf %303 : vector<8x128xf32>
    %305 = math.exp %304 : vector<8x128xf32>
    %cst_113 = arith.constant 1.000000e+00 : f32
    %306 = vector.broadcast %cst_113 : f32 to vector<8x128xf32>
    %307 = arith.addf %306, %305 : vector<8x128xf32>
    %308 = arith.divf %306, %307 : vector<8x128xf32>
    %309 = vector.extract_strided_slice %296 {offsets = [0, 256], sizes = [8, 128], strides = [1, 1]} : vector<8x512xf32> to vector<8x128xf32>
    %310 = math.tanh %309 : vector<8x128xf32>
    %311 = vector.extract_strided_slice %296 {offsets = [0, 384], sizes = [8, 128], strides = [1, 1]} : vector<8x512xf32> to vector<8x128xf32>
    %312 = arith.negf %311 : vector<8x128xf32>
    %313 = math.exp %312 : vector<8x128xf32>
    %cst_114 = arith.constant 1.000000e+00 : f32
    %314 = vector.broadcast %cst_114 : f32 to vector<8x128xf32>
    %315 = arith.addf %314, %313 : vector<8x128xf32>
    %316 = arith.divf %314, %315 : vector<8x128xf32>
    %317 = arith.mulf %308, %261 : vector<8x128xf32>
    %318 = arith.mulf %302, %310 : vector<8x128xf32>
    %319 = arith.addf %317, %318 : vector<8x128xf32>
    %320 = math.tanh %319 : vector<8x128xf32>
    %321 = arith.mulf %316, %320 : vector<8x128xf32>
    %c0_i32_115 = arith.constant 0 : i32
    %322 = arith.cmpi sgt, %c3_i32, %c0_i32_115 : i32
    %cst_116 = arith.constant 0.000000e+00 : f32
    %323 = vector.broadcast %cst_116 : f32 to vector<8x128xf32>
    %324 = arith.select %322, %321, %323 : vector<8x128xf32>
    %cst_117 = arith.constant 0.000000e+00 : f32
    %325 = vector.broadcast %cst_117 : f32 to vector<8x128xf32>
    %326 = arith.select %322, %319, %325 : vector<8x128xf32>
    %c4_i32 = arith.constant 4 : i32
    %327 = tpu.concatenate %292, %324 in 1 : vector<8x128xf32>, vector<8x128xf32> -> vector<8x256xf32>
    %cst_118 = arith.constant dense<0.000000e+00> : vector<8x512xf32>
    %328 = tpu.matmul %327, %64, %cst_118 {dimension_numbers = #tpu.dot_dimension_numbers<[1], [0], [0], [1], [0, 0, 1, 1], [], []>} : vector<8x256xf32>, vector<256x512xf32>, vector<8x512xf32> -> vector<8x512xf32>
    %329 = vector.broadcast %65 : vector<1x512xf32> to vector<8x512xf32>
    %330 = arith.addf %328, %329 : vector<8x512xf32>
    %331 = vector.extract_strided_slice %330 {offsets = [0, 0], sizes = [8, 128], strides = [1, 1]} : vector<8x512xf32> to vector<8x128xf32>
    %332 = arith.negf %331 : vector<8x128xf32>
    %333 = math.exp %332 : vector<8x128xf32>
    %cst_119 = arith.constant 1.000000e+00 : f32
    %334 = vector.broadcast %cst_119 : f32 to vector<8x128xf32>
    %335 = arith.addf %334, %333 : vector<8x128xf32>
    %336 = arith.divf %334, %335 : vector<8x128xf32>
    %337 = vector.extract_strided_slice %330 {offsets = [0, 128], sizes = [8, 128], strides = [1, 1]} : vector<8x512xf32> to vector<8x128xf32>
    %338 = arith.negf %337 : vector<8x128xf32>
    %339 = math.exp %338 : vector<8x128xf32>
    %cst_120 = arith.constant 1.000000e+00 : f32
    %340 = vector.broadcast %cst_120 : f32 to vector<8x128xf32>
    %341 = arith.addf %340, %339 : vector<8x128xf32>
    %342 = arith.divf %340, %341 : vector<8x128xf32>
    %343 = vector.extract_strided_slice %330 {offsets = [0, 256], sizes = [8, 128], strides = [1, 1]} : vector<8x512xf32> to vector<8x128xf32>
    %344 = math.tanh %343 : vector<8x128xf32>
    %345 = vector.extract_strided_slice %330 {offsets = [0, 384], sizes = [8, 128], strides = [1, 1]} : vector<8x512xf32> to vector<8x128xf32>
    %346 = arith.negf %345 : vector<8x128xf32>
    %347 = math.exp %346 : vector<8x128xf32>
    %cst_121 = arith.constant 1.000000e+00 : f32
    %348 = vector.broadcast %cst_121 : f32 to vector<8x128xf32>
    %349 = arith.addf %348, %347 : vector<8x128xf32>
    %350 = arith.divf %348, %349 : vector<8x128xf32>
    %351 = arith.mulf %342, %326 : vector<8x128xf32>
    %352 = arith.mulf %336, %344 : vector<8x128xf32>
    %353 = arith.addf %351, %352 : vector<8x128xf32>
    %354 = math.tanh %353 : vector<8x128xf32>
    %355 = arith.mulf %350, %354 : vector<8x128xf32>
    %c0_122 = arith.constant 0 : index
    %c0_123 = arith.constant 0 : index
    %356 = vector.load %arg13[%c0_122, %c0_123] : memref<128x64xf32, #tpu.memory_space<vmem>>, vector<128x64xf32>
    %cst_124 = arith.constant dense<0.000000e+00> : vector<8x64xf32>
    %357 = tpu.matmul %355, %356, %cst_124 {dimension_numbers = #tpu.dot_dimension_numbers<[1], [0], [0], [1], [0, 0, 1, 1], [], []>} : vector<8x128xf32>, vector<128x64xf32>, vector<8x64xf32> -> vector<8x64xf32>
    %c0_125 = arith.constant 0 : index
    %c0_126 = arith.constant 0 : index
    %358 = vector.load %arg14[%c0_125, %c0_126] : memref<1x64xf32, #tpu.memory_space<vmem>>, vector<1x64xf32>
    %359 = vector.broadcast %358 : vector<1x64xf32> to vector<8x64xf32>
    %360 = arith.addf %357, %359 : vector<8x64xf32>
    %cst_127 = arith.constant 0.000000e+00 : f32
    %361 = vector.broadcast %cst_127 : f32 to vector<8x64xf32>
    %362 = arith.maximumf %360, %361 : vector<8x64xf32>
    %c0_128 = arith.constant 0 : index
    %c0_129 = arith.constant 0 : index
    %363 = vector.load %arg15[%c0_128, %c0_129] : memref<64x32xf32, #tpu.memory_space<vmem>>, vector<64x32xf32>
    %cst_130 = arith.constant dense<0.000000e+00> : vector<8x32xf32>
    %364 = tpu.matmul %362, %363, %cst_130 {dimension_numbers = #tpu.dot_dimension_numbers<[1], [0], [0], [1], [0, 0, 1, 1], [], []>} : vector<8x64xf32>, vector<64x32xf32>, vector<8x32xf32> -> vector<8x32xf32>
    %c0_131 = arith.constant 0 : index
    %c0_132 = arith.constant 0 : index
    %365 = vector.load %arg16[%c0_131, %c0_132] : memref<1x32xf32, #tpu.memory_space<vmem>>, vector<1x32xf32>
    %366 = vector.broadcast %365 : vector<1x32xf32> to vector<8x32xf32>
    %367 = arith.addf %364, %366 : vector<8x32xf32>
    %cst_133 = arith.constant 0.000000e+00 : f32
    %368 = vector.broadcast %cst_133 : f32 to vector<8x32xf32>
    %369 = arith.maximumf %367, %368 : vector<8x32xf32>
    %c0_134 = arith.constant 0 : index
    %c0_135 = arith.constant 0 : index
    %370 = vector.load %arg17[%c0_134, %c0_135] : memref<32x1xf32, #tpu.memory_space<vmem>>, vector<32x1xf32>
    %cst_136 = arith.constant dense<0.000000e+00> : vector<8x1xf32>
    %371 = tpu.matmul %369, %370, %cst_136 {dimension_numbers = #tpu.dot_dimension_numbers<[1], [0], [0], [1], [0, 0, 1, 1], [], []>} : vector<8x32xf32>, vector<32x1xf32>, vector<8x1xf32> -> vector<8x1xf32>
    %c0_137 = arith.constant 0 : index
    %c0_138 = arith.constant 0 : index
    %372 = vector.load %arg18[%c0_137, %c0_138] : memref<1x1xf32, #tpu.memory_space<vmem>>, vector<1x1xf32>
    %373 = vector.broadcast %372 : vector<1x1xf32> to vector<8x1xf32>
    %374 = arith.addf %371, %373 : vector<8x1xf32>
    %375 = arith.negf %374 : vector<8x1xf32>
    %376 = math.exp %375 : vector<8x1xf32>
    %cst_139 = arith.constant 1.000000e+00 : f32
    %377 = vector.broadcast %cst_139 : f32 to vector<8x1xf32>
    %378 = arith.addf %377, %376 : vector<8x1xf32>
    %379 = arith.divf %377, %378 : vector<8x1xf32>
    %c0_140 = arith.constant 0 : index
    %c0_141 = arith.constant 0 : index
    %380 = vector.load %arg19[%c0_140, %c0_141] : memref<8x1xf32, #tpu.memory_space<vmem>>, vector<8x1xf32>
    tpu.vector_store %arg19[%c0_140, %c0_141], %379 {strides = array<i32>} : memref<8x1xf32, #tpu.memory_space<vmem>>, vector<8x1xf32>,
    return
  }
  func.func @transform_0(%arg0: i32) -> (i32, i32, i32) {
    %c0_i32 = arith.constant 0 : i32
    %c0_i32_0 = arith.constant 0 : i32
    %c0_i32_1 = arith.constant 0 : i32
    return %c0_i32, %arg0, %c0_i32_0 : i32, i32, i32
  }
  func.func @transform_1(%arg0: i32) -> (i32, i32) {
    %c0_i32 = arith.constant 0 : i32
    %c0_i32_0 = arith.constant 0 : i32
    %c0_i32_1 = arith.constant 0 : i32
    return %c0_i32, %c0_i32_0 : i32, i32
  }
  func.func @transform_2(%arg0: i32) -> (i32, i32) {
    %c0_i32 = arith.constant 0 : i32
    %c0_i32_0 = arith.constant 0 : i32
    %c0_i32_1 = arith.constant 0 : i32
    return %c0_i32, %c0_i32_0 : i32, i32
  }
  func.func @transform_3(%arg0: i32) -> (i32, i32) {
    %c0_i32 = arith.constant 0 : i32
    %c0_i32_0 = arith.constant 0 : i32
    %c0_i32_1 = arith.constant 0 : i32
    return %c0_i32, %c0_i32_0 : i32, i32
  }
  func.func @transform_4(%arg0: i32) -> (i32, i32) {
    %c0_i32 = arith.constant 0 : i32
    %c0_i32_0 = arith.constant 0 : i32
    %c0_i32_1 = arith.constant 0 : i32
    return %c0_i32, %c0_i32_0 : i32, i32
  }
  func.func @transform_5(%arg0: i32) -> (i32, i32) {
    %c0_i32 = arith.constant 0 : i32
    %c0_i32_0 = arith.constant 0 : i32
    %c0_i32_1 = arith.constant 0 : i32
    return %c0_i32, %c0_i32_0 : i32, i32
  }
  func.func @transform_6(%arg0: i32) -> (i32, i32) {
    %c0_i32 = arith.constant 0 : i32
    %c0_i32_0 = arith.constant 0 : i32
    %c0_i32_1 = arith.constant 0 : i32
    return %c0_i32, %c0_i32_0 : i32, i32
  }
  func.func @transform_7(%arg0: i32) -> (i32, i32) {
    %c0_i32 = arith.constant 0 : i32
    %c0_i32_0 = arith.constant 0 : i32
    %c0_i32_1 = arith.constant 0 : i32
    return %c0_i32, %c0_i32_0 : i32, i32
  }
  func.func @transform_8(%arg0: i32) -> (i32, i32) {
    %c0_i32 = arith.constant 0 : i32
    %c0_i32_0 = arith.constant 0 : i32
    %c0_i32_1 = arith.constant 0 : i32
    return %c0_i32, %c0_i32_0 : i32, i32
  }
  func.func @transform_9(%arg0: i32) -> (i32, i32) {
    %c0_i32 = arith.constant 0 : i32
    %c0_i32_0 = arith.constant 0 : i32
    %c0_i32_1 = arith.constant 0 : i32
    return %c0_i32, %c0_i32_0 : i32, i32
  }
  func.func @transform_10(%arg0: i32) -> (i32, i32) {
    %c0_i32 = arith.constant 0 : i32
    %c0_i32_0 = arith.constant 0 : i32
    %c0_i32_1 = arith.constant 0 : i32
    return %c0_i32, %c0_i32_0 : i32, i32
  }
  func.func @transform_11(%arg0: i32) -> (i32, i32) {
    %c0_i32 = arith.constant 0 : i32
    %c0_i32_0 = arith.constant 0 : i32
    %c0_i32_1 = arith.constant 0 : i32
    return %c0_i32, %c0_i32_0 : i32, i32
  }
  func.func @transform_12(%arg0: i32) -> (i32, i32) {
    %c0_i32 = arith.constant 0 : i32
    %c0_i32_0 = arith.constant 0 : i32
    %c0_i32_1 = arith.constant 0 : i32
    return %c0_i32, %c0_i32_0 : i32, i32
  }
  func.func @transform_13(%arg0: i32) -> (i32, i32) {
    %c0_i32 = arith.constant 0 : i32
    %c0_i32_0 = arith.constant 0 : i32
    %c0_i32_1 = arith.constant 0 : i32
    return %c0_i32, %c0_i32_0 : i32, i32
  }
  func.func @transform_14(%arg0: i32) -> (i32, i32) {
    %c0_i32 = arith.constant 0 : i32
    %c0_i32_0 = arith.constant 0 : i32
    %c0_i32_1 = arith.constant 0 : i32
    return %c0_i32, %c0_i32_0 : i32, i32
  }
  func.func @transform_15(%arg0: i32) -> (i32, i32) {
    %c0_i32 = arith.constant 0 : i32
    %c0_i32_0 = arith.constant 0 : i32
    %c0_i32_1 = arith.constant 0 : i32
    return %c0_i32, %c0_i32_0 : i32, i32
  }
  func.func @transform_16(%arg0: i32) -> (i32, i32) {
    %c0_i32 = arith.constant 0 : i32
    %c0_i32_0 = arith.constant 0 : i32
    %c0_i32_1 = arith.constant 0 : i32
    return %c0_i32, %c0_i32_0 : i32, i32
  }
  func.func @transform_17(%arg0: i32) -> (i32, i32) {
    %c0_i32 = arith.constant 0 : i32
    %c0_i32_0 = arith.constant 0 : i32
    %c0_i32_1 = arith.constant 0 : i32
    return %c0_i32, %c0_i32_0 : i32, i32
  }
  func.func @transform_18(%arg0: i32) -> (i32, i32) {
    %c0_i32 = arith.constant 0 : i32
    %c0_i32_0 = arith.constant 0 : i32
    return %arg0, %c0_i32 : i32, i32
  }
}

</mosaic_0001>

<bundles_post_ra>
// kernel: cnn_lstm_forward.1
= control target key start
LH: loop header
LB: loop body
LE: loop exit
PB: predicated region body
PF: predicated region fallthrough
CT: control target
= control target key end

     0   :  { %vm77_vm0 = vcmask 48128   ;;  %v3767_v3 = vmov 0.0   ;;  %s3768_s20 = smov 6   ;;  %vm317_vm1 = vcmask 1041408   ;;  %s3769_s30 = smov 12   ;;  %vm158_vm2 = vcmask 97328   ;;  %s7334_s0 = inlined_call_operand.vmem [shape: f32[16,8,6], index: 0, kind: input, shape index: {}]   ;;  %s7335_s1 = inlined_call_operand.vmem [shape: f32[18,64], index: 1, kind: input, shape index: {}]   ;;  %s7336_s3 = inlined_call_operand.vmem [shape: f32[192,128], index: 3, kind: input, shape index: {}]   ;;  %s7337_s2 = inlined_call_operand.vmem [shape: f32[1,64], index: 2, kind: input, shape index: {}]   ;;  %s7338_s5 = inlined_call_operand.vmem [shape: f32[384,64], index: 5, kind: input, shape index: {}]   ;;  %s7339_s4 = inlined_call_operand.vmem [shape: f32[1,128], index: 4, kind: input, shape index: {}]   ;;  %s7340_s7 = inlined_call_operand.vmem [shape: f32[64,512], index: 7, kind: input, shape index: {}]   ;;  %s7341_s8 = inlined_call_operand.vmem [shape: f32[128,512], index: 8, kind: input, shape index: {}]   ;;  %s7342_s6 = inlined_call_operand.vmem [shape: f32[1,64], index: 6, kind: input, shape index: {}]   ;;  %s7343_s10 = inlined_call_operand.vmem [shape: f32[256,512], index: 10, kind: input, shape index: {}]   ;;  %s7344_s9 = inlined_call_operand.vmem [shape: f32[1,512], index: 9, kind: input, shape index: {}]   ;;  %s7345_s11 = inlined_call_operand.vmem [shape: f32[1,512], index: 11, kind: input, shape index: {}]   ;;  %s7346_s12 = inlined_call_operand.vmem [shape: f32[128,64], index: 12, kind: input, shape index: {}]   ;;  %s7347_s14 = inlined_call_operand.vmem [shape: f32[64,32], index: 14, kind: input, shape index: {}]   ;;  %s7348_s13 = inlined_call_operand.vmem [shape: f32[1,64], index: 13, kind: input, shape index: {}]   ;;  %s7349_s16 = inlined_call_operand.vmem [shape: f32[32,1], index: 16, kind: input, shape index: {}]   ;;  %s7350_s17 = inlined_call_operand.<no memory space> [shape: f32[1,1], index: 17, kind: input, shape index: {}]   ;;  %s7351_s15 = inlined_call_operand.vmem [shape: f32[1,32], index: 15, kind: input, shape index: {}]   ;;  %s7352_s18 = inlined_call_operand.vmem [shape: f32[8,1], index: 18, kind: output, shape index: {}]  }
   0x1   :  { %7576 = sst [smem:[#allocation149_spill]] %s7334_s0  ;;  %751 = vst [vmem:[#allocation2 + $0x70] sm:$0xff] %v3767_v3  ;;  %621 = vmatprep.subr.mxu1 %v3767_v3  ;;  %vm223_vm3 = vcmask 146528   ;;  %vm268_vm4 = vcmask 146432   ;;  %vm490_vm5 = vcmask 523264   ;;  %s3770_s25 = smov 64  }
   0x2   :  { %7577 = sst [smem:[#allocation150_spill]] %s7335_s1  ;;  %549 = vst.msk [vmem:[#allocation2 + $0xc8] sm:$0xff] %vm490_vm5, %v3767_v3  ;;  %vm531_vm6 = vcmask 1048064   ;;  %vm3771_vm7 = vmmov 0   ;;  %vm3033_vm8 = vcmask 261120   ;;  %vm3113_vm9 = vcmask 7168  }
   0x3   :  { %7578 = sst [smem:[#allocation151_spill]] %s7336_s3 }
   0x4   :  { %s7579_s29 = sld [smem:[#allocation149_spill]] }
   0x5   :  { %s7580_s23 = sld [smem:[#allocation150_spill]] }
   0x6   :  { %s7581_s28 = sld [smem:[#allocation151_spill]] }
   0xa   :  { %v3870_v0 = vld [vmem:[%s7579_s29] sm:$0xff]  ;;  %v62_v1 = vld [vmem:[%s7579_s29 + $0x8] sm:$0xff]  ;;  %v63_v2 = vld [vmem:[%s7579_s29 + $0x10] sm:$0xff] }
   0xb   :  { %110 = vrot.lane.b32.xlu0 %v3870_v0, %s3768_s20  ;;  %112 = vrot.lane.b32.xlu1 %v62_v1, %s3768_s20  ;;  %v64_v4 = vld [vmem:[%s7579_s29 + $0x18] sm:$0xff]  ;;  %v65_v5 = vld [vmem:[%s7579_s29 + $0x20] sm:$0xff]  ;;  %78 = vst.msk [vmem:[#allocation2 + $0x30] sm:$0xff] %vm77_vm0, %v3870_v0  ;;  %79 = vst.msk [vmem:[#allocation2 + $0x48] sm:$0xff] %vm77_vm0, %v62_v1 }
   0xc   :  { %80 = vst.msk [vmem:[#allocation2 + $0x60] sm:$0xff] %vm77_vm0, %v63_v2  ;;  %v66_v6 = vld [vmem:[%s7579_s29 + $0x28] sm:$0xff]  ;;  %v67_v7 = vld [vmem:[%s7579_s29 + $0x30] sm:$0xff]  ;;  %v68_v8 = vld [vmem:[%s7579_s29 + $0x38] sm:$0xff] }
   0xd   :  { %81 = vst.msk [vmem:[#allocation2 + $0x78] sm:$0xff] %vm77_vm0, %v64_v4  ;;  %82 = vst.msk [vmem:[#allocation2 + $0x90] sm:$0xff] %vm77_vm0, %v65_v5  ;;  %v69_v9 = vld [vmem:[%s7579_s29 + $0x40] sm:$0xff]  ;;  %v70_v10 = vld [vmem:[%s7579_s29 + $0x48] sm:$0xff] }
   0xe   :  { %v71_v11 = vld [vmem:[%s7579_s29 + $0x50] sm:$0xff]  ;;  %83 = vst.msk [vmem:[#allocation2 + $0xa8] sm:$0xff] %vm77_vm0, %v66_v6  ;;  %84 = vst.msk [vmem:[#allocation2 + $0xc0] sm:$0xff] %vm77_vm0, %v67_v7  ;;  %v72_v12 = vld [vmem:[%s7579_s29 + $0x58] sm:$0xff] }
   0xf   :  { %85 = vst.msk [vmem:[#allocation2 + $0xd8] sm:$0xff] %vm77_vm0, %v68_v8  ;;  %v73_v13 = vld [vmem:[%s7579_s29 + $0x60] sm:$0xff]  ;;  %v74_v14 = vld [vmem:[%s7579_s29 + $0x68] sm:$0xff]  ;;  %86 = vst.msk [vmem:[#allocation2 + $0xf0] sm:$0xff] %vm77_vm0, %v69_v9  ;;  %177 = vrot.lane.b32.xlu0 %v62_v1, %s3769_s30  ;;  %179 = vrot.lane.b32.xlu1 %v63_v2, %s3769_s30 }
  0x10   :  { %87 = vst.msk [vmem:[#allocation2 + $0x108] sm:$0xff] %vm77_vm0, %v70_v10  ;;  %88 = vst.msk [vmem:[#allocation2 + $0x120] sm:$0xff] %vm77_vm0, %v71_v11  ;;  %v75_v15 = vld [vmem:[%s7579_s29 + $0x70] sm:$0xff]  ;;  %v76_v16 = vld [vmem:[%s7579_s29 + $0x78] sm:$0xff] }
  0x11   :  { %89 = vst.msk [vmem:[#allocation2 + $0x138] sm:$0xff] %vm77_vm0, %v72_v12  ;;  %90 = vst.msk [vmem:[#allocation2 + $0x150] sm:$0xff] %vm77_vm0, %v73_v13  ;;  %v260_v17 = vld [vmem:[%s7580_s23 + $0x10] sm:$0x3]  ;;  %v259_v18 = vld [vmem:[%s7580_s23 + $0x8] sm:$0xff] }
  0x12   :  { %91 = vst.msk [vmem:[#allocation2 + $0x168] sm:$0xff] %vm77_vm0, %v74_v14  ;;  %92 = vst.msk [vmem:[#allocation2 + $0x180] sm:$0xff] %vm77_vm0, %v75_v15  ;;  %3302 = vmatprep.subr.msk.mxu0 %vm317_vm1, %v260_v17  ;;  %v258_v19 = vld [vmem:[%s7580_s23] sm:$0xff] }
  0x13   :  { %3303 = vmatpush3.msk.msra.mxu0 %vm317_vm1, %v260_v17  ;;  %114 = vrot.lane.b32.xlu0 %v63_v2, %s3768_s20  ;;  %v569_v17 = vld [vmem:[%s7581_s28 + $0x18] sm:$0xff] }
  0x14   :  { %116 = vrot.lane.b32.xlu1 %v64_v4, %s3768_s20  ;;  %3304 = vmatprep.subr.mxu0 %v259_v18 }
  0x15   :  { %3305 = vmatpush3.msra.mxu0 %v259_v18  ;;  %v568_v18 = vld [vmem:[%s7581_s28 + $0x10] sm:$0xff] }
  0x16   :  { %3306 = vmatprep.subr.mxu0 %v258_v19 }
  0x17   :  { %181 = vrot.lane.b32.xlu0 %v64_v4, %s3769_s30  ;;  %3307 = vmatpush3.msra.mxu0 %v258_v19  ;;  %v567_v19 = vld [vmem:[%s7581_s28 + $0x8] sm:$0xff] }
  0x18   :  { %183 = vrot.lane.b32.xlu1 %v65_v5, %s3769_s30 }
  0x1b   :  { %118 = vrot.lane.b32.xlu0 %v65_v5, %s3768_s20  ;;  %v581_v5 = vld [vmem:[%s7581_s28 + $0x78] sm:$0xff] }
  0x1c   :  { %120 = vrot.lane.b32.xlu1 %v66_v6, %s3768_s20  ;;  %622 = vmatpush1.msra.mxu1 %v581_v5 }
  0x1d   :  { %623 = vmatprep.subr.mxu1 %v3767_v3 }
  0x1f   :  { %185 = vrot.lane.b32.xlu0 %v66_v6, %s3769_s30  ;;  %v580_v6 = vld [vmem:[%s7581_s28 + $0x70] sm:$0xff] }
  0x20   :  { %187 = vrot.lane.b32.xlu1 %v67_v7, %s3769_s30  ;;  %624 = vmatpush1.msra.mxu1 %v580_v6 }
  0x21   :  { %625 = vmatprep.subr.mxu1 %v3767_v3 }
  0x23   :  { %122 = vrot.lane.b32.xlu0 %v67_v7, %s3768_s20  ;;  %v579_v7 = vld [vmem:[%s7581_s28 + $0x68] sm:$0xff] }
  0x24   :  { %124 = vrot.lane.b32.xlu1 %v68_v8, %s3768_s20  ;;  %626 = vmatpush1.msra.mxu1 %v579_v7 }
  0x25   :  { %627 = vmatprep.subr.mxu1 %v3767_v3 }
  0x27   :  { %189 = vrot.lane.b32.xlu0 %v68_v8, %s3769_s30  ;;  %v578_v8 = vld [vmem:[%s7581_s28 + $0x60] sm:$0xff] }
  0x28   :  { %191 = vrot.lane.b32.xlu1 %v69_v9, %s3769_s30  ;;  %628 = vmatpush1.msra.mxu1 %v578_v8 }
  0x29   :  { %629 = vmatprep.subr.mxu1 %v3767_v3 }
  0x2b   :  { %126 = vrot.lane.b32.xlu0 %v69_v9, %s3768_s20  ;;  %v577_v9 = vld [vmem:[%s7581_s28 + $0x58] sm:$0xff] }
  0x2c   :  { %128 = vrot.lane.b32.xlu1 %v70_v10, %s3768_s20  ;;  %630 = vmatpush1.msra.mxu1 %v577_v9 }
  0x2d   :  { %631 = vmatprep.subr.mxu1 %v3767_v3 }
  0x2f   :  { %193 = vrot.lane.b32.xlu0 %v70_v10, %s3769_s30  ;;  %v576_v10 = vld [vmem:[%s7581_s28 + $0x50] sm:$0xff] }
  0x30   :  { %195 = vrot.lane.b32.xlu1 %v71_v11, %s3769_s30  ;;  %632 = vmatpush1.msra.mxu1 %v576_v10 }
  0x31   :  { %633 = vmatprep.subr.mxu1 %v3767_v3 }
  0x33   :  { %130 = vrot.lane.b32.xlu0 %v71_v11, %s3768_s20  ;;  %v575_v11 = vld [vmem:[%s7581_s28 + $0x48] sm:$0xff] }
  0x34   :  { %132 = vrot.lane.b32.xlu1 %v72_v12, %s3768_s20  ;;  %634 = vmatpush1.msra.mxu1 %v575_v11 }
  0x35   :  { %635 = vmatprep.subr.mxu1 %v3767_v3 }
  0x37   :  { %197 = vrot.lane.b32.xlu0 %v72_v12, %s3769_s30  ;;  %v574_v12 = vld [vmem:[%s7581_s28 + $0x40] sm:$0xff] }
  0x38   :  { %199 = vrot.lane.b32.xlu1 %v73_v13, %s3769_s30  ;;  %636 = vmatpush1.msra.mxu1 %v574_v12 }
  0x39   :  { %637 = vmatprep.subr.mxu1 %v3767_v3 }
  0x3b   :  { %134 = vrot.lane.b32.xlu0 %v73_v13, %s3768_s20  ;;  %v573_v13 = vld [vmem:[%s7581_s28 + $0x38] sm:$0xff] }
  0x3c   :  { %136 = vrot.lane.b32.xlu1 %v74_v14, %s3768_s20  ;;  %638 = vmatpush1.msra.mxu1 %v573_v13 }
  0x3d   :  { %639 = vmatprep.subr.mxu1 %v3767_v3 }
  0x3f   :  { %201 = vrot.lane.b32.xlu0 %v74_v14, %s3769_s30  ;;  %v572_v14 = vld [vmem:[%s7581_s28 + $0x30] sm:$0xff] }
  0x40   :  { %203 = vrot.lane.b32.xlu1 %v75_v15, %s3769_s30  ;;  %640 = vmatpush1.msra.mxu1 %v572_v14 }
  0x41   :  { %641 = vmatprep.subr.mxu1 %v3767_v3 }
  0x43   :  { %138 = vrot.lane.b32.xlu0 %v75_v15, %s3768_s20  ;;  %v571_v15 = vld [vmem:[%s7581_s28 + $0x28] sm:$0xff] }
  0x44   :  { %140 = vrot.lane.b32.xlu1 %v76_v16, %s3768_s20  ;;  %642 = vmatpush1.msra.mxu1 %v571_v15 }
  0x45   :  { %643 = vmatprep.subr.mxu1 %v3767_v3 }
  0x47   :  { %205 = vrot.lane.b32.xlu0 %v76_v16, %s3769_s30  ;;  %v570_v16 = vld [vmem:[%s7581_s28 + $0x20] sm:$0xff] }
  0x48   :  { %644 = vmatpush1.msra.mxu1 %v570_v16 }
  0x49   :  { %645 = vmatprep.subr.mxu1 %v3767_v3 }
  0x4a   :  { %646 = vmatpush1.msra.mxu1 %v569_v17 }
  0x4b   :  { %647 = vmatprep.subr.mxu1 %v3767_v3 }
  0x4c   :  { %648 = vmatpush1.msra.mxu1 %v568_v18 }
  0x4d   :  { %649 = vmatprep.subr.mxu1 %v3767_v3 }
  0x4e   :  { %650 = vmatpush1.msra.mxu1 %v567_v19 }
  0x4f   :  { %651 = vmatprep.subr.mxu1 %v3767_v3 }
  0x7d   :  { %v111_v20 = vpop.permute.xlu0 %110  ;;  %v113_v21 = vpop.permute.xlu1 %112 }
  0x7e   :  { %159 = vst.msk [vmem:[#allocation2 + $0x18] sm:$0xff] %vm158_vm2, %v111_v20  ;;  %160 = vst.msk [vmem:[#allocation2 + $0x30] sm:$0xff] %vm158_vm2, %v113_v21  ;;  %v566_v20 = vld [vmem:[%s7581_s28] sm:$0xff]  ;;  %v589_v21 = vld [vmem:[%s7581_s28 + $0xb8] sm:$0xff] }
  0x7f   :  { %652 = vmatpush1.msra.mxu1 %v566_v20 }
  0x80   :  { %669 = vmatprep.subr.mxu1 %v3767_v3 }
  0x81   :  { %v178_v22 = vpop.permute.xlu0 %177  ;;  %v180_v23 = vpop.permute.xlu1 %179  ;;  %670 = vmatpush2.msra.mxu1 %v589_v21 }
  0x82   :  { %225 = vst.msk [vmem:[#allocation2 + $0x18] sm:$0xff] %vm223_vm3, %v178_v22  ;;  %226 = vst.msk [vmem:[#allocation2 + $0x30] sm:$0xff] %vm223_vm3, %v180_v23  ;;  %v588_v22 = vld [vmem:[%s7581_s28 + $0xb0] sm:$0xff]  ;;  %671 = vmatprep.subr.mxu1 %v3767_v3  ;;  %v587_v23 = vld [vmem:[%s7581_s28 + $0xa8] sm:$0xff] }
  0x83   :  { %240 = vst.msk [vmem:[#allocation2 + $0x18] sm:$0xff] %vm77_vm0, %v3767_v3  ;;  %672 = vmatpush2.msra.mxu1 %v588_v22 }
  0x84   :  { %673 = vmatprep.subr.mxu1 %v3767_v3 }
  0x85   :  { %v115_v24 = vpop.permute.xlu0 %114  ;;  %674 = vmatpush2.msra.mxu1 %v587_v23 }
  0x86   :  { %v117_v25 = vpop.permute.xlu1 %116  ;;  %161 = vst.msk [vmem:[#allocation2 + $0x48] sm:$0xff] %vm158_vm2, %v115_v24  ;;  %675 = vmatprep.subr.mxu1 %v3767_v3  ;;  %v586_v24 = vld [vmem:[%s7581_s28 + $0xa0] sm:$0xff] }
  0x87   :  { %162 = vst.msk [vmem:[#allocation2 + $0x60] sm:$0xff] %vm158_vm2, %v117_v25  ;;  %676 = vmatpush2.msra.mxu1 %v586_v24  ;;  %v585_v25 = vld [vmem:[%s7581_s28 + $0x98] sm:$0xff] }
  0x88   :  { %677 = vmatprep.subr.mxu1 %v3767_v3 }
  0x89   :  { %v182_v26 = vpop.permute.xlu0 %181  ;;  %v243_v28 = vld [vmem:[#allocation2 + $0x30] sm:$0xff]  ;;  %678 = vmatpush2.msra.mxu1 %v585_v25 }
  0x8a   :  { %v184_v27 = vpop.permute.xlu1 %183  ;;  %227 = vst.msk [vmem:[#allocation2 + $0x48] sm:$0xff] %vm223_vm3, %v182_v26  ;;  %v242_v29 = vld [vmem:[#allocation2 + $0x18] sm:$0xff]  ;;  %v584_v26 = vld [vmem:[%s7581_s28 + $0x90] sm:$0xff]  ;;  %679 = vmatprep.subr.mxu1 %v3767_v3 }
  0x8b   :  { %228 = vst.msk [vmem:[#allocation2 + $0x60] sm:$0xff] %vm223_vm3, %v184_v27  ;;  %3308 = vmatprep.mubr.msk.f32.mxu0 %vm268_vm4, %v242_v29  ;;  %v4118_v27 = vld [vmem:[%s7337_s2] ss:$0 sm:$0xff]  ;;  %680 = vmatpush2.msra.mxu1 %v584_v26 }
  0x8c   :  { %3309 = vmatmul.mubr.msk.f32.vlgmr.msra.gmra.mxu0 %vm268_vm4, %v243_v28  ;;  %v583_v28 = vld [vmem:[%s7581_s28 + $0x88] sm:$0xff]  ;;  %681 = vmatprep.subr.mxu1 %v3767_v3 }
  0x8d   :  { %v119_v30 = vpop.permute.xlu0 %118  ;;  %682 = vmatpush2.msra.mxu1 %v583_v28 }
  0x8e   :  { %v121_v31 = vpop.permute.xlu1 %120  ;;  %163 = vst.msk [vmem:[#allocation2 + $0x78] sm:$0xff] %vm158_vm2, %v119_v30  ;;  %683 = vmatprep.subr.mxu1 %v3767_v3 }
  0x8f   :  { %164 = vst.msk [vmem:[#allocation2 + $0x90] sm:$0xff] %vm158_vm2, %v121_v31 }
  0x91   :  { %v186_v32 = vpop.permute.xlu0 %185  ;;  %v244_v34 = vld [vmem:[#allocation2 + $0x48] sm:$0xff] }
  0x92   :  { %v188_v33 = vpop.permute.xlu1 %187  ;;  %v245_v35 = vld [vmem:[#allocation2 + $0x60] sm:$0xff]  ;;  %229 = vst.msk [vmem:[#allocation2 + $0x78] sm:$0xff] %vm223_vm3, %v186_v32  ;;  %3311 = vmatprep.mubr.msk.f32.mxu0 %vm268_vm4, %v244_v34 }
  0x93   :  { %230 = vst.msk [vmem:[#allocation2 + $0x90] sm:$0xff] %vm223_vm3, %v188_v33  ;;  %3312 = vmatmul.mubr.msk.f32.gmra.mxu0 %vm268_vm4, %v245_v35  ;;  %v582_v34 = vld [vmem:[%s7581_s28 + $0x80] sm:$0xff] }
  0x94   :  { %684 = vmatpush2.msra.mxu1 %v582_v34 }
  0x95   :  { %v123_v36 = vpop.permute.xlu0 %122 }
  0x96   :  { %v125_v37 = vpop.permute.xlu1 %124  ;;  %165 = vst.msk [vmem:[#allocation2 + $0xa8] sm:$0xff] %vm158_vm2, %v123_v36 }
  0x97   :  { %166 = vst.msk [vmem:[#allocation2 + $0xc0] sm:$0xff] %vm158_vm2, %v125_v37 }
  0x99   :  { %v190_v38 = vpop.permute.xlu0 %189  ;;  %v246_v40 = vld [vmem:[#allocation2 + $0x78] sm:$0xff] }
  0x9a   :  { %v192_v39 = vpop.permute.xlu1 %191  ;;  %v247_v41 = vld [vmem:[#allocation2 + $0x90] sm:$0xff]  ;;  %231 = vst.msk [vmem:[#allocation2 + $0xa8] sm:$0xff] %vm223_vm3, %v190_v38  ;;  %3314 = vmatprep.mubr.msk.f32.mxu0 %vm268_vm4, %v246_v40 }
  0x9b   :  { %232 = vst.msk [vmem:[#allocation2 + $0xc0] sm:$0xff] %vm223_vm3, %v192_v39  ;;  %3315 = vmatmul.mubr.msk.f32.gmra.mxu0 %vm268_vm4, %v247_v41 }
  0x9d   :  { %v127_v42 = vpop.permute.xlu0 %126 }
  0x9e   :  { %v129_v43 = vpop.permute.xlu1 %128  ;;  %167 = vst.msk [vmem:[#allocation2 + $0xd8] sm:$0xff] %vm158_vm2, %v127_v42 }
  0x9f   :  { %168 = vst.msk [vmem:[#allocation2 + $0xf0] sm:$0xff] %vm158_vm2, %v129_v43 }
  0xa1   :  { %v194_v44 = vpop.permute.xlu0 %193  ;;  %v248_v46 = vld [vmem:[#allocation2 + $0xa8] sm:$0xff] }
  0xa2   :  { %v196_v45 = vpop.permute.xlu1 %195  ;;  %v249_v47 = vld [vmem:[#allocation2 + $0xc0] sm:$0xff]  ;;  %233 = vst.msk [vmem:[#allocation2 + $0xd8] sm:$0xff] %vm223_vm3, %v194_v44  ;;  %3317 = vmatprep.mubr.msk.f32.mxu0 %vm268_vm4, %v248_v46 }
  0xa3   :  { %234 = vst.msk [vmem:[#allocation2 + $0xf0] sm:$0xff] %vm223_vm3, %v196_v45  ;;  %3318 = vmatmul.mubr.msk.f32.gmra.mxu0 %vm268_vm4, %v249_v47 }
  0xa5   :  { %v131_v48 = vpop.permute.xlu0 %130 }
  0xa6   :  { %v133_v49 = vpop.permute.xlu1 %132  ;;  %169 = vst.msk [vmem:[#allocation2 + $0x108] sm:$0xff] %vm158_vm2, %v131_v48 }
  0xa7   :  { %170 = vst.msk [vmem:[#allocation2 + $0x120] sm:$0xff] %vm158_vm2, %v133_v49 }
  0xa9   :  { %v198_v50 = vpop.permute.xlu0 %197  ;;  %v250_v52 = vld [vmem:[#allocation2 + $0xd8] sm:$0xff] }
  0xaa   :  { %v200_v51 = vpop.permute.xlu1 %199  ;;  %v251_v53 = vld [vmem:[#allocation2 + $0xf0] sm:$0xff]  ;;  %235 = vst.msk [vmem:[#allocation2 + $0x108] sm:$0xff] %vm223_vm3, %v198_v50  ;;  %3320 = vmatprep.mubr.msk.f32.mxu0 %vm268_vm4, %v250_v52 }
  0xab   :  { %236 = vst.msk [vmem:[#allocation2 + $0x120] sm:$0xff] %vm223_vm3, %v200_v51  ;;  %3321 = vmatmul.mubr.msk.f32.gmra.mxu0 %vm268_vm4, %v251_v53 }
  0xad   :  { %v135_v54 = vpop.permute.xlu0 %134 }
  0xae   :  { %v137_v55 = vpop.permute.xlu1 %136  ;;  %171 = vst.msk [vmem:[#allocation2 + $0x138] sm:$0xff] %vm158_vm2, %v135_v54 }
  0xaf   :  { %172 = vst.msk [vmem:[#allocation2 + $0x150] sm:$0xff] %vm158_vm2, %v137_v55 }
  0xb1   :  { %v202_v56 = vpop.permute.xlu0 %201  ;;  %v252_v58 = vld [vmem:[#allocation2 + $0x108] sm:$0xff] }
  0xb2   :  { %v204_v57 = vpop.permute.xlu1 %203  ;;  %v253_v59 = vld [vmem:[#allocation2 + $0x120] sm:$0xff]  ;;  %237 = vst.msk [vmem:[#allocation2 + $0x138] sm:$0xff] %vm223_vm3, %v202_v56  ;;  %3323 = vmatprep.mubr.msk.f32.mxu0 %vm268_vm4, %v252_v58 }
  0xb3   :  { %238 = vst.msk [vmem:[#allocation2 + $0x150] sm:$0xff] %vm223_vm3, %v204_v57  ;;  %3324 = vmatmul.mubr.msk.f32.gmra.mxu0 %vm268_vm4, %v253_v59 }
  0xb5   :  { %v139_v60 = vpop.permute.xlu0 %138 }
  0xb6   :  { %v141_v61 = vpop.permute.xlu1 %140  ;;  %173 = vst.msk [vmem:[#allocation2 + $0x168] sm:$0xff] %vm158_vm2, %v139_v60 }
  0xb7   :  { %174 = vst.msk [vmem:[#allocation2 + $0x180] sm:$0xff] %vm158_vm2, %v141_v61 }
  0xb8   :  { %241 = vst.msk [vmem:[#allocation2 + $0x180] sm:$0xff] %vm223_vm3, %v3767_v3 }
  0xb9   :  { %v206_v62 = vpop.permute.xlu0 %205  ;;  %v254_v63 = vld [vmem:[#allocation2 + $0x138] sm:$0xff] }
  0xba   :  { %v255_v1 = vld [vmem:[#allocation2 + $0x150] sm:$0xff]  ;;  %239 = vst.msk [vmem:[#allocation2 + $0x168] sm:$0xff] %vm223_vm3, %v206_v62  ;;  %3326 = vmatprep.mubr.msk.f32.mxu0 %vm268_vm4, %v254_v63 }
  0xbb   :  { %3327 = vmatmul.mubr.msk.f32.gmra.mxu0 %vm268_vm4, %v255_v1 }
  0xbf   :  { %v257_v2 = vld [vmem:[#allocation2 + $0x180] sm:$0xff] }
  0xc1   :  { %v256_v4 = vld [vmem:[#allocation2 + $0x168] sm:$0xff] }
  0xc2   :  { %3329 = vmatprep.mubr.msk.f32.mxu0 %vm268_vm4, %v256_v4 }
  0xc3   :  { %3330 = vmatmul.mubr.msk.f32.gmra.mxu0 %vm268_vm4, %v257_v2 }
 0x14c   :  { %v3310_v29 = vpop.f32.mrf.mxu0 }
 0x14d   :  { %v393_v30 = vadd.f32 %v3310_v29, %v4118_v27 }
 0x14e   :  { %v387_v31 = vpop.f32.mrf.mxu0 }
 0x14f   :  { %v467_v32 = vmax.f32 %v393_v30, 0.0  ;;  %v388_v33 = vadd.f32 %v4118_v27, %v387_v31 }
 0x151   :  { %v466_v35 = vmax.f32 %v388_v33, 0.0 }
 0x153   :  { %v482_v36 = vmax.f32 %v466_v35, %v467_v32  ;;  %v3313_v37 = vpop.f32.mrf.mxu0 }
 0x154   :  { %v403_v38 = vadd.f32 %v3313_v37, %v4118_v27 }
 0x155   :  { %491 = vst.msk [vmem:[#allocation2 + $0x30] sm:$0xff] %vm490_vm5, %v482_v36  ;;  %v397_v39 = vpop.f32.mrf.mxu0  ;;  %507 = vrot.lane.b32.xlu1 %v482_v36, %s3770_s25 }
 0x156   :  { %v469_v40 = vmax.f32 %v403_v38, 0.0  ;;  %v398_v41 = vadd.f32 %v4118_v27, %v397_v39 }
 0x158   :  { %v468_v42 = vmax.f32 %v398_v41, 0.0 }
 0x15a   :  { %v483_v43 = vmax.f32 %v468_v42, %v469_v40 }
 0x15b   :  { %v3316_v44 = vpop.f32.mrf.mxu0 }
 0x15c   :  { %541 = vst.msk [vmem:[#allocation2 + $0x20] sm:$0xff] %vm490_vm5, %v483_v43  ;;  %492 = vst.msk [vmem:[#allocation2 + $0x48] sm:$0xff] %vm490_vm5, %v483_v43  ;;  %v413_v45 = vadd.f32 %v3316_v44, %v4118_v27  ;;  %509 = vrot.lane.b32.xlu0 %v483_v43, %s3770_s25  ;;  %v565_v43 = vld [vmem:[#allocation2 + $0xc8] sm:$0xff] }
 0x15d   :  { %v407_v46 = vpop.f32.mrf.mxu0 }
 0x15e   :  { %v471_v47 = vmax.f32 %v413_v45, 0.0  ;;  %v408_v48 = vadd.f32 %v4118_v27, %v407_v46 }
 0x160   :  { %v470_v49 = vmax.f32 %v408_v48, 0.0  ;;  %v779_v48 = vld [vmem:[%s7338_s5 + $0x78] sm:$0xff] }
 0x162   :  { %v484_v50 = vmax.f32 %v470_v49, %v471_v47  ;;  %v795_v47 = vld [vmem:[%s7338_s5 + $0xf8] sm:$0xff]  ;;  %v794_v49 = vld [vmem:[%s7338_s5 + $0xf0] sm:$0xff] }
 0x163   :  { %v3319_v51 = vpop.f32.mrf.mxu0  ;;  %v551_v52 = vld [vmem:[#allocation2 + $0x20] sm:$0xff]  ;;  %3207 = vmatprep.subr.mxu0 %v795_v47 }
 0x164   :  { %542 = vst.msk [vmem:[#allocation2 + $0x38] sm:$0xff] %vm490_vm5, %v484_v50  ;;  %493 = vst.msk [vmem:[#allocation2 + $0x60] sm:$0xff] %vm490_vm5, %v484_v50  ;;  %v423_v53 = vadd.f32 %v3319_v51, %v4118_v27  ;;  %511 = vrot.lane.b32.xlu1 %v484_v50, %s3770_s25  ;;  %3141 = vmatprep.mubr.msk.f32.mxu1 %vm490_vm5, %v551_v52  ;;  %v778_v50 = vld [vmem:[%s7338_s5 + $0x70] sm:$0xff]  ;;  %v793_v51 = vld [vmem:[%s7338_s5 + $0xe8] sm:$0xff] }
 0x165   :  { %v417_v54 = vpop.f32.mrf.mxu0  ;;  %3208 = vmatpush3.msra.mxu0 %v779_v48  ;;  %v777_v52 = vld [vmem:[%s7338_s5 + $0x68] sm:$0xff]  ;;  %v800_v47 = vld [vmem:[%s7338_s5 + $0x120] sm:$0xff]  ;;  %v799_v48 = vld [vmem:[%s7338_s5 + $0x118] sm:$0xff] }
 0x166   :  { %v473_v55 = vmax.f32 %v423_v53, 0.0  ;;  %v418_v56 = vadd.f32 %v4118_v27, %v417_v54  ;;  %3209 = vmatprep.subr.mxu0 %v794_v49  ;;  %v792_v53 = vld [vmem:[%s7338_s5 + $0xe0] sm:$0xff] }
 0x167   :  { %3210 = vmatpush3.msra.mxu0 %v778_v50  ;;  %v776_v54 = vld [vmem:[%s7338_s5 + $0x60] sm:$0xff]  ;;  %v798_v50 = vld [vmem:[%s7338_s5 + $0x110] sm:$0xff] }
 0x168   :  { %v472_v57 = vmax.f32 %v418_v56, 0.0  ;;  %3211 = vmatprep.subr.mxu0 %v793_v51  ;;  %v775_v56 = vld [vmem:[%s7338_s5 + $0x58] sm:$0xff] }
 0x169   :  { %3212 = vmatpush3.msra.mxu0 %v777_v52 }
 0x16a   :  { %v485_v58 = vmax.f32 %v472_v57, %v473_v55  ;;  %3213 = vmatprep.subr.mxu0 %v792_v53  ;;  %v791_v55 = vld [vmem:[%s7338_s5 + $0xd8] sm:$0xff]  ;;  %v790_v57 = vld [vmem:[%s7338_s5 + $0xd0] sm:$0xff]  ;;  %v797_v53 = vld [vmem:[%s7338_s5 + $0x108] sm:$0xff] }
 0x16b   :  { %v3322_v59 = vpop.f32.mrf.mxu0  ;;  %3214 = vmatpush3.msra.mxu0 %v776_v54 }
 0x16c   :  { %543 = vst.msk [vmem:[#allocation2 + $0x50] sm:$0xff] %vm490_vm5, %v485_v58  ;;  %494 = vst.msk [vmem:[#allocation2 + $0x78] sm:$0xff] %vm490_vm5, %v485_v58  ;;  %v433_v60 = vadd.f32 %v3322_v59, %v4118_v27  ;;  %513 = vrot.lane.b32.xlu0 %v485_v58, %s3770_s25  ;;  %3215 = vmatprep.subr.mxu0 %v791_v55  ;;  %v774_v58 = vld [vmem:[%s7338_s5 + $0x50] sm:$0xff]  ;;  %v789_v59 = vld [vmem:[%s7338_s5 + $0xc8] sm:$0xff] }
 0x16d   :  { %v427_v61 = vpop.f32.mrf.mxu0  ;;  %3216 = vmatpush3.msra.mxu0 %v775_v56 }
 0x16e   :  { %v475_v62 = vmax.f32 %v433_v60, 0.0  ;;  %v428_v63 = vadd.f32 %v4118_v27, %v427_v61  ;;  %3217 = vmatprep.subr.mxu0 %v790_v57  ;;  %v773_v60 = vld [vmem:[%s7338_s5 + $0x48] sm:$0xff]  ;;  %v788_v61 = vld [vmem:[%s7338_s5 + $0xc0] sm:$0xff] }
 0x16f   :  { %3218 = vmatpush3.msra.mxu0 %v774_v58  ;;  %v796_v57 = vld [vmem:[%s7338_s5 + $0x100] sm:$0xff] }
 0x170   :  { %v474_v1 = vmax.f32 %v428_v63, 0.0  ;;  %3219 = vmatprep.subr.mxu0 %v789_v59  ;;  %v787_v63 = vld [vmem:[%s7338_s5 + $0xb8] sm:$0xff] }
 0x171   :  { %3220 = vmatpush3.msra.mxu0 %v773_v60 }
 0x172   :  { %v486_v2 = vmax.f32 %v474_v1, %v475_v62  ;;  %3221 = vmatprep.subr.mxu0 %v788_v61  ;;  %v772_v62 = vld [vmem:[%s7338_s5 + $0x40] sm:$0xff]  ;;  %v771_v1 = vld [vmem:[%s7338_s5 + $0x38] sm:$0xff] }
 0x173   :  { %v3325_v4 = vpop.f32.mrf.mxu0  ;;  %v555_v30 = vld [vmem:[#allocation2 + $0x50] sm:$0xff]  ;;  %3222 = vmatpush3.msra.mxu0 %v772_v62 }
 0x174   :  { %544 = vst.msk [vmem:[#allocation2 + $0x68] sm:$0xff] %vm490_vm5, %v486_v2  ;;  %495 = vst.msk [vmem:[#allocation2 + $0x90] sm:$0xff] %vm490_vm5, %v486_v2  ;;  %v443_v5 = vadd.f32 %v3325_v4, %v4118_v27  ;;  %515 = vrot.lane.b32.xlu1 %v486_v2, %s3770_s25  ;;  %3223 = vmatprep.subr.mxu0 %v787_v63  ;;  %v786_v2 = vld [vmem:[%s7338_s5 + $0xb0] sm:$0xff] }
 0x175   :  { %v437_v6 = vpop.f32.mrf.mxu0  ;;  %3224 = vmatpush3.msra.mxu0 %v771_v1  ;;  %v770_v4 = vld [vmem:[%s7338_s5 + $0x30] sm:$0xff] }
 0x176   :  { %v477_v7 = vmax.f32 %v443_v5, 0.0  ;;  %v438_v8 = vadd.f32 %v4118_v27, %v437_v6  ;;  %3225 = vmatprep.subr.mxu0 %v786_v2  ;;  %v785_v5 = vld [vmem:[%s7338_s5 + $0xa8] sm:$0xff] }
 0x177   :  { %3226 = vmatpush3.msra.mxu0 %v770_v4  ;;  %v769_v6 = vld [vmem:[%s7338_s5 + $0x28] sm:$0xff] }
 0x178   :  { %v476_v9 = vmax.f32 %v438_v8, 0.0  ;;  %3227 = vmatprep.subr.mxu0 %v785_v5  ;;  %v768_v8 = vld [vmem:[%s7338_s5 + $0x20] sm:$0xff] }
 0x179   :  { %3228 = vmatpush3.msra.mxu0 %v769_v6  ;;  %v4348_v6 = vld [vmem:[#allocation2 + $0x70] sm:$0xff] }
 0x17a   :  { %v487_v10 = vmax.f32 %v476_v9, %v477_v7  ;;  %v784_v7 = vld [vmem:[%s7338_s5 + $0xa0] sm:$0xff]  ;;  %v783_v9 = vld [vmem:[%s7338_s5 + $0x98] sm:$0xff] }
 0x17b   :  { %v3328_v11 = vpop.f32.mrf.mxu0  ;;  %v557_v33 = vld [vmem:[#allocation2 + $0x68] sm:$0xff]  ;;  %3229 = vmatprep.subr.mxu0 %v784_v7 }
 0x17c   :  { %545 = vst.msk [vmem:[#allocation2 + $0x80] sm:$0xff] %vm490_vm5, %v487_v10  ;;  %496 = vst.msk [vmem:[#allocation2 + $0xa8] sm:$0xff] %vm490_vm5, %v487_v10  ;;  %v453_v12 = vadd.f32 %v3328_v11, %v4118_v27  ;;  %517 = vrot.lane.b32.xlu0 %v487_v10, %s3770_s25  ;;  %3230 = vmatpush3.msra.mxu0 %v768_v8  ;;  %v767_v10 = vld [vmem:[%s7338_s5 + $0x18] sm:$0xff]  ;;  %v782_v11 = vld [vmem:[%s7338_s5 + $0x90] sm:$0xff] }
 0x17d   :  { %v447_v13 = vpop.f32.mrf.mxu0  ;;  %3231 = vmatprep.subr.mxu0 %v783_v9  ;;  %v1022_v7 = vld [vmem:[%s7340_s7 + $0xe8] sm:$0xff]  ;;  %v1021_v8 = vld [vmem:[%s7340_s7 + $0xe0] sm:$0xff] }
 0x17e   :  { %v479_v14 = vmax.f32 %v453_v12, 0.0  ;;  %v448_v15 = vadd.f32 %v4118_v27, %v447_v13  ;;  %3232 = vmatpush3.msra.mxu0 %v767_v10  ;;  %v766_v12 = vld [vmem:[%s7338_s5 + $0x10] sm:$0xff]  ;;  %v781_v13 = vld [vmem:[%s7338_s5 + $0x88] sm:$0xff]  ;;  %1075 = vmatprep.subr.mxu1 %v1022_v7  ;;  %v1017_v10 = vld [vmem:[%s7340_s7 + $0xc0] sm:$0xff] }
 0x17f   :  { %3233 = vmatprep.subr.mxu0 %v782_v11  ;;  %v1018_v9 = vld [vmem:[%s7340_s7 + $0xc8] sm:$0xff] }
 0x180   :  { %v478_v16 = vmax.f32 %v448_v15, 0.0  ;;  %3234 = vmatpush3.msra.mxu0 %v766_v12  ;;  %v780_v15 = vld [vmem:[%s7338_s5 + $0x80] sm:$0xff]  ;;  %v1014_v11 = vld [vmem:[%s7340_s7 + $0xa8] sm:$0xff] }
 0x181   :  { %3235 = vmatprep.subr.mxu0 %v781_v13  ;;  %v1013_v12 = vld [vmem:[%s7340_s7 + $0xa0] sm:$0xff]  ;;  %v1010_v13 = vld [vmem:[%s7340_s7 + $0x88] sm:$0xff] }
 0x182   :  { %v488_v17 = vmax.f32 %v478_v16, %v479_v14  ;;  %v765_v14 = vld [vmem:[%s7338_s5 + $0x8] sm:$0xff]  ;;  %v764_v16 = vld [vmem:[%s7338_s5] sm:$0xff] }
 0x183   :  { %v3331_v18 = vpop.f32.mrf.mxu0  ;;  %v559_v36 = vld [vmem:[#allocation2 + $0x80] sm:$0xff]  ;;  %3236 = vmatpush3.msra.mxu0 %v765_v14 }
 0x184   :  { %546 = vst.msk [vmem:[#allocation2 + $0x98] sm:$0xff] %vm490_vm5, %v488_v17  ;;  %497 = vst.msk [vmem:[#allocation2 + $0xc0] sm:$0xff] %vm490_vm5, %v488_v17  ;;  %v463_v19 = vadd.f32 %v3331_v18, %v4118_v27  ;;  %519 = vrot.lane.b32.xlu1 %v488_v17, %s3770_s25  ;;  %3237 = vmatprep.subr.mxu0 %v780_v15  ;;  %v811_v17 = vld [vmem:[%s7338_s5 + $0x178] sm:$0xff]  ;;  %v4292_v18 = vld [vmem:[%s7339_s4] ss:$0 sm:$0xff] }
 0x185   :  { %v457_v20 = vpop.f32.mrf.mxu0  ;;  %3238 = vmatpush3.msra.mxu0 %v764_v16  ;;  %v1009_v14 = vld [vmem:[%s7340_s7 + $0x80] sm:$0xff]  ;;  %v1024_v15 = vld [vmem:[%s7340_s7 + $0xf8] sm:$0xff]  ;;  %v1006_v16 = vld [vmem:[%s7340_s7 + $0x68] sm:$0xff] }
 0x186   :  { %v458_v21 = vadd.f32 %v4118_v27, %v457_v20  ;;  %v481_v22 = vmax.f32 %v463_v19, 0.0  ;;  %3332 = vmatprep.subr.mxu0 %v811_v17 }
 0x188   :  { %v480_v23 = vmax.f32 %v458_v21, 0.0  ;;  %175 = vrot.lane.b32.xlu1 %v3870_v0, %s3769_s30  ;;  %v553_v0 = vld [vmem:[#allocation2 + $0x38] sm:$0xff] }
 0x18a   :  { %v489_v24 = vmax.f32 %v480_v23, %v481_v22 }
 0x18b   :  { %v561_v39 = vld [vmem:[#allocation2 + $0x98] sm:$0xff] }
 0x18c   :  { %498 = vst.msk [vmem:[#allocation2 + $0xd8] sm:$0xff] %vm490_vm5, %v489_v24  ;;  %547 = vst.msk [vmem:[#allocation2 + $0xb0] sm:$0xff] %vm490_vm5, %v489_v24  ;;  %521 = vrot.lane.b32.xlu0 %v489_v24, %s3770_s25 }
 0x193   :  { %v563_v42 = vld [vmem:[#allocation2 + $0xb0] sm:$0xff] }
 0x1c7   :  { %v508_v25 = vpop.permute.xlu1 %507 }
 0x1c8   :  { %532 = vst.msk [vmem:[#allocation2 + $0x18] sm:$0xff] %vm531_vm6, %v508_v25 }
 0x1c9   :  { %548 = vst.msk [vmem:[#allocation2 + $0x18] sm:$0xff] %vm490_vm5, %v3767_v3 }
 0x1ce   :  { %v510_v26 = vpop.permute.xlu0 %509 }
 0x1cf   :  { %533 = vst.msk [vmem:[#allocation2 + $0x30] sm:$0xff] %vm531_vm6, %v510_v26 }
 0x1d0   :  { %v550_v27 = vld [vmem:[#allocation2 + $0x18] sm:$0xff] }
 0x1d1   :  { %686 = vmatmul.mubr.f32.vlgmr.msra.gmra.mxu1 %v550_v27  ;;  %750 = vst [vmem:[#allocation2 + $0x18] sm:$0xff] %v3767_v3 }
 0x1d2   :  { %3142 = vmatprep.mubr.msk.f32.mxu1 %vm490_vm5, %v553_v0  ;;  %v810_v0 = vld [vmem:[%s7338_s5 + $0x170] sm:$0xff]  ;;  %1076 = vmatpush1.msra.mxu1 %v1021_v8 }
 0x1d3   :  { %1077 = vmatprep.subr.mxu1 %v1018_v9  ;;  %v4516_v9 = vld [vmem:[%s7341_s8 + $0x1a0] sm:$0xff] }
 0x1d4   :  { %1078 = vmatpush1.msra.mxu1 %v1017_v10  ;;  %v4521_v10 = vld [vmem:[%s7341_s8 + $0x1b0] sm:$0xff] }
 0x1d5   :  { %1079 = vmatprep.subr.mxu1 %v1014_v11  ;;  %v4528_v11 = vld [vmem:[%s7341_s8 + $0x188] sm:$0xff] }
 0x1d6   :  { %v512_v28 = vpop.permute.xlu1 %511  ;;  %v552_v29 = vld [vmem:[#allocation2 + $0x30] sm:$0xff]  ;;  %1080 = vmatpush1.msra.mxu1 %v1013_v12  ;;  %v4533_v12 = vld [vmem:[%s7341_s8 + $0x198] sm:$0xff] }
 0x1d7   :  { %534 = vst.msk [vmem:[#allocation2 + $0x48] sm:$0xff] %vm531_vm6, %v512_v28  ;;  %691 = vmatmul.mubr.f32.gmra.mxu1 %v552_v29  ;;  %v809_v29 = vld [vmem:[%s7338_s5 + $0x168] sm:$0xff]  ;;  %1081 = vmatprep.subr.mxu1 %v1010_v13 }
 0x1d8   :  { %3143 = vmatprep.mubr.msk.f32.mxu1 %vm490_vm5, %v555_v30  ;;  %1082 = vmatpush1.msra.mxu1 %v1009_v14 }
 0x1d9   :  { %1083 = vmatprep.subr.mxu1 %v1006_v16  ;;  %v4545_v16 = vld [vmem:[%s7341_s8 + $0x190] sm:$0xff] }
 0x1de   :  { %v514_v31 = vpop.permute.xlu0 %513  ;;  %v554_v32 = vld [vmem:[#allocation2 + $0x48] sm:$0xff] }
 0x1df   :  { %535 = vst.msk [vmem:[#allocation2 + $0x60] sm:$0xff] %vm531_vm6, %v514_v31  ;;  %696 = vmatmul.mubr.f32.gmra.mxu1 %v554_v32  ;;  %v808_v31 = vld [vmem:[%s7338_s5 + $0x160] sm:$0xff]  ;;  %v807_v32 = vld [vmem:[%s7338_s5 + $0x158] sm:$0xff] }
 0x1e0   :  { %3144 = vmatprep.mubr.msk.f32.mxu1 %vm490_vm5, %v557_v33  ;;  %v806_v33 = vld [vmem:[%s7338_s5 + $0x150] sm:$0xff] }
 0x1e6   :  { %v516_v34 = vpop.permute.xlu1 %515  ;;  %v556_v35 = vld [vmem:[#allocation2 + $0x60] sm:$0xff] }
 0x1e7   :  { %536 = vst.msk [vmem:[#allocation2 + $0x78] sm:$0xff] %vm531_vm6, %v516_v34  ;;  %701 = vmatmul.mubr.f32.gmra.mxu1 %v556_v35 }
 0x1e8   :  { %3145 = vmatprep.mubr.msk.f32.mxu1 %vm490_vm5, %v559_v36  ;;  %v805_v36 = vld [vmem:[%s7338_s5 + $0x148] sm:$0xff] }
 0x1ee   :  { %v518_v37 = vpop.permute.xlu0 %517  ;;  %v558_v38 = vld [vmem:[#allocation2 + $0x78] sm:$0xff] }
 0x1ef   :  { %537 = vst.msk [vmem:[#allocation2 + $0x90] sm:$0xff] %vm531_vm6, %v518_v37  ;;  %706 = vmatmul.mubr.f32.gmra.mxu1 %v558_v38 }
 0x1f0   :  { %3146 = vmatprep.mubr.msk.f32.mxu1 %vm490_vm5, %v561_v39 }
 0x1f6   :  { %v520_v40 = vpop.permute.xlu1 %519  ;;  %v560_v41 = vld [vmem:[#allocation2 + $0x90] sm:$0xff] }
 0x1f7   :  { %538 = vst.msk [vmem:[#allocation2 + $0xa8] sm:$0xff] %vm531_vm6, %v520_v40  ;;  %711 = vmatmul.mubr.f32.gmra.mxu1 %v560_v41  ;;  %v804_v40 = vld [vmem:[%s7338_s5 + $0x140] sm:$0xff] }
 0x1f8   :  { %3147 = vmatprep.mubr.msk.f32.mxu1 %vm490_vm5, %v563_v42  ;;  %v803_v42 = vld [vmem:[%s7338_s5 + $0x138] sm:$0xff] }
 0x1fe   :  { %v522_v44 = vpop.permute.xlu0 %521  ;;  %v562_v45 = vld [vmem:[#allocation2 + $0xa8] sm:$0xff] }
 0x1ff   :  { %539 = vst.msk [vmem:[#allocation2 + $0xc0] sm:$0xff] %vm531_vm6, %v522_v44  ;;  %716 = vmatmul.mubr.f32.gmra.mxu1 %v562_v45  ;;  %v801_v45 = vld [vmem:[%s7338_s5 + $0x128] sm:$0xff] }
 0x200   :  { %3148 = vmatprep.mubr.msk.f32.mxu1 %vm490_vm5, %v565_v43  ;;  %v802_v43 = vld [vmem:[%s7338_s5 + $0x130] sm:$0xff] }
 0x206   :  { %v564_v46 = vld [vmem:[#allocation2 + $0xc0] sm:$0xff] }
 0x207   :  { %721 = vmatmul.mubr.f32.gmra.mxu1 %v564_v46 }
 0x208   :  { %1123 = vmatprep.mubr.f32.mxu1 %v3767_v3 }
 0x291   :  { %v687_v19 = vpop.f32.mrf.mxu1 }
 0x292   :  { %v688_v21 = vadd.f32 %v4292_v18, %v687_v19  ;;  %v1005_v19 = vld [vmem:[%s7340_s7 + $0x60] sm:$0xff] }
 0x293   :  { %v689_v20 = vpop.f32.mrf.mxu1  ;;  %1084 = vmatpush1.msra.mxu1 %v1005_v19 }
 0x294   :  { %v726_v23 = vmax.f32 %v688_v21, 0.0  ;;  %v1019_v20 = vld [vmem:[%s7340_s7 + $0xd0] sm:$0xff]  ;;  %v1016_v21 = vld [vmem:[%s7340_s7 + $0xb8] sm:$0xff] }
 0x297   :  { %v692_v22 = vpop.f32.mrf.mxu1 }
 0x298   :  { %v693_v24 = vadd.f32 %v4292_v18, %v692_v22  ;;  %v1002_v22 = vld [vmem:[%s7340_s7 + $0x48] sm:$0xff] }
 0x299   :  { %v694_v25 = vpop.f32.mrf.mxu1  ;;  %1085 = vmatprep.subr.mxu1 %v1002_v22  ;;  %v4573_v22 = vld [vmem:[%s7341_s8 + $0x170] sm:$0xff] }
 0x29a   :  { %v727_v26 = vmax.f32 %v693_v24, 0.0  ;;  %v1001_v24 = vld [vmem:[%s7340_s7 + $0x40] sm:$0xff]  ;;  %v1012_v25 = vld [vmem:[%s7340_s7 + $0x98] sm:$0xff] }
 0x29b   :  { %1086 = vmatpush1.msra.mxu1 %v1001_v24  ;;  %v4585_v24 = vld [vmem:[%s7341_s8 + $0x158] sm:$0xff] }
 0x29c   :  { %v734_v27 = vmax.f32 %v726_v23, %v727_v26  ;;  %v1015_v23 = vld [vmem:[%s7340_s7 + $0xb0] sm:$0xff] }
 0x29d   :  { %v1011_v26 = vld [vmem:[%s7340_s7 + $0x90] sm:$0xff] }
 0x29e   :  { %738 = vst [vmem:[#allocation2 + $0x30] sm:$0xff] %v734_v27  ;;  %742 = vst [vmem:[#allocation2 + $0x20] sm:$0xff] %v734_v27  ;;  %883 = vmatprep.mubr.f32.mxu0 %v734_v27 }
 0x29f   :  { %v697_v28 = vpop.f32.mrf.mxu1  ;;  %884 = vmatmul.mubr.f32.vlgmr.msra.gmra.mxu0 %v3767_v3 }
 0x2a0   :  { %3333 = vmatpush3.msra.mxu0 %v811_v17  ;;  %v698_v3 = vadd.f32 %v4292_v18, %v697_v28  ;;  %v1023_v17 = vld [vmem:[%s7340_s7 + $0xf0] sm:$0xff]  ;;  %v998_v28 = vld [vmem:[%s7340_s7 + $0x28] sm:$0xff] }
 0x2a1   :  { %v699_v30 = vpop.f32.mrf.mxu1  ;;  %3334 = vmatprep.subr.mxu0 %v810_v0  ;;  %1087 = vmatprep.subr.mxu1 %v998_v28  ;;  %v4611_v28 = vld [vmem:[%s7341_s8 + $0x138] sm:$0xff] }
 0x2a2   :  { %3335 = vmatpush3.msra.mxu0 %v810_v0  ;;  %v728_v38 = vmax.f32 %v698_v3, 0.0  ;;  %v1007_v0 = vld [vmem:[%s7340_s7 + $0x70] sm:$0xff]  ;;  %v1004_v30 = vld [vmem:[%s7340_s7 + $0x58] sm:$0xff] }
 0x2a3   :  { %3336 = vmatprep.subr.mxu0 %v809_v29  ;;  %v999_v3 = vld [vmem:[%s7340_s7 + $0x30] sm:$0xff] }
 0x2a4   :  { %3337 = vmatpush3.msra.mxu0 %v809_v29  ;;  %v997_v29 = vld [vmem:[%s7340_s7 + $0x20] sm:$0xff] }
 0x2a5   :  { %3338 = vmatprep.subr.mxu0 %v808_v31  ;;  %1088 = vmatpush1.msra.mxu1 %v997_v29 }
 0x2a6   :  { %3339 = vmatpush3.msra.mxu0 %v808_v31  ;;  %v1003_v31 = vld [vmem:[%s7340_s7 + $0x50] sm:$0xff] }
 0x2a7   :  { %v702_v34 = vpop.f32.mrf.mxu1  ;;  %3340 = vmatprep.subr.mxu0 %v807_v32 }
 0x2a8   :  { %v703_v35 = vadd.f32 %v4292_v18, %v702_v34  ;;  %3341 = vmatpush3.msra.mxu0 %v807_v32  ;;  %v1000_v32 = vld [vmem:[%s7340_s7 + $0x38] sm:$0xff] }
 0x2a9   :  { %v704_v37 = vpop.f32.mrf.mxu1  ;;  %3342 = vmatprep.subr.mxu0 %v806_v33  ;;  %v996_v34 = vld [vmem:[%s7340_s7 + $0x18] sm:$0xff] }
 0x2aa   :  { %v729_v39 = vmax.f32 %v703_v35, 0.0  ;;  %3343 = vmatpush3.msra.mxu0 %v806_v33  ;;  %v994_v33 = vld [vmem:[%s7340_s7 + $0x8] sm:$0xff]  ;;  %v993_v35 = vld [vmem:[%s7340_s7] sm:$0xff] }
 0x2ab   :  { %3344 = vmatprep.subr.mxu0 %v805_v36  ;;  %1089 = vmatprep.subr.mxu1 %v994_v33  ;;  %v4451_v37 = vld [vmem:[%s7341_s8 + $0x1e8] sm:$0xff]  ;;  %v4644_v33 = vld [vmem:[%s7341_s8 + $0x100] sm:$0xff] }
 0x2ac   :  { %v735_v41 = vmax.f32 %v728_v38, %v729_v39  ;;  %3345 = vmatpush3.msra.mxu0 %v805_v36  ;;  %v995_v36 = vld [vmem:[%s7340_s7 + $0x10] sm:$0xff]  ;;  %1090 = vmatpush1.msra.mxu1 %v993_v35  ;;  %v4456_v38 = vld [vmem:[%s7341_s8 + $0x1f8] sm:$0xff]  ;;  %v4656_v35 = vld [vmem:[%s7341_s8 + $0xe8] sm:$0xff] }
 0x2ad   :  { %3346 = vmatprep.subr.mxu0 %v804_v40  ;;  %1453 = vmatprep.subr.mxu1 %v4451_v37 }
 0x2ae   :  { %739 = vst [vmem:[#allocation2 + $0x48] sm:$0xff] %v735_v41  ;;  %743 = vst [vmem:[#allocation2 + $0x38] sm:$0xff] %v735_v41  ;;  %888 = vmatprep.mubr.f32.mxu0 %v735_v41  ;;  %3347 = vmatpush3.msra.mxu0 %v804_v40 }
 0x2af   :  { %v707_v44 = vpop.f32.mrf.mxu1  ;;  %889 = vmatmul.mubr.f32.gmra.mxu0 %v734_v27  ;;  %3348 = vmatprep.subr.mxu0 %v803_v42  ;;  %v1008_v27 = vld [vmem:[%s7340_s7 + $0x78] sm:$0xff] }
 0x2b0   :  { %3349 = vmatpush3.msra.mxu0 %v803_v42  ;;  %v708_v49 = vadd.f32 %v4292_v18, %v707_v44 }
 0x2b1   :  { %v709_v46 = vpop.f32.mrf.mxu1  ;;  %3350 = vmatprep.subr.mxu0 %v802_v43 }
 0x2b2   :  { %3351 = vmatpush3.msra.mxu0 %v802_v43  ;;  %v730_v55 = vmax.f32 %v708_v49, 0.0 }
 0x2b3   :  { %3352 = vmatprep.subr.mxu0 %v801_v45 }
 0x2b4   :  { %3353 = vmatpush3.msra.mxu0 %v801_v45 }
 0x2b5   :  { %3354 = vmatprep.subr.mxu0 %v800_v47 }
 0x2b6   :  { %3355 = vmatpush3.msra.mxu0 %v800_v47 }
 0x2b7   :  { %v712_v51 = vpop.f32.mrf.mxu1  ;;  %3356 = vmatprep.subr.mxu0 %v799_v48 }
 0x2b8   :  { %v713_v52 = vadd.f32 %v4292_v18, %v712_v51  ;;  %3357 = vmatpush3.msra.mxu0 %v799_v48  ;;  %v3149_v48 = vld [vmem:[%s7342_s6] ss:$0 sm:$0xff] }
 0x2b9   :  { %v714_v54 = vpop.f32.mrf.mxu1  ;;  %3358 = vmatprep.subr.mxu0 %v798_v50 }
 0x2ba   :  { %v731_v56 = vmax.f32 %v713_v52, 0.0  ;;  %3359 = vmatpush3.msra.mxu0 %v798_v50 }
 0x2bb   :  { %3360 = vmatprep.subr.mxu0 %v797_v53 }
 0x2bc   :  { %v736_v58 = vmax.f32 %v730_v55, %v731_v56  ;;  %3361 = vmatpush3.msra.mxu0 %v797_v53  ;;  %v4466_v56 = vld [vmem:[%s7341_s8 + $0x1e0] sm:$0xff] }
 0x2bd   :  { %3362 = vmatprep.subr.mxu0 %v796_v57 }
 0x2be   :  { %740 = vst [vmem:[#allocation2 + $0x60] sm:$0xff] %v736_v58  ;;  %744 = vst [vmem:[#allocation2 + $0x50] sm:$0xff] %v736_v58  ;;  %893 = vmatprep.mubr.f32.mxu0 %v736_v58  ;;  %3363 = vmatpush3.msra.mxu0 %v796_v57  ;;  %v4471_v57 = vld [vmem:[%s7341_s8 + $0x1f0] sm:$0xff] }
 0x2bf   :  { %v717_v59 = vpop.f32.mrf.mxu1  ;;  %894 = vmatmul.mubr.f32.gmra.mxu0 %v735_v41  ;;  %1164 = vmatprep.subr.mxu0 %v1024_v15  ;;  %v4540_v15 = vld [vmem:[%s7341_s8 + $0x180] sm:$0xff] }
 0x2c0   :  { %v718_v61 = vadd.f32 %v4292_v18, %v717_v59  ;;  %v4476_v59 = vld [vmem:[%s7341_s8 + $0x1c8] sm:$0xff] }
 0x2c1   :  { %v719_v60 = vpop.f32.mrf.mxu1 }
 0x2c2   :  { %v732_v2 = vmax.f32 %v718_v61, 0.0  ;;  %v4481_v60 = vld [vmem:[%s7341_s8 + $0x1d8] sm:$0xff] }
 0x2c7   :  { %v722_v62 = vpop.f32.mrf.mxu1 }
 0x2c8   :  { %v723_v63 = vadd.f32 %v4292_v18, %v722_v62  ;;  %v1020_v18 = vld [vmem:[%s7340_s7 + $0xd8] sm:$0xff] }
 0x2c9   :  { %v724_v1 = vpop.f32.mrf.mxu1 }
 0x2ca   :  { %v733_v4 = vmax.f32 %v723_v63, 0.0  ;;  %v4488_v63 = vld [vmem:[%s7341_s8 + $0x1c0] sm:$0xff]  ;;  %v4493_v1 = vld [vmem:[%s7341_s8 + $0x1d0] sm:$0xff] }
 0x2cc   :  { %v737_v5 = vmax.f32 %v732_v2, %v733_v4  ;;  %v4502_v2 = vld [vmem:[%s7341_s8 + $0x1a8] sm:$0xff]  ;;  %v4507_v4 = vld [vmem:[%s7341_s8 + $0x1b8] sm:$0xff] }
 0x2ce   :  { %741 = vst [vmem:[#allocation2 + $0x78] sm:$0xff] %v737_v5  ;;  %745 = vst [vmem:[#allocation2 + $0x68] sm:$0xff] %v737_v5  ;;  %898 = vmatprep.mubr.f32.mxu0 %v737_v5 }
 0x2cf   :  { %899 = vmatmul.mubr.f32.gmra.mxu0 %v736_v58 }
 0x2d0   :  { %3364 = vmatprep.mubr.f32.mxu0 %v735_v41 }
 0x2d3   :  { %3365 = vmatmul.mubr.f32.vlgmr.msra.gmra.mxu0 %v736_v58 }
 0x2d4   :  { %3367 = vmatprep.mubr.f32.mxu0 %v737_v5  ;;  %1165 = vmatpush1.msra.mxu0 %v1023_v17  ;;  %v4554_v17 = vld [vmem:[%s7341_s8 + $0x168] sm:$0xff] }
 0x2d5   :  { %1166 = vmatprep.subr.mxu0 %v1020_v18  ;;  %v4559_v18 = vld [vmem:[%s7341_s8 + $0x178] sm:$0xff] }
 0x2d6   :  { %1167 = vmatpush1.msra.mxu0 %v1019_v20 }
 0x2d7   :  { %3368 = vmatmul.mubr.f32.gmra.mxu0 %v4348_v6  ;;  %1168 = vmatprep.subr.mxu0 %v1016_v21  ;;  %v4568_v21 = vld [vmem:[%s7341_s8 + $0x160] sm:$0xff] }
 0x2d8   :  { %1212 = vmatprep.mubr.f32.mxu0 %v4348_v6  ;;  %1169 = vmatpush1.msra.mxu0 %v1015_v23  ;;  %v4580_v23 = vld [vmem:[%s7341_s8 + $0x148] sm:$0xff] }
 0x2d9   :  { %1170 = vmatprep.subr.mxu0 %v1012_v25 }
 0x2da   :  { %1171 = vmatpush1.msra.mxu0 %v1011_v26  ;;  %v4592_v26 = vld [vmem:[%s7341_s8 + $0x140] sm:$0xff] }
 0x2db   :  { %1172 = vmatprep.subr.mxu0 %v1008_v27  ;;  %v4597_v27 = vld [vmem:[%s7341_s8 + $0x150] sm:$0xff] }
 0x2dc   :  { %1173 = vmatpush1.msra.mxu0 %v1007_v0  ;;  %v4606_v0 = vld [vmem:[%s7341_s8 + $0x128] sm:$0xff] }
 0x2dd   :  { %1174 = vmatprep.subr.mxu0 %v1004_v30  ;;  %v4620_v30 = vld [vmem:[%s7341_s8 + $0x120] sm:$0xff] }
 0x2de   :  { %1175 = vmatpush1.msra.mxu0 %v1003_v31  ;;  %v4625_v31 = vld [vmem:[%s7341_s8 + $0x130] sm:$0xff] }
 0x2df   :  { %1176 = vmatprep.subr.mxu0 %v1000_v32  ;;  %v4632_v32 = vld [vmem:[%s7341_s8 + $0x108] sm:$0xff] }
 0x2e0   :  { %1177 = vmatpush1.msra.mxu0 %v999_v3  ;;  %v4637_v3 = vld [vmem:[%s7341_s8 + $0x118] sm:$0xff] }
 0x2e1   :  { %1178 = vmatprep.subr.mxu0 %v996_v34  ;;  %v4649_v34 = vld [vmem:[%s7341_s8 + $0x110] sm:$0xff] }
 0x2e2   :  { %1179 = vmatpush1.msra.mxu0 %v995_v36  ;;  %v4661_v36 = vld [vmem:[%s7341_s8 + $0xf8] sm:$0xff] }
 0x2e3   :  { %1524 = vmatprep.subr.mxu0 %v4456_v38 }
 0x35f   :  { %v3239_v39 = vpop.f32.mrf.mxu0 }
 0x361   :  { %v3240_v40 = vpop.f32.mrf.mxu0 }
 0x362   :  { %v3241_v46 = vadd.f32 %v3240_v40, %v3239_v39  ;;  %v4668_v39 = vld [vmem:[%s7341_s8 + $0xe0] sm:$0xff]  ;;  %v4673_v40 = vld [vmem:[%s7341_s8 + $0xf0] sm:$0xff] }
 0x364   :  { %v886_v51 = vadd.f32 %v3241_v46, %v3149_v48  ;;  %v4709_v46 = vld [vmem:[%s7341_s8 + $0xb8] sm:$0xff] }
 0x36f   :  { %v3242_v41 = vpop.f32.mrf.mxu0 }
 0x371   :  { %v3243_v42 = vpop.f32.mrf.mxu0 }
 0x372   :  { %v3244_v50 = vadd.f32 %v3243_v42, %v3242_v41  ;;  %v4680_v41 = vld [vmem:[%s7341_s8 + $0xc8] sm:$0xff]  ;;  %v4685_v42 = vld [vmem:[%s7341_s8 + $0xd8] sm:$0xff] }
 0x374   :  { %v891_v54 = vadd.f32 %v3244_v50, %v3149_v48  ;;  %v4733_v50 = vld [vmem:[%s7341_s8 + $0x98] sm:$0xff] }
 0x37f   :  { %v3245_v43 = vpop.f32.mrf.mxu0 }
 0x381   :  { %v3246_v44 = vpop.f32.mrf.mxu0 }
 0x382   :  { %v3247_v61 = vadd.f32 %v3246_v44, %v3245_v43  ;;  %v4692_v43 = vld [vmem:[%s7341_s8 + $0xc0] sm:$0xff]  ;;  %v4697_v44 = vld [vmem:[%s7341_s8 + $0xd0] sm:$0xff] }
 0x384   :  { %v896_v8 = vadd.f32 %v3247_v61, %v3149_v48  ;;  %v4776_v61 = vld [vmem:[%s7341_s8 + $0x48] sm:$0xff] }
 0x38f   :  { %v3248_v45 = vpop.f32.mrf.mxu0 }
 0x391   :  { %v3249_v47 = vpop.f32.mrf.mxu0 }
 0x392   :  { %v3250_v13 = vadd.f32 %v3249_v47, %v3248_v45  ;;  %v4704_v45 = vld [vmem:[%s7341_s8 + $0xa8] sm:$0xff]  ;;  %v4716_v47 = vld [vmem:[%s7341_s8 + $0xa0] sm:$0xff] }
 0x393   :  { %v3366_v49 = vpop.f32.mrf.mxu0 }
 0x394   :  { %v976_v62 = vadd.f32 %v3366_v49, %v891_v54  ;;  %v901_v19 = vadd.f32 %v3250_v13, %v3149_v48  ;;  %v4721_v48 = vld [vmem:[%s7341_s8 + $0xb0] sm:$0xff]  ;;  %v4728_v49 = vld [vmem:[%s7341_s8 + $0x88] sm:$0xff]  ;;  %v4757_v54 = vld [vmem:[%s7341_s8 + $0x78] sm:$0xff] }
 0x395   :  { %v970_v52 = vpop.f32.mrf.mxu0  ;;  %v4805_v13 = vld [vmem:[%s7341_s8 + $0x38] sm:$0xff] }
 0x396   :  { %v971_v53 = vadd.f32 %v970_v52, %v886_v51  ;;  %v990_v7 = vmax.f32 %v976_v62, 0.0  ;;  %v4740_v51 = vld [vmem:[%s7341_s8 + $0x80] sm:$0xff]  ;;  %v4745_v52 = vld [vmem:[%s7341_s8 + $0x90] sm:$0xff]  ;;  %v4781_v62 = vld [vmem:[%s7341_s8 + $0x58] sm:$0xff] }
 0x397   :  { %v3369_v58 = vpop.f32.mrf.mxu0 }
 0x398   :  { %v989_v55 = vmax.f32 %v971_v53, 0.0  ;;  %v986_v25 = vadd.f32 %v3369_v58, %v901_v19  ;;  %v4752_v53 = vld [vmem:[%s7341_s8 + $0x68] sm:$0xff]  ;;  %v4769_v58 = vld [vmem:[%s7341_s8 + $0x70] sm:$0xff] }
 0x399   :  { %v980_v5 = vpop.f32.mrf.mxu0  ;;  %v4817_v19 = vld [vmem:[%s7341_s8 + $0x30] sm:$0xff] }
 0x39a   :  { %3150 = vmatmul.mubr.msk.f32.vlgmr.msra.gmra.mxu1 %vm490_vm5, %v989_v55  ;;  %3154 = vmatmul.mubr.msk.f32.vlgmr.msra.gmra.mxu0 %vm490_vm5, %v989_v55  ;;  %v981_v14 = vadd.f32 %v980_v5, %v896_v8  ;;  %v992_v29 = vmax.f32 %v986_v25, 0.0  ;;  %v4764_v55 = vld [vmem:[%s7341_s8 + $0x60] sm:$0xff]  ;;  %v4800_v8 = vld [vmem:[%s7341_s8 + $0x28] sm:$0xff]  ;;  %v4829_v25 = vld [vmem:[%s7341_s8 + $0x18] sm:$0xff] }
 0x39b   :  { %1454 = vmatpush1.msra.mxu1 %v4466_v56  ;;  %1525 = vmatpush1.msra.mxu0 %v4471_v57  ;;  %v4788_v5 = vld [vmem:[%s7341_s8 + $0x40] sm:$0xff] }
 0x39c   :  { %1455 = vmatprep.subr.mxu1 %v4476_v59  ;;  %1526 = vmatprep.subr.mxu0 %v4481_v60  ;;  %v991_v20 = vmax.f32 %v981_v14, 0.0  ;;  %v4812_v14 = vld [vmem:[%s7341_s8 + $0x20] sm:$0xff] }
 0x39d   :  { %1456 = vmatpush1.msra.mxu1 %v4488_v63  ;;  %1527 = vmatpush1.msra.mxu0 %v4493_v1 }
 0x39e   :  { %1129 = vmatprep.mubr.f32.mxu1 %v4348_v6  ;;  %1218 = vmatprep.mubr.f32.mxu0 %v4348_v6 }
 0x39f   :  { %1457 = vmatprep.subr.mxu1 %v4502_v2  ;;  %1528 = vmatprep.subr.mxu0 %v4507_v4 }
 0x3a0   :  { %3151 = vmatmul.mubr.msk.f32.gmra.mxu1 %vm490_vm5, %v990_v7  ;;  %3155 = vmatmul.mubr.msk.f32.gmra.mxu0 %vm490_vm5, %v990_v7  ;;  %v4793_v7 = vld [vmem:[%s7341_s8 + $0x50] sm:$0xff] }
 0x3a1   :  { %1458 = vmatpush1.msra.mxu1 %v4516_v9  ;;  %1529 = vmatpush1.msra.mxu0 %v4521_v10  ;;  %7582 = vst [vmem:[#allocation5_spill] sm:$0xff] %v4793_v7 }
 0x3a2   :  { %1459 = vmatprep.subr.mxu1 %v4528_v11  ;;  %1530 = vmatprep.subr.mxu0 %v4533_v12 }
 0x3a3   :  { %1460 = vmatpush1.msra.mxu1 %v4540_v15  ;;  %1531 = vmatpush1.msra.mxu0 %v4545_v16 }
 0x3a4   :  { %1135 = vmatprep.mubr.f32.mxu1 %v4348_v6  ;;  %1224 = vmatprep.mubr.f32.mxu0 %v4348_v6 }
 0x3a5   :  { %1461 = vmatprep.subr.mxu1 %v4554_v17  ;;  %1532 = vmatprep.subr.mxu0 %v4559_v18 }
 0x3a6   :  { %3152 = vmatmul.mubr.msk.f32.gmra.mxu1 %vm490_vm5, %v991_v20  ;;  %3156 = vmatmul.mubr.msk.f32.gmra.mxu0 %vm490_vm5, %v991_v20  ;;  %v4824_v20 = vld [vmem:[%s7341_s8 + $0x8] sm:$0xff] }
 0x3a7   :  { %1462 = vmatpush1.msra.mxu1 %v4568_v21  ;;  %1533 = vmatpush1.msra.mxu0 %v4573_v22 }
 0x3a8   :  { %1463 = vmatprep.subr.mxu1 %v4580_v23  ;;  %1534 = vmatprep.subr.mxu0 %v4585_v24 }
 0x3a9   :  { %1464 = vmatpush1.msra.mxu1 %v4592_v26  ;;  %1535 = vmatpush1.msra.mxu0 %v4597_v27 }
 0x3aa   :  { %1141 = vmatprep.mubr.f32.mxu1 %v4348_v6  ;;  %1230 = vmatprep.mubr.f32.mxu0 %v4348_v6 }
 0x3ab   :  { %1465 = vmatprep.subr.mxu1 %v4606_v0  ;;  %1536 = vmatprep.subr.mxu0 %v4611_v28 }
 0x3ac   :  { %3153 = vmatmul.mubr.msk.f32.gmra.mxu1 %vm490_vm5, %v992_v29  ;;  %3157 = vmatmul.mubr.msk.f32.gmra.mxu0 %vm490_vm5, %v992_v29  ;;  %v4836_v29 = vld [vmem:[%s7341_s8] sm:$0xff] }
 0x3ad   :  { %1466 = vmatpush1.msra.mxu1 %v4620_v30  ;;  %1537 = vmatpush1.msra.mxu0 %v4625_v31 }
 0x3ae   :  { %1467 = vmatprep.subr.mxu1 %v4632_v32  ;;  %1538 = vmatprep.subr.mxu0 %v4637_v3 }
 0x3af   :  { %1468 = vmatpush1.msra.mxu1 %v4644_v33  ;;  %1539 = vmatpush1.msra.mxu0 %v4649_v34 }
 0x3b0   :  { %1469 = vmatprep.subr.mxu1 %v4656_v35  ;;  %1540 = vmatprep.subr.mxu0 %v4661_v36 }
 0x3b1   :  { %1470 = vmatpush1.msra.mxu1 %v4668_v39  ;;  %1541 = vmatpush1.msra.mxu0 %v4673_v40 }
 0x3b2   :  { %1471 = vmatprep.subr.mxu1 %v4680_v41  ;;  %1542 = vmatprep.subr.mxu0 %v4685_v42 }
 0x3b3   :  { %1472 = vmatpush1.msra.mxu1 %v4692_v43  ;;  %1543 = vmatpush1.msra.mxu0 %v4697_v44 }
 0x3b4   :  { %1473 = vmatprep.subr.mxu1 %v4704_v45  ;;  %1544 = vmatprep.subr.mxu0 %v4709_v46 }
 0x3b5   :  { %1474 = vmatpush1.msra.mxu1 %v4716_v47  ;;  %1545 = vmatpush1.msra.mxu0 %v4721_v48 }
 0x3b6   :  { %1475 = vmatprep.subr.mxu1 %v4728_v49  ;;  %1546 = vmatprep.subr.mxu0 %v4733_v50 }
 0x3b7   :  { %1476 = vmatpush1.msra.mxu1 %v4740_v51  ;;  %1547 = vmatpush1.msra.mxu0 %v4745_v52 }
 0x3b8   :  { %1477 = vmatprep.subr.mxu1 %v4752_v53  ;;  %1548 = vmatprep.subr.mxu0 %v4757_v54 }
 0x3b9   :  { %1478 = vmatpush1.msra.mxu1 %v4764_v55  ;;  %1549 = vmatpush1.msra.mxu0 %v4769_v58 }
 0x3ba   :  { %1479 = vmatprep.subr.mxu1 %v4776_v61  ;;  %1550 = vmatprep.subr.mxu0 %v4781_v62 }
 0x3bb   :  { %1480 = vmatpush1.msra.mxu1 %v4788_v5  ;;  %1551 = vmatpush1.msra.mxu0 %v4793_v7  ;;  %v4843_v7 = vld [vmem:[%s7341_s8 + $0x10] sm:$0xff] }
 0x3bc   :  { %1481 = vmatprep.subr.mxu1 %v4800_v8  ;;  %1552 = vmatprep.subr.mxu0 %v4805_v13 }
 0x3bd   :  { %1482 = vmatpush1.msra.mxu1 %v4812_v14  ;;  %1553 = vmatpush1.msra.mxu0 %v4817_v19 }
 0x3be   :  { %1483 = vmatprep.subr.mxu1 %v4824_v20  ;;  %1554 = vmatprep.subr.mxu0 %v4829_v25 }
 0x3bf   :  { %1484 = vmatpush1.msra.mxu1 %v4836_v29  ;;  %1517 = vmatprep.mubr.f32.mxu1 %v4348_v6 }
 0x3c0   :  { %1555 = vmatpush1.msra.mxu0 %v4843_v7  ;;  %1588 = vmatprep.mubr.f32.mxu0 %v4348_v6 }
 0x3c1   :  { %1518 = vmatmul.mubr.f32.vlgmr.msra.gmra.mxu1 %v4348_v6  ;;  %1589 = vmatmul.mubr.f32.vlgmr.msra.gmra.mxu0 %v4348_v6 }
 0x3c2   :  { %1630 = vmatprep.subr.mxu1 %v4451_v37  ;;  %1701 = vmatprep.subr.mxu0 %v4456_v38  ;;  %v7583_v37 = vld [vmem:[#allocation5_spill] sm:$0xff]  ;;  %v4922_v38 = vld [vmem:[%s7343_s10 + $0x1e8] sm:$0xff] }
 0x3c3   :  { %1631 = vmatpush1.msra.mxu1 %v4466_v56  ;;  %1702 = vmatpush1.msra.mxu0 %v4471_v57  ;;  %v4927_v56 = vld [vmem:[%s7343_s10 + $0x1f8] sm:$0xff]  ;;  %v1027_v57 = vlaneseq }
 0x3c4   :  { %1632 = vmatprep.subr.mxu1 %v4476_v59  ;;  %1703 = vmatprep.subr.mxu0 %v4481_v60 }
 0x3c5   :  { %1633 = vmatpush1.msra.mxu1 %v4488_v63  ;;  %1704 = vmatpush1.msra.mxu0 %v4493_v1  ;;  %v4931_v59 = vshrl.u32 %v1027_v57, 7 }
 0x3c6   :  { %1634 = vmatprep.subr.mxu1 %v4502_v2  ;;  %1705 = vmatprep.subr.mxu0 %v4507_v4  ;;  %v1025_v2 = vld [vmem:[%s7344_s9] sm:$0xf] }
 0x3c7   :  { %1635 = vmatpush1.msra.mxu1 %v4516_v9  ;;  %1706 = vmatpush1.msra.mxu0 %v4521_v10  ;;  %7584 = vst [vmem:[#allocation5_spill] sm:$0xff] %v4931_v59  ;;  %v7358_v1 = vsub.s32 2, %v4931_v59  ;;  %v7360_v10 = vsub.s32 1, %v4931_v59 }
 0x3c8   :  { %1636 = vmatprep.subr.mxu1 %v4528_v11  ;;  %1707 = vmatprep.subr.mxu0 %v4533_v12  ;;  %v7359_v11 = vsub.s32 3, %v4931_v59 }
 0x3c9   :  { %1637 = vmatpush1.msra.mxu1 %v4540_v15  ;;  %1708 = vmatpush1.msra.mxu0 %v4545_v16  ;;  %v1038_v15 = vrot.slane %v1025_v2, %v7358_v1 }
 0x3ca   :  { %1638 = vmatprep.subr.mxu1 %v4554_v17  ;;  %1709 = vmatprep.subr.mxu0 %v4559_v18  ;;  %v1034_v18 = vrot.slane %v1025_v2, %v7360_v10 }
 0x3cb   :  { %1639 = vmatpush1.msra.mxu1 %v4568_v21  ;;  %1710 = vmatpush1.msra.mxu0 %v4573_v22  ;;  %v1042_v21 = vrot.slane %v1025_v2, %v7359_v11 }
 0x3cc   :  { %1640 = vmatprep.subr.mxu1 %v4580_v23  ;;  %1711 = vmatprep.subr.mxu0 %v4585_v24 }
 0x3cd   :  { %1641 = vmatpush1.msra.mxu1 %v4592_v26  ;;  %1712 = vmatpush1.msra.mxu0 %v4597_v27 }
 0x3ce   :  { %1642 = vmatprep.subr.mxu1 %v4606_v0  ;;  %1713 = vmatprep.subr.mxu0 %v4611_v28 }
 0x3cf   :  { %1643 = vmatpush1.msra.mxu1 %v4620_v30  ;;  %1714 = vmatpush1.msra.mxu0 %v4625_v31 }
 0x3d0   :  { %1644 = vmatprep.subr.mxu1 %v4632_v32  ;;  %1715 = vmatprep.subr.mxu0 %v4637_v3 }
 0x3d1   :  { %1645 = vmatpush1.msra.mxu1 %v4644_v33  ;;  %1716 = vmatpush1.msra.mxu0 %v4649_v34 }
 0x3d2   :  { %1646 = vmatprep.subr.mxu1 %v4656_v35  ;;  %1717 = vmatprep.subr.mxu0 %v4661_v36 }
 0x3d3   :  { %1647 = vmatpush1.msra.mxu1 %v4668_v39  ;;  %1718 = vmatpush1.msra.mxu0 %v4673_v40 }
 0x3d4   :  { %1648 = vmatprep.subr.mxu1 %v4680_v41  ;;  %1719 = vmatprep.subr.mxu0 %v4685_v42 }
 0x3d5   :  { %1649 = vmatpush1.msra.mxu1 %v4692_v43  ;;  %1720 = vmatpush1.msra.mxu0 %v4697_v44 }
 0x3d6   :  { %1650 = vmatprep.subr.mxu1 %v4704_v45  ;;  %1721 = vmatprep.subr.mxu0 %v4709_v46 }
 0x3d7   :  { %1651 = vmatpush1.msra.mxu1 %v4716_v47  ;;  %1722 = vmatpush1.msra.mxu0 %v4721_v48 }
 0x3d8   :  { %1652 = vmatprep.subr.mxu1 %v4728_v49  ;;  %1723 = vmatprep.subr.mxu0 %v4733_v50 }
 0x3d9   :  { %1653 = vmatpush1.msra.mxu1 %v4740_v51  ;;  %1724 = vmatpush1.msra.mxu0 %v4745_v52 }
 0x3da   :  { %1654 = vmatprep.subr.mxu1 %v4752_v53  ;;  %1725 = vmatprep.subr.mxu0 %v4757_v54 }
 0x3db   :  { %1655 = vmatpush1.msra.mxu1 %v4764_v55  ;;  %1726 = vmatpush1.msra.mxu0 %v4769_v58 }
 0x3dc   :  { %1656 = vmatprep.subr.mxu1 %v4776_v61  ;;  %1727 = vmatprep.subr.mxu0 %v4781_v62 }
 0x3dd   :  { %1657 = vmatpush1.msra.mxu1 %v4788_v5  ;;  %1728 = vmatpush1.msra.mxu0 %v7583_v37 }
 0x3de   :  { %1658 = vmatprep.subr.mxu1 %v4800_v8  ;;  %1729 = vmatprep.subr.mxu0 %v4805_v13 }
 0x3df   :  { %1659 = vmatpush1.msra.mxu1 %v4812_v14  ;;  %1730 = vmatpush1.msra.mxu0 %v4817_v19 }
 0x3e0   :  { %1660 = vmatprep.subr.mxu1 %v4824_v20  ;;  %1731 = vmatprep.subr.mxu0 %v4829_v25 }
 0x3e1   :  { %1661 = vmatpush1.msra.mxu1 %v4836_v29  ;;  %1732 = vmatpush1.msra.mxu0 %v4843_v7 }
 0x3e2   :  { %1694 = vmatprep.mubr.f32.mxu1 %v4348_v6  ;;  %1765 = vmatprep.mubr.f32.mxu0 %v4348_v6  ;;  %v7361_v6 = vsub.s32 0, %v4931_v59 }
 0x3e3   :  { %1821 = vmatprep.subr.mxu1 %v4922_v38  ;;  %1892 = vmatprep.subr.mxu0 %v4927_v56 }
 0x3e4   :  { %v1030_v12 = vrot.slane %v1025_v2, %v7361_v6 }
 0x45a   :  { %v1125_v60 = vpop.f32.mrf.mxu1  ;;  %v1214_v63 = vpop.f32.mrf.mxu0 }
 0x45c   :  { %v1127_v4 = vpop.f32.mrf.mxu1  ;;  %v1216_v9 = vpop.f32.mrf.mxu0 }
 0x45d   :  { %v1128_v6 = vadd.f32 %v1127_v4, %v1034_v18 }
 0x460   :  { %v1131_v16 = vpop.f32.mrf.mxu1  ;;  %v1220_v17 = vpop.f32.mrf.mxu0 }
 0x461   :  { %v4948_v22 = vadd.f32 %v1131_v16, %v1030_v12  ;;  %v4950_v23 = vadd.f32 %v1220_v17, %v1038_v15 }
 0x462   :  { %v1133_v24 = vpop.f32.mrf.mxu1  ;;  %v1222_v26 = vpop.f32.mrf.mxu0 }
 0x463   :  { %v4952_v27 = vadd.f32 %v1133_v24, %v1034_v18  ;;  %v4954_v0 = vadd.f32 %v1222_v26, %v1042_v21 }
 0x466   :  { %v1137_v28 = vpop.f32.mrf.mxu1  ;;  %v1226_v30 = vpop.f32.mrf.mxu0 }
 0x467   :  { %v4956_v31 = vadd.f32 %v1137_v28, %v1030_v12  ;;  %v4958_v32 = vadd.f32 %v1226_v30, %v1038_v15  ;;  %v1126_v30 = vadd.f32 %v1125_v60, %v1030_v12 }
 0x468   :  { %v1139_v3 = vpop.f32.mrf.mxu1  ;;  %v1228_v33 = vpop.f32.mrf.mxu0 }
 0x469   :  { %7585 = vst [vmem:[#allocation6_spill] sm:$0xff] %v4956_v31  ;;  %7586 = vst [vmem:[#allocation7_spill] sm:$0xff] %v4958_v32  ;;  %v4960_v34 = vadd.f32 %v1139_v3, %v1034_v18  ;;  %v4962_v57 = vadd.f32 %v1228_v33, %v1042_v21 }
 0x46b   :  { %7587 = vst [vmem:[#allocation8_spill] sm:$0xff] %v4960_v34  ;;  %7588 = vst [vmem:[#allocation9_spill] sm:$0xff] %v4962_v57 }
 0x46c   :  { %v1143_v2 = vpop.f32.mrf.mxu1  ;;  %v1232_v16 = vpop.f32.mrf.mxu0 }
 0x46d   :  { %v4964_v17 = vadd.f32 %v1143_v2, %v1030_v12  ;;  %v4966_v24 = vadd.f32 %v1232_v16, %v1038_v15  ;;  %v1217_v16 = vadd.f32 %v1216_v9, %v1042_v21 }
 0x46e   :  { %v1145_v26 = vpop.f32.mrf.mxu1  ;;  %v1234_v1 = vpop.f32.mrf.mxu0 }
 0x46f   :  { %7589 = vst [vmem:[#allocation10_spill] sm:$0xff] %v4964_v17  ;;  %7590 = vst [vmem:[#allocation11_spill] sm:$0xff] %v4966_v24  ;;  %v4968_v11 = vadd.f32 %v1145_v26, %v1034_v18  ;;  %v4970_v28 = vadd.f32 %v1234_v1, %v1042_v21  ;;  %v1215_v17 = vadd.f32 %v1214_v63, %v1038_v15 }
 0x471   :  { %7591 = vst [vmem:[#allocation12_spill] sm:$0xff] %v4968_v11  ;;  %7592 = vst [vmem:[#allocation13_spill] sm:$0xff] %v4970_v28 }
 0x481   :  { %v1519_v10 = vpop.f32.mrf.mxu1  ;;  %v1590_v57 = vpop.f32.mrf.mxu0 }
 0x482   :  { %v1595_v32 = vadd.f32 %v1519_v10, %v1126_v30  ;;  %v1597_v11 = vadd.f32 %v1590_v57, %v1215_v17  ;;  %v4995_v57 = vld [vmem:[%s7343_s10 + $0x1d8] sm:$0xff]  ;;  %v5002_v17 = vld [vmem:[%s7343_s10 + $0x1c0] sm:$0xff] }
 0x483   :  { %v1521_v3 = vpop.f32.mrf.mxu1  ;;  %v1592_v2 = vpop.f32.mrf.mxu0  ;;  %v5019_v30 = vld [vmem:[%s7343_s10 + $0x1b8] sm:$0xff] }
 0x484   :  { %v3158_v34 = vmul.f32 -1.442695, %v1595_v32  ;;  %v1596_v33 = vadd.f32 %v1521_v3, %v1128_v6  ;;  %v1598_v24 = vadd.f32 %v1592_v2, %v1217_v16  ;;  %v5026_v3 = vld [vmem:[%s7343_s10 + $0x1a0] sm:$0xff]  ;;  %v5038_v2 = vld [vmem:[%s7343_s10 + $0x188] sm:$0xff]  ;;  %v5043_v16 = vld [vmem:[%s7343_s10 + $0x198] sm:$0xff] }
 0x486   :  { %3440 = vpow2.f32 %v3158_v34  ;;  %v3159_v31 = vmul.f32 -1.442695, %v1596_v33  ;;  %v3160_v59 = vmul.f32 -1.442695, %v1598_v24  ;;  %v4990_v34 = vld [vmem:[%s7343_s10 + $0x1c8] sm:$0xff]  ;;  %v5007_v24 = vld [vmem:[%s7343_s10 + $0x1d0] sm:$0xff] }
 0x487   :  { %v5031_v33 = vld [vmem:[%s7343_s10 + $0x1b0] sm:$0xff] }
 0x488   :  { %3442 = vpow2.f32 %v3159_v31 }
 0x489   :  { %3444 = vpow2.f32 %v3160_v59  ;;  %v4980_v59 = vld [vmem:[%s7343_s10 + $0x1e0] sm:$0xff] }
 0x493   :  { %v3441_v26 = vpop.eup %3440 }
 0x494   :  { %v1602_v1 = vadd.f32 1.0, %v3441_v26  ;;  %v5050_v26 = vld [vmem:[%s7343_s10 + $0x180] sm:$0xff] }
 0x495   :  { %v3443_v28 = vpop.eup %3442 }
 0x496   :  { %3446 = vrcp.f32 %v1602_v1  ;;  %v1608_v60 = vadd.f32 1.0, %v3443_v28  ;;  %v3445_v4 = vpop.eup %3444  ;;  %v5014_v28 = vld [vmem:[%s7343_s10 + $0x1a8] sm:$0xff]  ;;  %v5055_v1 = vld [vmem:[%s7343_s10 + $0x190] sm:$0xff] }
 0x497   :  { %3448 = vtanh.f32 %v1597_v11  ;;  %v1615_v18 = vadd.f32 1.0, %v3445_v4  ;;  %v4985_v11 = vld [vmem:[%s7343_s10 + $0x1f0] sm:$0xff]  ;;  %v5067_v4 = vld [vmem:[%s7343_s10 + $0x178] sm:$0xff] }
 0x498   :  { %3450 = vrcp.f32 %v1608_v60  ;;  %v5062_v60 = vld [vmem:[%s7343_s10 + $0x168] sm:$0xff] }
 0x499   :  { %3452 = vrcp.f32 %v1615_v18  ;;  %v5091_v18 = vld [vmem:[%s7343_s10 + $0x158] sm:$0xff] }
 0x49a   :  { %7596 = vst [vmem:[#allocation17_spill] sm:$0xff] %v5091_v18 }
 0x4a3   :  { %v3447_v6 = vpop.eup %3446 }
 0x4a4   :  { %v3449_v10 = vpop.eup %3448 }
 0x4a5   :  { %v3451_v12 = vpop.eup %3450  ;;  %v1619_v32 = vmul.f32 %v3449_v10, %v3447_v6  ;;  %v5074_v6 = vld [vmem:[%s7343_s10 + $0x160] sm:$0xff]  ;;  %v5079_v10 = vld [vmem:[%s7343_s10 + $0x170] sm:$0xff] }
 0x4a6   :  { %v1618_v31 = vmul.f32 0.0, %v3451_v12  ;;  %v3453_v63 = vpop.eup %3452  ;;  %7593 = vst [vmem:[#allocation14_spill] sm:$0xff] %v5074_v6  ;;  %7594 = vst [vmem:[#allocation15_spill] sm:$0xff] %v5079_v10  ;;  %v5086_v12 = vld [vmem:[%s7343_s10 + $0x148] sm:$0xff] }
 0x4a7   :  { %7595 = vst [vmem:[#allocation16_spill] sm:$0xff] %v5086_v12 }
 0x4a8   :  { %v4972_v9 = vadd.f32 %v1619_v32, %v1618_v31  ;;  %v5098_v31 = vld [vmem:[%s7343_s10 + $0x140] sm:$0xff]  ;;  %v5103_v32 = vld [vmem:[%s7343_s10 + $0x150] sm:$0xff] }
 0x4a9   :  { %7597 = vst [vmem:[#allocation18_spill] sm:$0xff] %v5098_v31  ;;  %7598 = vst [vmem:[#allocation19_spill] sm:$0xff] %v5103_v32 }
 0x4aa   :  { %3454 = vtanh.f32 %v4972_v9 }
 0x4b7   :  { %v3455_v15 = vpop.eup %3454 }
 0x4b8   :  { %v4975_v21 = vmul.f32 %v3455_v15, %v3453_v63  ;;  %v5110_v63 = vld [vmem:[%s7343_s10 + $0x128] sm:$0xff]  ;;  %v5115_v15 = vld [vmem:[%s7343_s10 + $0x138] sm:$0xff] }
 0x4b9   :  { %7599 = vst [vmem:[#allocation20_spill] sm:$0xff] %v5110_v63  ;;  %7600 = vst [vmem:[#allocation21_spill] sm:$0xff] %v5115_v15 }
 0x4ba   :  { %1695 = vmatmul.mubr.f32.vlgmr.msra.gmra.mxu1 %v4975_v21  ;;  %1766 = vmatmul.mubr.f32.vlgmr.msra.gmra.mxu0 %v4975_v21 }
 0x4bb   :  { %1822 = vmatpush1.msra.mxu1 %v4980_v59  ;;  %1893 = vmatpush1.msra.mxu0 %v4985_v11 }
 0x4bc   :  { %1823 = vmatprep.subr.mxu1 %v4990_v34  ;;  %1894 = vmatprep.subr.mxu0 %v4995_v57 }
 0x4bd   :  { %1824 = vmatpush1.msra.mxu1 %v5002_v17  ;;  %1895 = vmatpush1.msra.mxu0 %v5007_v24 }
 0x4be   :  { %1825 = vmatprep.subr.mxu1 %v5014_v28  ;;  %1896 = vmatprep.subr.mxu0 %v5019_v30 }
 0x4bf   :  { %1826 = vmatpush1.msra.mxu1 %v5026_v3  ;;  %1897 = vmatpush1.msra.mxu0 %v5031_v33 }
 0x4c0   :  { %1827 = vmatprep.subr.mxu1 %v5038_v2  ;;  %1898 = vmatprep.subr.mxu0 %v5043_v16 }
 0x4c1   :  { %1828 = vmatpush1.msra.mxu1 %v5050_v26  ;;  %1899 = vmatpush1.msra.mxu0 %v5055_v1 }
 0x4c2   :  { %1829 = vmatprep.subr.mxu1 %v5062_v60  ;;  %1900 = vmatprep.subr.mxu0 %v5067_v4 }
 0x4c3   :  { %1830 = vmatpush1.msra.mxu1 %v5074_v6  ;;  %1901 = vmatpush1.msra.mxu0 %v5079_v10  ;;  %v5122_v6 = vld [vmem:[%s7343_s10 + $0x120] sm:$0xff]  ;;  %v5127_v10 = vld [vmem:[%s7343_s10 + $0x130] sm:$0xff] }
 0x4c4   :  { %1831 = vmatprep.subr.mxu1 %v5086_v12  ;;  %1902 = vmatprep.subr.mxu0 %v5091_v18  ;;  %7601 = vst [vmem:[#allocation22_spill] sm:$0xff] %v5122_v6  ;;  %7602 = vst [vmem:[#allocation23_spill] sm:$0xff] %v5127_v10  ;;  %v5134_v12 = vld [vmem:[%s7343_s10 + $0x108] sm:$0xff]  ;;  %v5139_v18 = vld [vmem:[%s7343_s10 + $0x118] sm:$0xff] }
 0x4c5   :  { %1832 = vmatpush1.msra.mxu1 %v5098_v31  ;;  %1903 = vmatpush1.msra.mxu0 %v5103_v32  ;;  %7603 = vst [vmem:[#allocation24_spill] sm:$0xff] %v5134_v12  ;;  %7604 = vst [vmem:[#allocation25_spill] sm:$0xff] %v5139_v18  ;;  %v5146_v31 = vld [vmem:[%s7343_s10 + $0x100] sm:$0xff]  ;;  %v5151_v32 = vld [vmem:[%s7343_s10 + $0x110] sm:$0xff] }
 0x4c6   :  { %1833 = vmatprep.subr.mxu1 %v5110_v63  ;;  %1904 = vmatprep.subr.mxu0 %v5115_v15  ;;  %7605 = vst [vmem:[#allocation26_spill] sm:$0xff] %v5146_v31  ;;  %7606 = vst [vmem:[#allocation27_spill] sm:$0xff] %v5151_v32  ;;  %v5158_v63 = vld [vmem:[%s7343_s10 + $0xe8] sm:$0xff]  ;;  %v5163_v15 = vld [vmem:[%s7343_s10 + $0xf8] sm:$0xff] }
 0x4c7   :  { %1834 = vmatpush1.msra.mxu1 %v5122_v6  ;;  %1905 = vmatpush1.msra.mxu0 %v5127_v10  ;;  %7607 = vst [vmem:[#allocation28_spill] sm:$0xff] %v5158_v63  ;;  %7608 = vst [vmem:[#allocation29_spill] sm:$0xff] %v5163_v15  ;;  %v5170_v6 = vld [vmem:[%s7343_s10 + $0xe0] sm:$0xff]  ;;  %v5175_v10 = vld [vmem:[%s7343_s10 + $0xf0] sm:$0xff] }
 0x4c8   :  { %1835 = vmatprep.subr.mxu1 %v5134_v12  ;;  %1906 = vmatprep.subr.mxu0 %v5139_v18  ;;  %7609 = vst [vmem:[#allocation30_spill] sm:$0xff] %v5170_v6  ;;  %7610 = vst [vmem:[#allocation31_spill] sm:$0xff] %v5175_v10  ;;  %v5182_v12 = vld [vmem:[%s7343_s10 + $0xc8] sm:$0xff]  ;;  %v5187_v18 = vld [vmem:[%s7343_s10 + $0xd8] sm:$0xff] }
 0x4c9   :  { %1836 = vmatpush1.msra.mxu1 %v5146_v31  ;;  %1907 = vmatpush1.msra.mxu0 %v5151_v32  ;;  %7611 = vst [vmem:[#allocation32_spill] sm:$0xff] %v5182_v12  ;;  %7612 = vst [vmem:[#allocation33_spill] sm:$0xff] %v5187_v18  ;;  %v5194_v31 = vld [vmem:[%s7343_s10 + $0xc0] sm:$0xff]  ;;  %v5199_v32 = vld [vmem:[%s7343_s10 + $0xd0] sm:$0xff] }
 0x4ca   :  { %1837 = vmatprep.subr.mxu1 %v5158_v63  ;;  %1908 = vmatprep.subr.mxu0 %v5163_v15  ;;  %7613 = vst [vmem:[#allocation34_spill] sm:$0xff] %v5194_v31  ;;  %7614 = vst [vmem:[#allocation35_spill] sm:$0xff] %v5199_v32  ;;  %v5206_v63 = vld [vmem:[%s7343_s10 + $0xa8] sm:$0xff]  ;;  %v5211_v15 = vld [vmem:[%s7343_s10 + $0xb8] sm:$0xff] }
 0x4cb   :  { %1838 = vmatpush1.msra.mxu1 %v5170_v6  ;;  %1909 = vmatpush1.msra.mxu0 %v5175_v10  ;;  %7615 = vst [vmem:[#allocation36_spill] sm:$0xff] %v5206_v63  ;;  %7616 = vst [vmem:[#allocation37_spill] sm:$0xff] %v5211_v15  ;;  %v5218_v6 = vld [vmem:[%s7343_s10 + $0xa0] sm:$0xff]  ;;  %v5223_v10 = vld [vmem:[%s7343_s10 + $0xb0] sm:$0xff] }
 0x4cc   :  { %1839 = vmatprep.subr.mxu1 %v5182_v12  ;;  %1910 = vmatprep.subr.mxu0 %v5187_v18  ;;  %7617 = vst [vmem:[#allocation38_spill] sm:$0xff] %v5218_v6  ;;  %7618 = vst [vmem:[#allocation39_spill] sm:$0xff] %v5223_v10  ;;  %v5230_v12 = vld [vmem:[%s7343_s10 + $0x88] sm:$0xff]  ;;  %v5235_v18 = vld [vmem:[%s7343_s10 + $0x98] sm:$0xff] }
 0x4cd   :  { %1840 = vmatpush1.msra.mxu1 %v5194_v31  ;;  %1911 = vmatpush1.msra.mxu0 %v5199_v32  ;;  %7619 = vst [vmem:[#allocation40_spill] sm:$0xff] %v5230_v12  ;;  %7620 = vst [vmem:[#allocation41_spill] sm:$0xff] %v5235_v18  ;;  %v5242_v31 = vld [vmem:[%s7343_s10 + $0x80] sm:$0xff]  ;;  %v5247_v32 = vld [vmem:[%s7343_s10 + $0x90] sm:$0xff] }
 0x4ce   :  { %1841 = vmatprep.subr.mxu1 %v5206_v63  ;;  %1912 = vmatprep.subr.mxu0 %v5211_v15  ;;  %7621 = vst [vmem:[#allocation42_spill] sm:$0xff] %v5242_v31  ;;  %7622 = vst [vmem:[#allocation43_spill] sm:$0xff] %v5247_v32  ;;  %v5254_v63 = vld [vmem:[%s7343_s10 + $0x68] sm:$0xff]  ;;  %v5259_v15 = vld [vmem:[%s7343_s10 + $0x78] sm:$0xff] }
 0x4cf   :  { %1842 = vmatpush1.msra.mxu1 %v5218_v6  ;;  %1913 = vmatpush1.msra.mxu0 %v5223_v10  ;;  %7623 = vst [vmem:[#allocation44_spill] sm:$0xff] %v5254_v63  ;;  %7624 = vst [vmem:[#allocation45_spill] sm:$0xff] %v5259_v15  ;;  %v5266_v6 = vld [vmem:[%s7343_s10 + $0x60] sm:$0xff]  ;;  %v5271_v10 = vld [vmem:[%s7343_s10 + $0x70] sm:$0xff] }
 0x4d0   :  { %1843 = vmatprep.subr.mxu1 %v5230_v12  ;;  %1914 = vmatprep.subr.mxu0 %v5235_v18  ;;  %7625 = vst [vmem:[#allocation46_spill] sm:$0xff] %v5266_v6  ;;  %7626 = vst [vmem:[#allocation47_spill] sm:$0xff] %v5271_v10  ;;  %v5278_v12 = vld [vmem:[%s7343_s10 + $0x48] sm:$0xff]  ;;  %v5283_v18 = vld [vmem:[%s7343_s10 + $0x58] sm:$0xff] }
 0x4d1   :  { %1844 = vmatpush1.msra.mxu1 %v5242_v31  ;;  %1915 = vmatpush1.msra.mxu0 %v5247_v32  ;;  %7627 = vst [vmem:[#allocation48_spill] sm:$0xff] %v5278_v12  ;;  %7628 = vst [vmem:[#allocation49_spill] sm:$0xff] %v5283_v18  ;;  %v5290_v31 = vld [vmem:[%s7343_s10 + $0x40] sm:$0xff]  ;;  %v5295_v32 = vld [vmem:[%s7343_s10 + $0x50] sm:$0xff] }
 0x4d2   :  { %1845 = vmatprep.subr.mxu1 %v5254_v63  ;;  %1916 = vmatprep.subr.mxu0 %v5259_v15  ;;  %7629 = vst [vmem:[#allocation50_spill] sm:$0xff] %v5290_v31  ;;  %7630 = vst [vmem:[#allocation51_spill] sm:$0xff] %v5295_v32  ;;  %v5302_v63 = vld [vmem:[%s7343_s10 + $0x28] sm:$0xff]  ;;  %v5307_v15 = vld [vmem:[%s7343_s10 + $0x38] sm:$0xff] }
 0x4d3   :  { %1846 = vmatpush1.msra.mxu1 %v5266_v6  ;;  %1917 = vmatpush1.msra.mxu0 %v5271_v10  ;;  %7631 = vst [vmem:[#allocation52_spill] sm:$0xff] %v5302_v63  ;;  %7632 = vst [vmem:[#allocation53_spill] sm:$0xff] %v5307_v15  ;;  %v5314_v6 = vld [vmem:[%s7343_s10 + $0x20] sm:$0xff]  ;;  %v5319_v10 = vld [vmem:[%s7343_s10 + $0x30] sm:$0xff] }
 0x4d4   :  { %1847 = vmatprep.subr.mxu1 %v5278_v12  ;;  %1918 = vmatprep.subr.mxu0 %v5283_v18  ;;  %7633 = vst [vmem:[#allocation54_spill] sm:$0xff] %v5314_v6  ;;  %7634 = vst [vmem:[#allocation55_spill] sm:$0xff] %v5319_v10  ;;  %v5326_v12 = vld [vmem:[%s7343_s10 + $0x8] sm:$0xff]  ;;  %v5331_v18 = vld [vmem:[%s7343_s10 + $0x18] sm:$0xff] }
 0x4d5   :  { %1848 = vmatpush1.msra.mxu1 %v5290_v31  ;;  %1919 = vmatpush1.msra.mxu0 %v5295_v32  ;;  %7635 = vst [vmem:[#allocation56_spill] sm:$0xff] %v5326_v12  ;;  %7636 = vst [vmem:[#allocation57_spill] sm:$0xff] %v5331_v18  ;;  %v5338_v31 = vld [vmem:[%s7343_s10] sm:$0xff]  ;;  %v5343_v32 = vld [vmem:[%s7343_s10 + $0x10] sm:$0xff] }
 0x4d6   :  { %1849 = vmatprep.subr.mxu1 %v5302_v63  ;;  %1920 = vmatprep.subr.mxu0 %v5307_v15  ;;  %7637 = vst [vmem:[#allocation58_spill] sm:$0xff] %v5338_v31  ;;  %7638 = vst [vmem:[#allocation59_spill] sm:$0xff] %v5343_v32  ;;  %v5350_v63 = vld [vmem:[%s7343_s10 + $0x3e8] sm:$0xff]  ;;  %v5355_v15 = vld [vmem:[%s7343_s10 + $0x3f8] sm:$0xff] }
 0x4d7   :  { %1850 = vmatpush1.msra.mxu1 %v5314_v6  ;;  %1921 = vmatpush1.msra.mxu0 %v5319_v10  ;;  %7639 = vst [vmem:[#allocation60_spill] sm:$0xff] %v5350_v63  ;;  %7640 = vst [vmem:[#allocation61_spill] sm:$0xff] %v5355_v15  ;;  %v5362_v6 = vld [vmem:[%s7343_s10 + $0x3e0] sm:$0xff]  ;;  %v5367_v10 = vld [vmem:[%s7343_s10 + $0x3f0] sm:$0xff] }
 0x4d8   :  { %1851 = vmatprep.subr.mxu1 %v5326_v12  ;;  %1922 = vmatprep.subr.mxu0 %v5331_v18  ;;  %7641 = vst [vmem:[#allocation62_spill] sm:$0xff] %v5362_v6  ;;  %7642 = vst [vmem:[#allocation63_spill] sm:$0xff] %v5367_v10  ;;  %v5374_v12 = vld [vmem:[%s7343_s10 + $0x3c8] sm:$0xff]  ;;  %v5379_v18 = vld [vmem:[%s7343_s10 + $0x3d8] sm:$0xff] }
 0x4d9   :  { %1852 = vmatpush1.msra.mxu1 %v5338_v31  ;;  %1923 = vmatpush1.msra.mxu0 %v5343_v32  ;;  %7643 = vst [vmem:[#allocation64_spill] sm:$0xff] %v5374_v12  ;;  %7644 = vst [vmem:[#allocation65_spill] sm:$0xff] %v5379_v18  ;;  %v5386_v31 = vld [vmem:[%s7343_s10 + $0x3c0] sm:$0xff]  ;;  %v5391_v32 = vld [vmem:[%s7343_s10 + $0x3d0] sm:$0xff] }
 0x4da   :  { %1853 = vmatprep.subr.mxu1 %v5350_v63  ;;  %1924 = vmatprep.subr.mxu0 %v5355_v15  ;;  %7645 = vst [vmem:[#allocation66_spill] sm:$0xff] %v5386_v31  ;;  %7646 = vst [vmem:[#allocation67_spill] sm:$0xff] %v5391_v32  ;;  %v5398_v63 = vld [vmem:[%s7343_s10 + $0x3a8] sm:$0xff]  ;;  %v5403_v15 = vld [vmem:[%s7343_s10 + $0x3b8] sm:$0xff] }
 0x4db   :  { %1854 = vmatpush2.msra.mxu1 %v5362_v6  ;;  %1925 = vmatpush2.msra.mxu0 %v5367_v10  ;;  %7647 = vst [vmem:[#allocation68_spill] sm:$0xff] %v5398_v63  ;;  %7648 = vst [vmem:[#allocation69_spill] sm:$0xff] %v5403_v15  ;;  %v5410_v6 = vld [vmem:[%s7343_s10 + $0x3a0] sm:$0xff]  ;;  %v5415_v10 = vld [vmem:[%s7343_s10 + $0x3b0] sm:$0xff] }
 0x4dc   :  { %1855 = vmatprep.subr.mxu1 %v5374_v12  ;;  %1926 = vmatprep.subr.mxu0 %v5379_v18  ;;  %7649 = vst [vmem:[#allocation70_spill] sm:$0xff] %v5410_v6  ;;  %7650 = vst [vmem:[#allocation71_spill] sm:$0xff] %v5415_v10  ;;  %v5422_v12 = vld [vmem:[%s7343_s10 + $0x388] sm:$0xff]  ;;  %v5427_v18 = vld [vmem:[%s7343_s10 + $0x398] sm:$0xff] }
 0x4dd   :  { %1856 = vmatpush2.msra.mxu1 %v5386_v31  ;;  %1927 = vmatpush2.msra.mxu0 %v5391_v32  ;;  %7651 = vst [vmem:[#allocation72_spill] sm:$0xff] %v5422_v12  ;;  %7652 = vst [vmem:[#allocation73_spill] sm:$0xff] %v5427_v18  ;;  %v5434_v31 = vld [vmem:[%s7343_s10 + $0x380] sm:$0xff]  ;;  %v5439_v32 = vld [vmem:[%s7343_s10 + $0x390] sm:$0xff] }
 0x4de   :  { %1857 = vmatprep.subr.mxu1 %v5398_v63  ;;  %1928 = vmatprep.subr.mxu0 %v5403_v15  ;;  %7653 = vst [vmem:[#allocation74_spill] sm:$0xff] %v5434_v31  ;;  %7654 = vst [vmem:[#allocation75_spill] sm:$0xff] %v5439_v32  ;;  %v5446_v63 = vld [vmem:[%s7343_s10 + $0x368] sm:$0xff]  ;;  %v5451_v15 = vld [vmem:[%s7343_s10 + $0x378] sm:$0xff] }
 0x4df   :  { %1858 = vmatpush2.msra.mxu1 %v5410_v6  ;;  %1929 = vmatpush2.msra.mxu0 %v5415_v10  ;;  %7655 = vst [vmem:[#allocation76_spill] sm:$0xff] %v5446_v63  ;;  %7656 = vst [vmem:[#allocation77_spill] sm:$0xff] %v5451_v15  ;;  %v5458_v6 = vld [vmem:[%s7343_s10 + $0x360] sm:$0xff]  ;;  %v5463_v10 = vld [vmem:[%s7343_s10 + $0x370] sm:$0xff] }
 0x4e0   :  { %1859 = vmatprep.subr.mxu1 %v5422_v12  ;;  %1930 = vmatprep.subr.mxu0 %v5427_v18  ;;  %7657 = vst [vmem:[#allocation78_spill] sm:$0xff] %v5458_v6  ;;  %7658 = vst [vmem:[#allocation79_spill] sm:$0xff] %v5463_v10  ;;  %v5470_v12 = vld [vmem:[%s7343_s10 + $0x348] sm:$0xff]  ;;  %v5475_v18 = vld [vmem:[%s7343_s10 + $0x358] sm:$0xff] }
 0x4e1   :  { %1860 = vmatpush2.msra.mxu1 %v5434_v31  ;;  %1931 = vmatpush2.msra.mxu0 %v5439_v32  ;;  %7659 = vst [vmem:[#allocation80_spill] sm:$0xff] %v5470_v12  ;;  %7660 = vst [vmem:[#allocation81_spill] sm:$0xff] %v5475_v18  ;;  %v5482_v31 = vld [vmem:[%s7343_s10 + $0x340] sm:$0xff]  ;;  %v5487_v32 = vld [vmem:[%s7343_s10 + $0x350] sm:$0xff] }
 0x4e2   :  { %1861 = vmatprep.subr.mxu1 %v5446_v63  ;;  %1932 = vmatprep.subr.mxu0 %v5451_v15  ;;  %7661 = vst [vmem:[#allocation82_spill] sm:$0xff] %v5482_v31  ;;  %7662 = vst [vmem:[#allocation83_spill] sm:$0xff] %v5487_v32  ;;  %v5494_v63 = vld [vmem:[%s7343_s10 + $0x328] sm:$0xff]  ;;  %v5499_v15 = vld [vmem:[%s7343_s10 + $0x338] sm:$0xff] }
 0x4e3   :  { %1862 = vmatpush2.msra.mxu1 %v5458_v6  ;;  %1933 = vmatpush2.msra.mxu0 %v5463_v10  ;;  %7663 = vst [vmem:[#allocation84_spill] sm:$0xff] %v5494_v63  ;;  %7664 = vst [vmem:[#allocation85_spill] sm:$0xff] %v5499_v15  ;;  %v5506_v6 = vld [vmem:[%s7343_s10 + $0x320] sm:$0xff]  ;;  %v5511_v10 = vld [vmem:[%s7343_s10 + $0x330] sm:$0xff] }
 0x4e4   :  { %1863 = vmatprep.subr.mxu1 %v5470_v12  ;;  %1934 = vmatprep.subr.mxu0 %v5475_v18  ;;  %7665 = vst [vmem:[#allocation86_spill] sm:$0xff] %v5506_v6  ;;  %7666 = vst [vmem:[#allocation87_spill] sm:$0xff] %v5511_v10  ;;  %v5518_v12 = vld [vmem:[%s7343_s10 + $0x308] sm:$0xff]  ;;  %v5523_v18 = vld [vmem:[%s7343_s10 + $0x318] sm:$0xff] }
 0x4e5   :  { %1864 = vmatpush2.msra.mxu1 %v5482_v31  ;;  %1935 = vmatpush2.msra.mxu0 %v5487_v32  ;;  %7667 = vst [vmem:[#allocation88_spill] sm:$0xff] %v5518_v12  ;;  %7668 = vst [vmem:[#allocation89_spill] sm:$0xff] %v5523_v18  ;;  %v5530_v31 = vld [vmem:[%s7343_s10 + $0x300] sm:$0xff]  ;;  %v5535_v32 = vld [vmem:[%s7343_s10 + $0x310] sm:$0xff] }
 0x4e6   :  { %1865 = vmatprep.subr.mxu1 %v5494_v63  ;;  %1936 = vmatprep.subr.mxu0 %v5499_v15  ;;  %7669 = vst [vmem:[#allocation90_spill] sm:$0xff] %v5530_v31  ;;  %7670 = vst [vmem:[#allocation91_spill] sm:$0xff] %v5535_v32  ;;  %v5542_v63 = vld [vmem:[%s7343_s10 + $0x2e8] sm:$0xff]  ;;  %v5547_v15 = vld [vmem:[%s7343_s10 + $0x2f8] sm:$0xff] }
 0x4e7   :  { %1866 = vmatpush2.msra.mxu1 %v5506_v6  ;;  %1937 = vmatpush2.msra.mxu0 %v5511_v10  ;;  %7671 = vst [vmem:[#allocation92_spill] sm:$0xff] %v5542_v63  ;;  %7672 = vst [vmem:[#allocation93_spill] sm:$0xff] %v5547_v15  ;;  %v5554_v6 = vld [vmem:[%s7343_s10 + $0x2e0] sm:$0xff]  ;;  %v5559_v10 = vld [vmem:[%s7343_s10 + $0x2f0] sm:$0xff] }
 0x4e8   :  { %1867 = vmatprep.subr.mxu1 %v5518_v12  ;;  %1938 = vmatprep.subr.mxu0 %v5523_v18  ;;  %7673 = vst [vmem:[#allocation94_spill] sm:$0xff] %v5554_v6  ;;  %7674 = vst [vmem:[#allocation95_spill] sm:$0xff] %v5559_v10  ;;  %v5566_v12 = vld [vmem:[%s7343_s10 + $0x2c8] sm:$0xff]  ;;  %v5571_v18 = vld [vmem:[%s7343_s10 + $0x2d8] sm:$0xff] }
 0x4e9   :  { %1868 = vmatpush2.msra.mxu1 %v5530_v31  ;;  %1939 = vmatpush2.msra.mxu0 %v5535_v32  ;;  %7675 = vst [vmem:[#allocation96_spill] sm:$0xff] %v5566_v12  ;;  %7676 = vst [vmem:[#allocation97_spill] sm:$0xff] %v5571_v18  ;;  %v5578_v31 = vld [vmem:[%s7343_s10 + $0x2c0] sm:$0xff]  ;;  %v5583_v32 = vld [vmem:[%s7343_s10 + $0x2d0] sm:$0xff] }
 0x4ea   :  { %1869 = vmatprep.subr.mxu1 %v5542_v63  ;;  %1940 = vmatprep.subr.mxu0 %v5547_v15  ;;  %7677 = vst [vmem:[#allocation98_spill] sm:$0xff] %v5578_v31  ;;  %7678 = vst [vmem:[#allocation99_spill] sm:$0xff] %v5583_v32  ;;  %v5590_v63 = vld [vmem:[%s7343_s10 + $0x2a8] sm:$0xff]  ;;  %v5595_v15 = vld [vmem:[%s7343_s10 + $0x2b8] sm:$0xff] }
 0x4eb   :  { %1870 = vmatpush2.msra.mxu1 %v5554_v6  ;;  %1941 = vmatpush2.msra.mxu0 %v5559_v10  ;;  %7679 = vst [vmem:[#allocation100_spill] sm:$0xff] %v5590_v63  ;;  %7680 = vst [vmem:[#allocation101_spill] sm:$0xff] %v5595_v15  ;;  %v5602_v6 = vld [vmem:[%s7343_s10 + $0x2a0] sm:$0xff]  ;;  %v5607_v10 = vld [vmem:[%s7343_s10 + $0x2b0] sm:$0xff] }
 0x4ec   :  { %1871 = vmatprep.subr.mxu1 %v5566_v12  ;;  %1942 = vmatprep.subr.mxu0 %v5571_v18  ;;  %7681 = vst [vmem:[#allocation102_spill] sm:$0xff] %v5602_v6  ;;  %7682 = vst [vmem:[#allocation103_spill] sm:$0xff] %v5607_v10  ;;  %v5614_v12 = vld [vmem:[%s7343_s10 + $0x288] sm:$0xff]  ;;  %v5619_v18 = vld [vmem:[%s7343_s10 + $0x298] sm:$0xff] }
 0x4ed   :  { %1872 = vmatpush2.msra.mxu1 %v5578_v31  ;;  %1943 = vmatpush2.msra.mxu0 %v5583_v32  ;;  %7683 = vst [vmem:[#allocation104_spill] sm:$0xff] %v5614_v12  ;;  %7684 = vst [vmem:[#allocation105_spill] sm:$0xff] %v5619_v18  ;;  %v5626_v31 = vld [vmem:[%s7343_s10 + $0x280] sm:$0xff]  ;;  %v5631_v32 = vld [vmem:[%s7343_s10 + $0x290] sm:$0xff] }
 0x4ee   :  { %1873 = vmatprep.subr.mxu1 %v5590_v63  ;;  %1944 = vmatprep.subr.mxu0 %v5595_v15  ;;  %7685 = vst [vmem:[#allocation106_spill] sm:$0xff] %v5626_v31  ;;  %7686 = vst [vmem:[#allocation107_spill] sm:$0xff] %v5631_v32  ;;  %v5638_v63 = vld [vmem:[%s7343_s10 + $0x268] sm:$0xff]  ;;  %v5643_v15 = vld [vmem:[%s7343_s10 + $0x278] sm:$0xff] }
 0x4ef   :  { %1874 = vmatpush2.msra.mxu1 %v5602_v6  ;;  %1945 = vmatpush2.msra.mxu0 %v5607_v10  ;;  %7687 = vst [vmem:[#allocation108_spill] sm:$0xff] %v5638_v63  ;;  %7688 = vst [vmem:[#allocation109_spill] sm:$0xff] %v5643_v15  ;;  %v5650_v6 = vld [vmem:[%s7343_s10 + $0x260] sm:$0xff]  ;;  %v5655_v10 = vld [vmem:[%s7343_s10 + $0x270] sm:$0xff] }
 0x4f0   :  { %1875 = vmatprep.subr.mxu1 %v5614_v12  ;;  %1946 = vmatprep.subr.mxu0 %v5619_v18  ;;  %7689 = vst [vmem:[#allocation110_spill] sm:$0xff] %v5650_v6  ;;  %7690 = vst [vmem:[#allocation111_spill] sm:$0xff] %v5655_v10  ;;  %v5662_v12 = vld [vmem:[%s7343_s10 + $0x248] sm:$0xff]  ;;  %v5667_v18 = vld [vmem:[%s7343_s10 + $0x258] sm:$0xff] }
 0x4f1   :  { %1876 = vmatpush2.msra.mxu1 %v5626_v31  ;;  %1947 = vmatpush2.msra.mxu0 %v5631_v32  ;;  %7691 = vst [vmem:[#allocation112_spill] sm:$0xff] %v5662_v12  ;;  %7692 = vst [vmem:[#allocation113_spill] sm:$0xff] %v5667_v18  ;;  %v5674_v31 = vld [vmem:[%s7343_s10 + $0x240] sm:$0xff]  ;;  %v5679_v32 = vld [vmem:[%s7343_s10 + $0x250] sm:$0xff] }
 0x4f2   :  { %1877 = vmatprep.subr.mxu1 %v5638_v63  ;;  %1948 = vmatprep.subr.mxu0 %v5643_v15  ;;  %7693 = vst [vmem:[#allocation114_spill] sm:$0xff] %v5674_v31  ;;  %7694 = vst [vmem:[#allocation115_spill] sm:$0xff] %v5679_v32  ;;  %v5686_v63 = vld [vmem:[%s7343_s10 + $0x228] sm:$0xff]  ;;  %v5691_v15 = vld [vmem:[%s7343_s10 + $0x238] sm:$0xff] }
 0x4f3   :  { %1878 = vmatpush2.msra.mxu1 %v5650_v6  ;;  %1949 = vmatpush2.msra.mxu0 %v5655_v10  ;;  %7695 = vst [vmem:[#allocation116_spill] sm:$0xff] %v5691_v15  ;;  %v5698_v6 = vld [vmem:[%s7343_s10 + $0x220] sm:$0xff]  ;;  %v5703_v10 = vld [vmem:[%s7343_s10 + $0x230] sm:$0xff] }
 0x4f4   :  { %1879 = vmatprep.subr.mxu1 %v5662_v12  ;;  %1950 = vmatprep.subr.mxu0 %v5667_v18  ;;  %v5710_v12 = vld [vmem:[%s7343_s10 + $0x208] sm:$0xff]  ;;  %v5715_v18 = vld [vmem:[%s7343_s10 + $0x218] sm:$0xff] }
 0x4f5   :  { %1880 = vmatpush2.msra.mxu1 %v5674_v31  ;;  %1951 = vmatpush2.msra.mxu0 %v5679_v32  ;;  %7696 = vst [vmem:[#allocation117_spill] sm:$0xff] %v5710_v12  ;;  %v5722_v31 = vld [vmem:[%s7343_s10 + $0x200] sm:$0xff]  ;;  %v5729_v32 = vld [vmem:[%s7343_s10 + $0x210] sm:$0xff] }
 0x4f6   :  { %1881 = vmatprep.subr.mxu1 %v5686_v63  ;;  %1952 = vmatprep.subr.mxu0 %v5691_v15  ;;  %7697 = vst [vmem:[#allocation118_spill] sm:$0xff] %v5722_v31  ;;  %7698 = vst [vmem:[#allocation119_spill] sm:$0xff] %v5729_v32  ;;  %v5734_v15 = vld [vmem:[#allocation2 + $0x70] sm:$0xff] }
 0x4f7   :  { %1882 = vmatpush2.msra.mxu1 %v5698_v6  ;;  %1953 = vmatpush2.msra.mxu0 %v5703_v10 }
 0x4f8   :  { %1883 = vmatprep.subr.mxu1 %v5710_v12  ;;  %1954 = vmatprep.subr.mxu0 %v5715_v18  ;;  %v5744_v12 = vld [vmem:[%s7341_s8 + $0x1e8] sm:$0xff] }
 0x4f9   :  { %1884 = vmatpush2.msra.mxu1 %v5722_v31  ;;  %1885 = vmatprep.mubr.f32.mxu1 %v5734_v15  ;;  %7699 = vst [vmem:[#allocation120_spill] sm:$0xff] %v5744_v12  ;;  %v5750_v31 = vld [vmem:[%s7341_s8 + $0x1f8] sm:$0xff] }
 0x4fa   :  { %1955 = vmatpush2.msra.mxu0 %v5729_v32  ;;  %1956 = vmatprep.mubr.f32.mxu0 %v5734_v15  ;;  %7700 = vst [vmem:[#allocation121_spill] sm:$0xff] %v5750_v31  ;;  %v5756_v32 = vld [vmem:[%s7341_s8 + $0x1e0] sm:$0xff] }
 0x4fb   :  { %1886 = vmatmul.mubr.f32.vlgmr.msra.gmra.mxu1 %v4975_v21  ;;  %1957 = vmatmul.mubr.f32.vlgmr.msra.gmra.mxu0 %v4975_v21  ;;  %7701 = vst [vmem:[#allocation122_spill] sm:$0xff] %v5756_v32  ;;  %v5762_v21 = vld [vmem:[%s7341_s8 + $0x1f0] sm:$0xff] }
 0x4fc   :  { %1994 = vmatprep.subr.mxu1 %v5744_v12  ;;  %2065 = vmatprep.subr.mxu0 %v5750_v31  ;;  %7702 = vst [vmem:[#allocation123_spill] sm:$0xff] %v5762_v21  ;;  %v5768_v12 = vld [vmem:[%s7341_s8 + $0x1c8] sm:$0xff]  ;;  %v5774_v31 = vld [vmem:[%s7341_s8 + $0x1d8] sm:$0xff] }
 0x4fd   :  { %1995 = vmatpush1.msra.mxu1 %v5756_v32  ;;  %2066 = vmatpush1.msra.mxu0 %v5762_v21  ;;  %7703 = vst [vmem:[#allocation124_spill] sm:$0xff] %v5768_v12  ;;  %7704 = vst [vmem:[#allocation125_spill] sm:$0xff] %v5774_v31  ;;  %v5780_v32 = vld [vmem:[%s7341_s8 + $0x1c0] sm:$0xff]  ;;  %v5786_v21 = vld [vmem:[%s7341_s8 + $0x1d0] sm:$0xff] }
 0x4fe   :  { %1996 = vmatprep.subr.mxu1 %v5768_v12  ;;  %2067 = vmatprep.subr.mxu0 %v5774_v31  ;;  %7705 = vst [vmem:[#allocation126_spill] sm:$0xff] %v5780_v32  ;;  %7706 = vst [vmem:[#allocation127_spill] sm:$0xff] %v5786_v21  ;;  %v5792_v12 = vld [vmem:[%s7341_s8 + $0x1a8] sm:$0xff]  ;;  %v5798_v31 = vld [vmem:[%s7341_s8 + $0x1b8] sm:$0xff] }
 0x4ff   :  { %1997 = vmatpush1.msra.mxu1 %v5780_v32  ;;  %2068 = vmatpush1.msra.mxu0 %v5786_v21  ;;  %7707 = vst [vmem:[#allocation128_spill] sm:$0xff] %v5792_v12  ;;  %7708 = vst [vmem:[#allocation129_spill] sm:$0xff] %v5798_v31  ;;  %v5804_v32 = vld [vmem:[%s7341_s8 + $0x1a0] sm:$0xff]  ;;  %v5810_v21 = vld [vmem:[%s7341_s8 + $0x1b0] sm:$0xff] }
 0x500   :  { %1998 = vmatprep.subr.mxu1 %v5792_v12  ;;  %2069 = vmatprep.subr.mxu0 %v5798_v31  ;;  %7709 = vst [vmem:[#allocation130_spill] sm:$0xff] %v5804_v32  ;;  %7710 = vst [vmem:[#allocation131_spill] sm:$0xff] %v5810_v21  ;;  %v5816_v12 = vld [vmem:[%s7341_s8 + $0x188] sm:$0xff]  ;;  %v5822_v31 = vld [vmem:[%s7341_s8 + $0x198] sm:$0xff] }
 0x501   :  { %1999 = vmatpush1.msra.mxu1 %v5804_v32  ;;  %2070 = vmatpush1.msra.mxu0 %v5810_v21  ;;  %7711 = vst [vmem:[#allocation132_spill] sm:$0xff] %v5816_v12  ;;  %7712 = vst [vmem:[#allocation133_spill] sm:$0xff] %v5822_v31  ;;  %v5828_v32 = vld [vmem:[%s7341_s8 + $0x180] sm:$0xff]  ;;  %v5834_v21 = vld [vmem:[%s7341_s8 + $0x190] sm:$0xff] }
 0x502   :  { %2000 = vmatprep.subr.mxu1 %v5816_v12  ;;  %2071 = vmatprep.subr.mxu0 %v5822_v31  ;;  %7713 = vst [vmem:[#allocation134_spill] sm:$0xff] %v5828_v32  ;;  %7714 = vst [vmem:[#allocation135_spill] sm:$0xff] %v5834_v21  ;;  %v5840_v12 = vld [vmem:[%s7341_s8 + $0x168] sm:$0xff]  ;;  %v5846_v31 = vld [vmem:[%s7341_s8 + $0x178] sm:$0xff] }
 0x503   :  { %2001 = vmatpush1.msra.mxu1 %v5828_v32  ;;  %2072 = vmatpush1.msra.mxu0 %v5834_v21  ;;  %7715 = vst [vmem:[#allocation136_spill] sm:$0xff] %v5840_v12  ;;  %7716 = vst [vmem:[#allocation137_spill] sm:$0xff] %v5846_v31  ;;  %v5852_v32 = vld [vmem:[%s7341_s8 + $0x160] sm:$0xff]  ;;  %v5858_v21 = vld [vmem:[%s7341_s8 + $0x170] sm:$0xff] }
 0x504   :  { %2002 = vmatprep.subr.mxu1 %v5840_v12  ;;  %2073 = vmatprep.subr.mxu0 %v5846_v31  ;;  %7717 = vst [vmem:[#allocation138_spill] sm:$0xff] %v5852_v32  ;;  %7718 = vst [vmem:[#allocation139_spill] sm:$0xff] %v5858_v21  ;;  %v5864_v12 = vld [vmem:[%s7341_s8 + $0x148] sm:$0xff]  ;;  %v5870_v31 = vld [vmem:[%s7341_s8 + $0x158] sm:$0xff] }
 0x505   :  { %2003 = vmatpush1.msra.mxu1 %v5852_v32  ;;  %2074 = vmatpush1.msra.mxu0 %v5858_v21  ;;  %7719 = vst [vmem:[#allocation140_spill] sm:$0xff] %v5864_v12  ;;  %7720 = vst [vmem:[#allocation141_spill] sm:$0xff] %v5870_v31  ;;  %v5876_v32 = vld [vmem:[%s7341_s8 + $0x140] sm:$0xff]  ;;  %v5882_v21 = vld [vmem:[%s7341_s8 + $0x150] sm:$0xff] }
 0x506   :  { %2004 = vmatprep.subr.mxu1 %v5864_v12  ;;  %2075 = vmatprep.subr.mxu0 %v5870_v31  ;;  %7721 = vst [vmem:[#allocation142_spill] sm:$0xff] %v5876_v32  ;;  %7722 = vst [vmem:[#allocation143_spill] sm:$0xff] %v5882_v21  ;;  %v5888_v12 = vld [vmem:[%s7341_s8 + $0x128] sm:$0xff]  ;;  %v5894_v31 = vld [vmem:[%s7341_s8 + $0x138] sm:$0xff] }
 0x507   :  { %2005 = vmatpush1.msra.mxu1 %v5876_v32  ;;  %2076 = vmatpush1.msra.mxu0 %v5882_v21  ;;  %7723 = vst [vmem:[#allocation144_spill] sm:$0xff] %v5888_v12  ;;  %7724 = vst [vmem:[#allocation145_spill] sm:$0xff] %v5894_v31  ;;  %v5900_v32 = vld [vmem:[%s7341_s8 + $0x120] sm:$0xff]  ;;  %v5906_v21 = vld [vmem:[%s7341_s8 + $0x130] sm:$0xff] }
 0x508   :  { %2006 = vmatprep.subr.mxu1 %v5888_v12  ;;  %2077 = vmatprep.subr.mxu0 %v5894_v31  ;;  %7725 = vst [vmem:[#allocation146_spill] sm:$0xff] %v5900_v32  ;;  %7726 = vst [vmem:[#allocation147_spill] sm:$0xff] %v5906_v21  ;;  %v5912_v12 = vld [vmem:[%s7341_s8 + $0x108] sm:$0xff]  ;;  %v5918_v31 = vld [vmem:[%s7341_s8 + $0x118] sm:$0xff] }
 0x509   :  { %2007 = vmatpush1.msra.mxu1 %v5900_v32  ;;  %2078 = vmatpush1.msra.mxu0 %v5906_v21  ;;  %v5924_v32 = vld [vmem:[%s7341_s8 + $0x100] sm:$0xff]  ;;  %v5930_v21 = vld [vmem:[%s7341_s8 + $0x110] sm:$0xff] }
 0x50a   :  { %2008 = vmatprep.subr.mxu1 %v5912_v12  ;;  %2079 = vmatprep.subr.mxu0 %v5918_v31 }
 0x50b   :  { %2009 = vmatpush1.msra.mxu1 %v5924_v32  ;;  %2080 = vmatpush1.msra.mxu0 %v5930_v21 }
 0x50c   :  { %2010 = vmatprep.subr.mxu1 %v4656_v35  ;;  %2081 = vmatprep.subr.mxu0 %v4661_v36 }
 0x50d   :  { %2011 = vmatpush1.msra.mxu1 %v4668_v39  ;;  %2082 = vmatpush1.msra.mxu0 %v4673_v40 }
 0x50e   :  { %2012 = vmatprep.subr.mxu1 %v4680_v41  ;;  %2083 = vmatprep.subr.mxu0 %v4685_v42 }
 0x50f   :  { %2013 = vmatpush1.msra.mxu1 %v4692_v43  ;;  %2084 = vmatpush1.msra.mxu0 %v4697_v44 }
 0x510   :  { %2014 = vmatprep.subr.mxu1 %v4704_v45  ;;  %2085 = vmatprep.subr.mxu0 %v4709_v46 }
 0x511   :  { %2015 = vmatpush1.msra.mxu1 %v4716_v47  ;;  %2086 = vmatpush1.msra.mxu0 %v4721_v48 }
 0x512   :  { %2016 = vmatprep.subr.mxu1 %v4728_v49  ;;  %2087 = vmatprep.subr.mxu0 %v4733_v50 }
 0x513   :  { %2017 = vmatpush1.msra.mxu1 %v4740_v51  ;;  %2088 = vmatpush1.msra.mxu0 %v4745_v52 }
 0x514   :  { %2018 = vmatprep.subr.mxu1 %v4752_v53  ;;  %2089 = vmatprep.subr.mxu0 %v4757_v54 }
 0x515   :  { %2019 = vmatpush1.msra.mxu1 %v4764_v55  ;;  %2090 = vmatpush1.msra.mxu0 %v4769_v58 }
 0x516   :  { %2020 = vmatprep.subr.mxu1 %v4776_v61  ;;  %2091 = vmatprep.subr.mxu0 %v4781_v62 }
 0x517   :  { %2021 = vmatpush1.msra.mxu1 %v4788_v5  ;;  %2092 = vmatpush1.msra.mxu0 %v7583_v37 }
 0x518   :  { %2022 = vmatprep.subr.mxu1 %v4800_v8  ;;  %2093 = vmatprep.subr.mxu0 %v4805_v13 }
 0x519   :  { %2023 = vmatpush1.msra.mxu1 %v4812_v14  ;;  %2094 = vmatpush1.msra.mxu0 %v4817_v19  ;;  %v1445_v14 = vld [vmem:[%s7345_s11] sm:$0xf]  ;;  %v7727_v19 = vld [vmem:[#allocation5_spill] sm:$0xff] }
 0x51a   :  { %2024 = vmatprep.subr.mxu1 %v4824_v20  ;;  %2095 = vmatprep.subr.mxu0 %v4829_v25  ;;  %v7728_v20 = vsub.s32 0, %v7727_v19 }
 0x51b   :  { %2025 = vmatpush1.msra.mxu1 %v4836_v29  ;;  %2058 = vmatprep.mubr.f32.mxu1 %v5734_v15  ;;  %v7730_v29 = vsub.s32 1, %v7727_v19 }
 0x51c   :  { %2096 = vmatpush1.msra.mxu0 %v4843_v7  ;;  %2129 = vmatprep.mubr.f32.mxu0 %v5734_v15  ;;  %v5996_v25 = vrot.slane %v1445_v14, %v7728_v20  ;;  %v7769_v20 = vld [vmem:[#allocation47_spill] sm:$0xff] }
 0x51d   :  { %2164 = vmatprep.subr.mxu1 %v4922_v38  ;;  %2235 = vmatprep.subr.mxu0 %v4927_v56  ;;  %v6004_v37 = vrot.slane %v1445_v14, %v7730_v29  ;;  %v7770_v29 = vld [vmem:[#allocation48_spill] sm:$0xff] }
 0x51e   :  { %7729 = vst [vmem:[#allocation5_spill] sm:$0xff] %v5996_v25 }
 0x51f   :  { %7731 = vst [vmem:[#allocation148_spill] sm:$0xff] %v6004_v37 }
 0x57a   :  { %v1696_v35 = vpop.f32.mrf.mxu1  ;;  %v1767_v42 = vpop.f32.mrf.mxu0 }
 0x57b   :  { %v1772_v36 = vadd.f32 %v1696_v35, %v4948_v22  ;;  %v1774_v46 = vadd.f32 %v1767_v42, %v4950_v23  ;;  %v7732_v22 = vld [vmem:[#allocation14_spill] sm:$0xff]  ;;  %v7733_v23 = vld [vmem:[#allocation15_spill] sm:$0xff]  ;;  %v7748_v35 = vld [vmem:[#allocation28_spill] sm:$0xff] }
 0x57c   :  { %v1698_v39 = vpop.f32.mrf.mxu1  ;;  %v1769_v44 = vpop.f32.mrf.mxu0  ;;  %v7752_v42 = vld [vmem:[#allocation32_spill] sm:$0xff] }
 0x57d   :  { %v3161_v40 = vmul.f32 -1.442695, %v1772_v36  ;;  %v1773_v41 = vadd.f32 %v1698_v39, %v4952_v27  ;;  %v1775_v45 = vadd.f32 %v1769_v44, %v4954_v0  ;;  %v7734_v0 = vld [vmem:[#allocation16_spill] sm:$0xff]  ;;  %v7749_v36 = vld [vmem:[#allocation29_spill] sm:$0xff]  ;;  %v7754_v44 = vld [vmem:[#allocation34_spill] sm:$0xff] }
 0x57f   :  { %3456 = vpow2.f32 %v3161_v40  ;;  %v3162_v43 = vmul.f32 -1.442695, %v1773_v41  ;;  %v3163_v47 = vmul.f32 -1.442695, %v1775_v45  ;;  %v7750_v40 = vld [vmem:[#allocation30_spill] sm:$0xff]  ;;  %v7751_v41 = vld [vmem:[#allocation31_spill] sm:$0xff] }
 0x580   :  { %v7755_v45 = vld [vmem:[#allocation35_spill] sm:$0xff] }
 0x581   :  { %3458 = vpow2.f32 %v3162_v43  ;;  %v7753_v43 = vld [vmem:[#allocation33_spill] sm:$0xff] }
 0x582   :  { %3460 = vtanh.f32 %v1774_v46 }
 0x583   :  { %3462 = vpow2.f32 %v3163_v47  ;;  %v7756_v47 = vld [vmem:[#allocation36_spill] sm:$0xff] }
 0x58c   :  { %v3457_v48 = vpop.eup %3456 }
 0x58d   :  { %v1779_v49 = vadd.f32 1.0, %v3457_v48  ;;  %v7757_v48 = vld [vmem:[#allocation37_spill] sm:$0xff] }
 0x58e   :  { %v3459_v50 = vpop.eup %3458 }
 0x58f   :  { %3464 = vrcp.f32 %v1779_v49  ;;  %v1785_v51 = vadd.f32 1.0, %v3459_v50  ;;  %v3461_v52 = vpop.eup %3460  ;;  %v7758_v49 = vld [vmem:[#allocation38_spill] sm:$0xff]  ;;  %v7759_v50 = vld [vmem:[#allocation39_spill] sm:$0xff] }
 0x590   :  { %v3463_v53 = vpop.eup %3462 }
 0x591   :  { %3466 = vrcp.f32 %v1785_v51  ;;  %v1792_v61 = vadd.f32 1.0, %v3463_v53  ;;  %v7760_v51 = vsub.s32 2, %v7727_v19  ;;  %v7762_v53 = vld [vmem:[#allocation40_spill] sm:$0xff] }
 0x593   :  { %3468 = vrcp.f32 %v1792_v61 }
 0x59c   :  { %v3465_v54 = vpop.eup %3464 }
 0x59d   :  { %v1796_v55 = vmul.f32 %v3465_v54, %v3461_v52  ;;  %v6043_v52 = vrot.slane %v1445_v14, %v7760_v51  ;;  %v7763_v54 = vld [vmem:[#allocation41_spill] sm:$0xff]  ;;  %v7802_v51 = vld [vmem:[#allocation80_spill] sm:$0xff] }
 0x59e   :  { %v3467_v58 = vpop.eup %3466 }
 0x59f   :  { %v1795_v62 = vmul.f32 %v3467_v58, %v4972_v9  ;;  %v7735_v9 = vld [vmem:[#allocation17_spill] sm:$0xff]  ;;  %7761 = vst [vmem:[#allocation15_spill] sm:$0xff] %v6043_v52  ;;  %v7765_v58 = vld [vmem:[#allocation43_spill] sm:$0xff] }
 0x5a0   :  { %v3469_v7 = vpop.eup %3468 }
 0x5a1   :  { %v5974_v5 = vadd.f32 %v1796_v55, %v1795_v62  ;;  %v7764_v55 = vld [vmem:[#allocation42_spill] sm:$0xff]  ;;  %v7766_v62 = vld [vmem:[#allocation44_spill] sm:$0xff] }
 0x5a3   :  { %3470 = vtanh.f32 %v5974_v5 }
 0x5b0   :  { %v3471_v8 = vpop.eup %3470 }
 0x5b1   :  { %v5977_v13 = vmul.f32 %v3471_v8, %v3469_v7  ;;  %v7767_v7 = vld [vmem:[#allocation45_spill] sm:$0xff]  ;;  %v7768_v8 = vld [vmem:[#allocation46_spill] sm:$0xff] }
 0x5b3   :  { %2059 = vmatmul.mubr.f32.vlgmr.msra.gmra.mxu1 %v5977_v13  ;;  %2130 = vmatmul.mubr.f32.vlgmr.msra.gmra.mxu0 %v5977_v13 }
 0x5b4   :  { %2165 = vmatpush1.msra.mxu1 %v4980_v59  ;;  %2236 = vmatpush1.msra.mxu0 %v4985_v11 }
 0x5b5   :  { %2166 = vmatprep.subr.mxu1 %v4990_v34  ;;  %2237 = vmatprep.subr.mxu0 %v4995_v57  ;;  %v7736_v34 = vld [vmem:[#allocation18_spill] sm:$0xff]  ;;  %v7737_v57 = vld [vmem:[#allocation19_spill] sm:$0xff] }
 0x5b6   :  { %2167 = vmatpush1.msra.mxu1 %v5002_v17  ;;  %2238 = vmatpush1.msra.mxu0 %v5007_v24  ;;  %v7738_v17 = vld [vmem:[#allocation20_spill] sm:$0xff]  ;;  %v7739_v24 = vld [vmem:[#allocation21_spill] sm:$0xff] }
 0x5b7   :  { %2168 = vmatprep.subr.mxu1 %v5014_v28  ;;  %2239 = vmatprep.subr.mxu0 %v5019_v30 }
 0x5b8   :  { %2169 = vmatpush1.msra.mxu1 %v5026_v3  ;;  %2240 = vmatpush1.msra.mxu0 %v5031_v33  ;;  %v7740_v3 = vld [vmem:[#allocation22_spill] sm:$0xff]  ;;  %v7741_v33 = vld [vmem:[#allocation23_spill] sm:$0xff] }
 0x5b9   :  { %2170 = vmatprep.subr.mxu1 %v5038_v2  ;;  %2241 = vmatprep.subr.mxu0 %v5043_v16  ;;  %v7742_v2 = vld [vmem:[#allocation24_spill] sm:$0xff]  ;;  %v7743_v16 = vld [vmem:[#allocation25_spill] sm:$0xff] }
 0x5ba   :  { %2171 = vmatpush1.msra.mxu1 %v5050_v26  ;;  %2242 = vmatpush1.msra.mxu0 %v5055_v1  ;;  %v7744_v26 = vld [vmem:[#allocation26_spill] sm:$0xff]  ;;  %v7745_v1 = vld [vmem:[#allocation27_spill] sm:$0xff] }
 0x5bb   :  { %v1887_v38 = vpop.f32.mrf.mxu1  ;;  %2172 = vmatprep.subr.mxu1 %v5062_v60  ;;  %2243 = vmatprep.subr.mxu0 %v5067_v4  ;;  %v1958_v28 = vpop.f32.mrf.mxu0  ;;  %v7746_v60 = vsub.s32 3, %v7727_v19 }
 0x5bc   :  { %v1888_v56 = vadd.f32 %v1887_v38, %v5996_v25  ;;  %2173 = vmatpush1.msra.mxu1 %v7732_v22  ;;  %2244 = vmatpush1.msra.mxu0 %v7733_v23  ;;  %v7771_v38 = vld [vmem:[#allocation49_spill] sm:$0xff]  ;;  %v7772_v22 = vld [vmem:[#allocation50_spill] sm:$0xff]  ;;  %v7773_v23 = vld [vmem:[#allocation51_spill] sm:$0xff] }
 0x5bd   :  { %v1889_v27 = vpop.f32.mrf.mxu1  ;;  %2174 = vmatprep.subr.mxu1 %v7734_v0  ;;  %2245 = vmatprep.subr.mxu0 %v7735_v9  ;;  %v6026_v4 = vrot.slane %v1445_v14, %v7746_v60  ;;  %v1960_v39 = vpop.f32.mrf.mxu0  ;;  %v1959_v14 = vadd.f32 %v1958_v28, %v6043_v52  ;;  %v7774_v0 = vld [vmem:[#allocation52_spill] sm:$0xff]  ;;  %v7775_v9 = vld [vmem:[#allocation53_spill] sm:$0xff]  ;;  %v7781_v28 = vld [vmem:[#allocation59_spill] sm:$0xff] }
 0x5be   :  { %v3164_v59 = vmul.f32 -1.442695, %v1888_v56  ;;  %v1890_v11 = vadd.f32 %v1889_v27, %v6004_v37  ;;  %2175 = vmatpush1.msra.mxu1 %v7736_v34  ;;  %2246 = vmatpush1.msra.mxu0 %v7737_v57  ;;  %v7777_v34 = vld [vmem:[#allocation55_spill] sm:$0xff]  ;;  %v7778_v57 = vld [vmem:[#allocation56_spill] sm:$0xff] }
 0x5bf   :  { %2176 = vmatprep.subr.mxu1 %v7738_v17  ;;  %2247 = vmatprep.subr.mxu0 %v7739_v24  ;;  %7747 = vst [vmem:[#allocation14_spill] sm:$0xff] %v6026_v4  ;;  %v1961_v46 = vadd.f32 %v1960_v39, %v6026_v4  ;;  %v7779_v17 = vld [vmem:[#allocation57_spill] sm:$0xff]  ;;  %v7780_v24 = vld [vmem:[#allocation58_spill] sm:$0xff]  ;;  %v7789_v60 = vld [vmem:[#allocation67_spill] sm:$0xff] }
 0x5c0   :  { %3472 = vpow2.f32 %v3164_v59  ;;  %v3165_v30 = vmul.f32 -1.442695, %v1890_v11  ;;  %2177 = vmatpush1.msra.mxu1 %v7740_v3  ;;  %2248 = vmatpush1.msra.mxu0 %v7741_v33  ;;  %v7776_v11 = vld [vmem:[#allocation54_spill] sm:$0xff]  ;;  %v7783_v3 = vld [vmem:[#allocation61_spill] sm:$0xff] }
 0x5c1   :  { %2178 = vmatprep.subr.mxu1 %v7742_v2  ;;  %2249 = vmatprep.subr.mxu0 %v7743_v16  ;;  %v3166_v61 = vmul.f32 -1.442695, %v1961_v46  ;;  %v7784_v33 = vld [vmem:[#allocation62_spill] sm:$0xff]  ;;  %v7785_v2 = vld [vmem:[#allocation63_spill] sm:$0xff]  ;;  %v7786_v16 = vld [vmem:[#allocation64_spill] sm:$0xff] }
 0x5c2   :  { %3474 = vpow2.f32 %v3165_v30  ;;  %2179 = vmatpush1.msra.mxu1 %v7744_v26  ;;  %2250 = vmatpush1.msra.mxu0 %v7745_v1  ;;  %v7782_v30 = vld [vmem:[#allocation60_spill] sm:$0xff]  ;;  %v7787_v26 = vld [vmem:[#allocation65_spill] sm:$0xff]  ;;  %v7788_v1 = vld [vmem:[#allocation66_spill] sm:$0xff] }
 0x5c3   :  { %2180 = vmatprep.subr.mxu1 %v7748_v35  ;;  %2251 = vmatprep.subr.mxu0 %v7749_v36  ;;  %3476 = vpow2.f32 %v3166_v61  ;;  %v7790_v35 = vld [vmem:[#allocation68_spill] sm:$0xff]  ;;  %v7791_v36 = vld [vmem:[#allocation69_spill] sm:$0xff]  ;;  %v7792_v39 = vld [vmem:[#allocation70_spill] sm:$0xff] }
 0x5c4   :  { %2181 = vmatpush1.msra.mxu1 %v7750_v40  ;;  %2252 = vmatpush1.msra.mxu0 %v7751_v41  ;;  %v7793_v40 = vld [vmem:[#allocation71_spill] sm:$0xff]  ;;  %v7794_v41 = vld [vmem:[#allocation72_spill] sm:$0xff]  ;;  %v7799_v46 = vld [vmem:[#allocation77_spill] sm:$0xff] }
 0x5c5   :  { %2182 = vmatprep.subr.mxu1 %v7752_v42  ;;  %2253 = vmatprep.subr.mxu0 %v7753_v43  ;;  %v7795_v42 = vld [vmem:[#allocation73_spill] sm:$0xff]  ;;  %v7796_v43 = vld [vmem:[#allocation74_spill] sm:$0xff] }
 0x5c6   :  { %2183 = vmatpush1.msra.mxu1 %v7754_v44  ;;  %2254 = vmatpush1.msra.mxu0 %v7755_v45  ;;  %v7797_v44 = vld [vmem:[#allocation75_spill] sm:$0xff]  ;;  %v7798_v45 = vld [vmem:[#allocation76_spill] sm:$0xff] }
 0x5c7   :  { %2184 = vmatprep.subr.mxu1 %v7756_v47  ;;  %2255 = vmatprep.subr.mxu0 %v7757_v48  ;;  %v7800_v48 = vld [vmem:[#allocation78_spill] sm:$0xff] }
 0x5c8   :  { %2185 = vmatpush1.msra.mxu1 %v7758_v49  ;;  %2256 = vmatpush1.msra.mxu0 %v7759_v50  ;;  %v7801_v49 = vld [vmem:[#allocation79_spill] sm:$0xff] }
 0x5c9   :  { %2186 = vmatprep.subr.mxu1 %v7762_v53  ;;  %2257 = vmatprep.subr.mxu0 %v7763_v54  ;;  %v7803_v53 = vld [vmem:[#allocation81_spill] sm:$0xff] }
 0x5ca   :  { %2187 = vmatpush1.msra.mxu1 %v7764_v55  ;;  %2258 = vmatpush1.msra.mxu0 %v7765_v58  ;;  %v7804_v55 = vld [vmem:[#allocation82_spill] sm:$0xff]  ;;  %v7805_v58 = vld [vmem:[#allocation83_spill] sm:$0xff] }
 0x5cb   :  { %2188 = vmatprep.subr.mxu1 %v7766_v62  ;;  %2259 = vmatprep.subr.mxu0 %v7767_v7  ;;  %v7806_v7 = vld [vmem:[#allocation84_spill] sm:$0xff] }
 0x5cc   :  { %2189 = vmatpush1.msra.mxu1 %v7768_v8  ;;  %2260 = vmatpush1.msra.mxu0 %v7769_v20  ;;  %v7807_v8 = vld [vmem:[#allocation85_spill] sm:$0xff] }
 0x5cd   :  { %v3473_v19 = vpop.eup %3472  ;;  %2190 = vmatprep.subr.mxu1 %v7770_v29  ;;  %2261 = vmatprep.subr.mxu0 %v7771_v38  ;;  %v7809_v29 = vld [vmem:[#allocation87_spill] sm:$0xff]  ;;  %v7810_v38 = vld [vmem:[#allocation88_spill] sm:$0xff] }
 0x5ce   :  { %v1966_v56 = vadd.f32 1.0, %v3473_v19  ;;  %2191 = vmatpush1.msra.mxu1 %v7772_v22  ;;  %2262 = vmatpush1.msra.mxu0 %v7773_v23  ;;  %v7812_v23 = vld [vmem:[#allocation90_spill] sm:$0xff] }
 0x5cf   :  { %v3475_v27 = vpop.eup %3474  ;;  %2192 = vmatprep.subr.mxu1 %v7774_v0  ;;  %2263 = vmatprep.subr.mxu0 %v7775_v9  ;;  %v7814_v0 = vld [vmem:[#allocation92_spill] sm:$0xff]  ;;  %v7815_v9 = vld [vmem:[#allocation93_spill] sm:$0xff] }
 0x5d0   :  { %3478 = vrcp.f32 %v1966_v56  ;;  %v1972_v59 = vadd.f32 1.0, %v3475_v27  ;;  %2193 = vmatpush1.msra.mxu1 %v7776_v11  ;;  %2264 = vmatpush1.msra.mxu0 %v7777_v34  ;;  %v3477_v47 = vpop.eup %3476  ;;  %v7811_v56 = vld [vmem:[#allocation89_spill] sm:$0xff]  ;;  %v7813_v27 = vld [vmem:[#allocation91_spill] sm:$0xff]  ;;  %v7818_v34 = vld [vmem:[#allocation96_spill] sm:$0xff] }
 0x5d1   :  { %3480 = vtanh.f32 %v1959_v14  ;;  %2194 = vmatprep.subr.mxu1 %v7778_v57  ;;  %2265 = vmatprep.subr.mxu0 %v7779_v17  ;;  %v1979_v62 = vadd.f32 1.0, %v3477_v47  ;;  %v7808_v14 = vld [vmem:[#allocation86_spill] sm:$0xff]  ;;  %v7817_v11 = vld [vmem:[#allocation95_spill] sm:$0xff]  ;;  %v7819_v57 = vld [vmem:[#allocation97_spill] sm:$0xff] }
 0x5d2   :  { %3482 = vrcp.f32 %v1972_v59  ;;  %2195 = vmatpush1.msra.mxu1 %v7780_v24  ;;  %2266 = vmatpush1.msra.mxu0 %v7781_v28  ;;  %v7816_v59 = vld [vmem:[#allocation94_spill] sm:$0xff]  ;;  %v7821_v24 = vld [vmem:[#allocation99_spill] sm:$0xff]  ;;  %v7822_v28 = vld [vmem:[#allocation100_spill] sm:$0xff] }
 0x5d3   :  { %2196 = vmatprep.subr.mxu1 %v7782_v30  ;;  %2267 = vmatprep.subr.mxu0 %v7783_v3  ;;  %3484 = vrcp.f32 %v1979_v62  ;;  %v7820_v17 = vld [vmem:[#allocation98_spill] sm:$0xff]  ;;  %v7823_v30 = vld [vmem:[#allocation101_spill] sm:$0xff] }
 0x5d4   :  { %2197 = vmatpush2.msra.mxu1 %v7784_v33  ;;  %2268 = vmatpush2.msra.mxu0 %v7785_v2  ;;  %v7824_v3 = vld [vmem:[#allocation102_spill] sm:$0xff]  ;;  %v7825_v33 = vld [vmem:[#allocation103_spill] sm:$0xff]  ;;  %v7826_v2 = vld [vmem:[#allocation104_spill] sm:$0xff] }
 0x5d5   :  { %2198 = vmatprep.subr.mxu1 %v7786_v16  ;;  %2269 = vmatprep.subr.mxu0 %v7787_v26  ;;  %v7827_v16 = vld [vmem:[#allocation105_spill] sm:$0xff]  ;;  %v7828_v26 = vld [vmem:[#allocation106_spill] sm:$0xff] }
 0x5d6   :  { %2199 = vmatpush2.msra.mxu1 %v7788_v1  ;;  %2270 = vmatpush2.msra.mxu0 %v7789_v60  ;;  %v7829_v1 = vld [vmem:[#allocation107_spill] sm:$0xff]  ;;  %v7830_v60 = vld [vmem:[#allocation108_spill] sm:$0xff]  ;;  %v7839_v47 = vld [vmem:[#allocation117_spill] sm:$0xff] }
 0x5d7   :  { %2200 = vmatprep.subr.mxu1 %v7790_v35  ;;  %2271 = vmatprep.subr.mxu0 %v7791_v36  ;;  %v7831_v35 = vld [vmem:[#allocation109_spill] sm:$0xff]  ;;  %v7832_v36 = vld [vmem:[#allocation110_spill] sm:$0xff] }
 0x5d8   :  { %2201 = vmatpush2.msra.mxu1 %v7792_v39  ;;  %2272 = vmatpush2.msra.mxu0 %v7793_v40  ;;  %v7833_v39 = vld [vmem:[#allocation111_spill] sm:$0xff]  ;;  %v7834_v40 = vld [vmem:[#allocation112_spill] sm:$0xff]  ;;  %v7852_v62 = vld [vmem:[#allocation130_spill] sm:$0xff] }
 0x5d9   :  { %2202 = vmatprep.subr.mxu1 %v7794_v41  ;;  %2273 = vmatprep.subr.mxu0 %v7795_v42  ;;  %v7835_v41 = vld [vmem:[#allocation113_spill] sm:$0xff]  ;;  %v7836_v42 = vld [vmem:[#allocation114_spill] sm:$0xff] }
 0x5da   :  { %2203 = vmatpush2.msra.mxu1 %v7796_v43  ;;  %2274 = vmatpush2.msra.mxu0 %v7797_v44  ;;  %v7837_v43 = vld [vmem:[#allocation115_spill] sm:$0xff]  ;;  %v7838_v44 = vld [vmem:[#allocation116_spill] sm:$0xff] }
 0x5db   :  { %2204 = vmatprep.subr.mxu1 %v7798_v45  ;;  %2275 = vmatprep.subr.mxu0 %v7799_v46 }
 0x5dc   :  { %2205 = vmatpush2.msra.mxu1 %v7800_v48  ;;  %2276 = vmatpush2.msra.mxu0 %v7801_v49  ;;  %v7840_v48 = vld [vmem:[#allocation118_spill] sm:$0xff] }
 0x5dd   :  { %v3479_v50 = vpop.eup %3478  ;;  %2206 = vmatprep.subr.mxu1 %v7802_v51  ;;  %2277 = vmatprep.subr.mxu0 %v7803_v53  ;;  %v7842_v51 = vld [vmem:[#allocation120_spill] sm:$0xff]  ;;  %v7847_v53 = vld [vmem:[#allocation125_spill] sm:$0xff] }
 0x5de   :  { %v3481_v54 = vpop.eup %3480  ;;  %2207 = vmatpush2.msra.mxu1 %v7804_v55  ;;  %2278 = vmatpush2.msra.mxu0 %v7805_v58  ;;  %v7849_v55 = vld [vmem:[#allocation127_spill] sm:$0xff]  ;;  %v7850_v58 = vld [vmem:[#allocation128_spill] sm:$0xff] }
 0x5df   :  { %v3483_v61 = vpop.eup %3482  ;;  %2208 = vmatprep.subr.mxu1 %v7806_v7  ;;  %2279 = vmatprep.subr.mxu0 %v7807_v8  ;;  %v1983_v19 = vmul.f32 %v3481_v54, %v3479_v50  ;;  %v7841_v50 = vld [vmem:[#allocation119_spill] sm:$0xff]  ;;  %v7848_v54 = vld [vmem:[#allocation126_spill] sm:$0xff]  ;;  %v7855_v8 = vld [vmem:[#allocation133_spill] sm:$0xff] }
 0x5e0   :  { %v1982_v20 = vmul.f32 0.0, %v3483_v61  ;;  %2209 = vmatpush2.msra.mxu1 %v7808_v14  ;;  %2280 = vmatpush2.msra.mxu0 %v7809_v29  ;;  %v3485_v45 = vpop.eup %3484  ;;  %v7851_v61 = vld [vmem:[#allocation129_spill] sm:$0xff]  ;;  %v7853_v7 = vld [vmem:[#allocation131_spill] sm:$0xff]  ;;  %v7858_v14 = vld [vmem:[#allocation136_spill] sm:$0xff] }
 0x5e1   :  { %2210 = vmatprep.subr.mxu1 %v7810_v38  ;;  %2281 = vmatprep.subr.mxu0 %v7811_v56  ;;  %v7859_v29 = vld [vmem:[#allocation137_spill] sm:$0xff]  ;;  %v7860_v38 = vld [vmem:[#allocation138_spill] sm:$0xff]  ;;  %v7861_v56 = vld [vmem:[#allocation139_spill] sm:$0xff] }
 0x5e2   :  { %v6096_v22 = vadd.f32 %v1983_v19, %v1982_v20  ;;  %2211 = vmatpush2.msra.mxu1 %v7812_v23  ;;  %2282 = vmatpush2.msra.mxu0 %v7813_v27  ;;  %v7856_v20 = vld [vmem:[#allocation134_spill] sm:$0xff]  ;;  %v7857_v19 = vld [vmem:[#allocation135_spill] sm:$0xff]  ;;  %v7862_v23 = vld [vmem:[#allocation140_spill] sm:$0xff] }
 0x5e3   :  { %2212 = vmatprep.subr.mxu1 %v7814_v0  ;;  %2283 = vmatprep.subr.mxu0 %v7815_v9  ;;  %v7863_v27 = vld [vmem:[#allocation141_spill] sm:$0xff]  ;;  %v7864_v0 = vld [vmem:[#allocation142_spill] sm:$0xff]  ;;  %v7865_v9 = vld [vmem:[#allocation143_spill] sm:$0xff] }
 0x5e4   :  { %3486 = vtanh.f32 %v6096_v22  ;;  %2213 = vmatpush2.msra.mxu1 %v7816_v59  ;;  %2284 = vmatpush2.msra.mxu0 %v7817_v11  ;;  %v7866_v59 = vld [vmem:[#allocation144_spill] sm:$0xff]  ;;  %v7867_v11 = vld [vmem:[#allocation145_spill] sm:$0xff] }
 0x5e5   :  { %2214 = vmatprep.subr.mxu1 %v7818_v34  ;;  %2285 = vmatprep.subr.mxu0 %v7819_v57  ;;  %v7868_v34 = vld [vmem:[#allocation146_spill] sm:$0xff]  ;;  %v7869_v57 = vld [vmem:[#allocation147_spill] sm:$0xff] }
 0x5e6   :  { %2215 = vmatpush2.msra.mxu1 %v7820_v17  ;;  %2286 = vmatpush2.msra.mxu0 %v7821_v24  ;;  %v3606_v17 = vld [vmem:[%s7341_s8 + $0xe8] sm:$0xff]  ;;  %v3607_v24 = vld [vmem:[%s7341_s8 + $0xf8] sm:$0xff] }
 0x5e7   :  { %2216 = vmatprep.subr.mxu1 %v7822_v28  ;;  %2287 = vmatprep.subr.mxu0 %v7823_v30  ;;  %v3612_v28 = vld [vmem:[%s7341_s8 + $0xc0] sm:$0xff]  ;;  %v3613_v30 = vld [vmem:[%s7341_s8 + $0xd0] sm:$0xff] }
 0x5e8   :  { %2217 = vmatpush2.msra.mxu1 %v7824_v3  ;;  %2288 = vmatpush2.msra.mxu0 %v7825_v33  ;;  %v3614_v3 = vld [vmem:[%s7341_s8 + $0xa8] sm:$0xff]  ;;  %v3615_v33 = vld [vmem:[%s7341_s8 + $0xb8] sm:$0xff] }
 0x5e9   :  { %2218 = vmatprep.subr.mxu1 %v7826_v2  ;;  %2289 = vmatprep.subr.mxu0 %v7827_v16  ;;  %v3616_v2 = vld [vmem:[%s7341_s8 + $0xa0] sm:$0xff]  ;;  %v3617_v16 = vld [vmem:[%s7341_s8 + $0xb0] sm:$0xff] }
 0x5ea   :  { %2219 = vmatpush2.msra.mxu1 %v7828_v26  ;;  %2290 = vmatpush2.msra.mxu0 %v7829_v1  ;;  %v3618_v26 = vld [vmem:[%s7341_s8 + $0x88] sm:$0xff]  ;;  %v3619_v1 = vld [vmem:[%s7341_s8 + $0x98] sm:$0xff] }
 0x5eb   :  { %2220 = vmatprep.subr.mxu1 %v7830_v60  ;;  %2291 = vmatprep.subr.mxu0 %v7831_v35  ;;  %v3620_v60 = vld [vmem:[%s7341_s8 + $0x80] sm:$0xff]  ;;  %v3621_v35 = vld [vmem:[%s7341_s8 + $0x90] sm:$0xff] }
 0x5ec   :  { %2221 = vmatpush2.msra.mxu1 %v7832_v36  ;;  %2292 = vmatpush2.msra.mxu0 %v7833_v39  ;;  %v3622_v36 = vld [vmem:[%s7341_s8 + $0x68] sm:$0xff]  ;;  %v3623_v39 = vld [vmem:[%s7341_s8 + $0x78] sm:$0xff] }
 0x5ed   :  { %2222 = vmatprep.subr.mxu1 %v7834_v40  ;;  %2293 = vmatprep.subr.mxu0 %v7835_v41  ;;  %v3624_v40 = vld [vmem:[%s7341_s8 + $0x60] sm:$0xff]  ;;  %v3625_v41 = vld [vmem:[%s7341_s8 + $0x70] sm:$0xff] }
 0x5ee   :  { %2223 = vmatpush2.msra.mxu1 %v7836_v42  ;;  %2294 = vmatpush2.msra.mxu0 %v7837_v43  ;;  %v3626_v42 = vld [vmem:[%s7341_s8 + $0x48] sm:$0xff]  ;;  %v3627_v43 = vld [vmem:[%s7341_s8 + $0x58] sm:$0xff] }
 0x5ef   :  { %2224 = vmatprep.subr.mxu1 %v5686_v63  ;;  %2295 = vmatprep.subr.mxu0 %v7838_v44  ;;  %v7843_v63 = vld [vmem:[#allocation121_spill] sm:$0xff]  ;;  %v3628_v44 = vld [vmem:[%s7341_s8 + $0x40] sm:$0xff] }
 0x5f0   :  { %2225 = vmatpush2.msra.mxu1 %v5698_v6  ;;  %2296 = vmatpush2.msra.mxu0 %v5703_v10  ;;  %v7844_v6 = vld [vmem:[#allocation122_spill] sm:$0xff]  ;;  %v7845_v10 = vld [vmem:[#allocation123_spill] sm:$0xff] }
 0x5f1   :  { %v3487_v46 = vpop.eup %3486  ;;  %2226 = vmatprep.subr.mxu1 %v7839_v47  ;;  %2297 = vmatprep.subr.mxu0 %v5715_v18  ;;  %v7846_v18 = vld [vmem:[#allocation124_spill] sm:$0xff]  ;;  %v3631_v47 = vld [vmem:[%s7341_s8 + $0x38] sm:$0xff] }
 0x5f2   :  { %2227 = vmatpush2.msra.mxu1 %v7840_v48  ;;  %v1986_v49 = vmul.f32 %v3487_v46, %v3485_v45  ;;  %2298 = vmatpush2.msra.mxu0 %v7841_v50  ;;  %v3629_v45 = vld [vmem:[%s7341_s8 + $0x50] sm:$0xff]  ;;  %v3630_v46 = vld [vmem:[%s7341_s8 + $0x28] sm:$0xff]  ;;  %v3632_v48 = vld [vmem:[%s7341_s8 + $0x20] sm:$0xff] }
 0x5f3   :  { %2337 = vmatprep.subr.mxu1 %v7842_v51  ;;  %2408 = vmatprep.subr.mxu0 %v7843_v63  ;;  %v3634_v50 = vld [vmem:[%s7341_s8 + $0x8] sm:$0xff]  ;;  %v3635_v51 = vld [vmem:[%s7341_s8 + $0x18] sm:$0xff]  ;;  %v3636_v63 = vld [vmem:[%s7341_s8] sm:$0xff] }
 0x5f4   :  { %2228 = vmatprep.mubr.f32.mxu1 %v1986_v49  ;;  %2299 = vmatprep.mubr.f32.mxu0 %v1986_v49  ;;  %v3633_v49 = vld [vmem:[%s7341_s8 + $0x30] sm:$0xff] }
 0x5f5   :  { %2229 = vmatmul.mubr.f32.vlgmr.msra.gmra.mxu1 %v5977_v13  ;;  %2300 = vmatmul.mubr.f32.vlgmr.msra.gmra.mxu0 %v5977_v13  ;;  %v7854_v13 = vld [vmem:[#allocation132_spill] sm:$0xff] }
 0x5f6   :  { %2338 = vmatpush1.msra.mxu1 %v7844_v6  ;;  %2409 = vmatpush1.msra.mxu0 %v7845_v10  ;;  %v3637_v6 = vld [vmem:[%s7341_s8 + $0x10] sm:$0xff]  ;;  %v6268_v10 = vld [vmem:[%s7343_s10 + $0x1e8] sm:$0xff] }
 0x5f7   :  { %2339 = vmatprep.subr.mxu1 %v7846_v18  ;;  %2410 = vmatprep.subr.mxu0 %v7847_v53  ;;  %v6274_v18 = vld [vmem:[%s7343_s10 + $0x1f8] sm:$0xff] }
 0x5f8   :  { %2340 = vmatpush1.msra.mxu1 %v7848_v54  ;;  %2411 = vmatpush1.msra.mxu0 %v7849_v55  ;;  %v7870_v54 = vld [vmem:[#allocation6_spill] sm:$0xff] }
 0x5f9   :  { %2341 = vmatprep.subr.mxu1 %v7850_v58  ;;  %2412 = vmatprep.subr.mxu0 %v7851_v61 }
 0x5fa   :  { %2342 = vmatpush1.msra.mxu1 %v7852_v62  ;;  %2413 = vmatpush1.msra.mxu0 %v7853_v7 }
 0x5fb   :  { %2343 = vmatprep.subr.mxu1 %v7854_v13  ;;  %2414 = vmatprep.subr.mxu0 %v7855_v8 }
 0x5fc   :  { %2344 = vmatpush1.msra.mxu1 %v7856_v20  ;;  %2415 = vmatpush1.msra.mxu0 %v7857_v19  ;;  %v7872_v20 = vld [vmem:[#allocation9_spill] sm:$0xff] }
 0x5fd   :  { %2345 = vmatprep.subr.mxu1 %v7858_v14  ;;  %2416 = vmatprep.subr.mxu0 %v7859_v29  ;;  %v7873_v14 = vld [vmem:[#allocation7_spill] sm:$0xff] }
 0x5fe   :  { %2346 = vmatpush1.msra.mxu1 %v7860_v38  ;;  %2417 = vmatpush1.msra.mxu0 %v7861_v56 }
 0x5ff   :  { %2347 = vmatprep.subr.mxu1 %v7862_v23  ;;  %2418 = vmatprep.subr.mxu0 %v7863_v27 }
 0x600   :  { %2348 = vmatpush1.msra.mxu1 %v7864_v0  ;;  %2419 = vmatpush1.msra.mxu0 %v7865_v9 }
 0x601   :  { %2349 = vmatprep.subr.mxu1 %v7866_v59  ;;  %2420 = vmatprep.subr.mxu0 %v7867_v11 }
 0x602   :  { %2350 = vmatpush1.msra.mxu1 %v7868_v34  ;;  %2421 = vmatpush1.msra.mxu0 %v7869_v57 }
 0x603   :  { %2351 = vmatprep.subr.mxu1 %v5912_v12  ;;  %2422 = vmatprep.subr.mxu0 %v5918_v31  ;;  %v3608_v12 = vld [vmem:[%s7341_s8 + $0xe0] sm:$0xff]  ;;  %v3609_v31 = vld [vmem:[%s7341_s8 + $0xf0] sm:$0xff] }
 0x604   :  { %2352 = vmatpush1.msra.mxu1 %v5924_v32  ;;  %2423 = vmatpush1.msra.mxu0 %v5930_v21  ;;  %v3610_v32 = vld [vmem:[%s7341_s8 + $0xc8] sm:$0xff]  ;;  %v3611_v21 = vld [vmem:[%s7341_s8 + $0xd8] sm:$0xff] }
 0x605   :  { %2353 = vmatprep.subr.mxu1 %v3606_v17  ;;  %2424 = vmatprep.subr.mxu0 %v3607_v24 }
 0x606   :  { %2354 = vmatpush1.msra.mxu1 %v3608_v12  ;;  %2425 = vmatpush1.msra.mxu0 %v3609_v31 }
 0x607   :  { %2355 = vmatprep.subr.mxu1 %v3610_v32  ;;  %2426 = vmatprep.subr.mxu0 %v3611_v21 }
 0x608   :  { %2356 = vmatpush1.msra.mxu1 %v3612_v28  ;;  %2427 = vmatpush1.msra.mxu0 %v3613_v30  ;;  %v6292_v28 = vld [vmem:[%s7343_s10 + $0x1e0] sm:$0xff]  ;;  %v6304_v30 = vld [vmem:[%s7343_s10 + $0x1c8] sm:$0xff] }
 0x609   :  { %2357 = vmatprep.subr.mxu1 %v3614_v3  ;;  %2428 = vmatprep.subr.mxu0 %v3615_v33  ;;  %v6310_v3 = vld [vmem:[%s7343_s10 + $0x1d8] sm:$0xff]  ;;  %v6316_v33 = vld [vmem:[%s7343_s10 + $0x1c0] sm:$0xff] }
 0x60a   :  { %2358 = vmatpush1.msra.mxu1 %v3616_v2  ;;  %2429 = vmatpush1.msra.mxu0 %v3617_v16  ;;  %v6322_v2 = vld [vmem:[%s7343_s10 + $0x1d0] sm:$0xff]  ;;  %v6328_v16 = vld [vmem:[%s7343_s10 + $0x1a8] sm:$0xff] }
 0x60b   :  { %2359 = vmatprep.subr.mxu1 %v3618_v26  ;;  %2430 = vmatprep.subr.mxu0 %v3619_v1  ;;  %v6334_v26 = vld [vmem:[%s7343_s10 + $0x1b8] sm:$0xff]  ;;  %v6340_v1 = vld [vmem:[%s7343_s10 + $0x1a0] sm:$0xff] }
 0x60c   :  { %2360 = vmatpush1.msra.mxu1 %v3620_v60  ;;  %2431 = vmatpush1.msra.mxu0 %v3621_v35  ;;  %v6346_v60 = vld [vmem:[%s7343_s10 + $0x1b0] sm:$0xff]  ;;  %v6352_v35 = vld [vmem:[%s7343_s10 + $0x188] sm:$0xff] }
 0x60d   :  { %2361 = vmatprep.subr.mxu1 %v3622_v36  ;;  %2432 = vmatprep.subr.mxu0 %v3623_v39  ;;  %v6358_v36 = vld [vmem:[%s7343_s10 + $0x198] sm:$0xff]  ;;  %v6364_v39 = vld [vmem:[%s7343_s10 + $0x180] sm:$0xff] }
 0x60e   :  { %2362 = vmatpush1.msra.mxu1 %v3624_v40  ;;  %2433 = vmatpush1.msra.mxu0 %v3625_v41  ;;  %v6370_v40 = vld [vmem:[%s7343_s10 + $0x190] sm:$0xff]  ;;  %v6376_v41 = vld [vmem:[%s7343_s10 + $0x168] sm:$0xff] }
 0x60f   :  { %2363 = vmatprep.subr.mxu1 %v3626_v42  ;;  %2434 = vmatprep.subr.mxu0 %v3627_v43  ;;  %v6382_v42 = vld [vmem:[%s7343_s10 + $0x178] sm:$0xff] }
 0x610   :  { %2364 = vmatpush1.msra.mxu1 %v3628_v44  ;;  %2435 = vmatpush1.msra.mxu0 %v3629_v45  ;;  %v6388_v44 = vld [vmem:[%s7343_s10 + $0x160] sm:$0xff]  ;;  %v6394_v45 = vld [vmem:[%s7343_s10 + $0x170] sm:$0xff] }
 0x611   :  { %2365 = vmatprep.subr.mxu1 %v3630_v46  ;;  %2436 = vmatprep.subr.mxu0 %v3631_v47  ;;  %v6401_v47 = vld [vmem:[%s7343_s10 + $0x148] sm:$0xff] }
 0x612   :  { %2366 = vmatpush1.msra.mxu1 %v3632_v48  ;;  %2437 = vmatpush1.msra.mxu0 %v3633_v49  ;;  %v6407_v48 = vld [vmem:[%s7343_s10 + $0x158] sm:$0xff] }
 0x613   :  { %2367 = vmatprep.subr.mxu1 %v3634_v50  ;;  %2438 = vmatprep.subr.mxu0 %v3635_v51  ;;  %v6413_v50 = vld [vmem:[%s7343_s10 + $0x140] sm:$0xff]  ;;  %v6419_v51 = vld [vmem:[%s7343_s10 + $0x150] sm:$0xff] }
 0x614   :  { %2368 = vmatpush1.msra.mxu1 %v3636_v63  ;;  %2401 = vmatprep.mubr.f32.mxu1 %v5734_v15 }
 0x615   :  { %2439 = vmatpush1.msra.mxu0 %v3637_v6  ;;  %2472 = vmatprep.mubr.f32.mxu0 %v5734_v15  ;;  %v7871_v15 = vld [vmem:[#allocation8_spill] sm:$0xff] }
 0x616   :  { %2507 = vmatprep.subr.mxu1 %v6268_v10  ;;  %2578 = vmatprep.subr.mxu0 %v6274_v18 }
 0x673   :  { %v2060_v53 = vpop.f32.mrf.mxu1  ;;  %v2131_v7 = vpop.f32.mrf.mxu0 }
 0x674   :  { %v2136_v55 = vadd.f32 %v2060_v53, %v7870_v54  ;;  %v2138_v29 = vadd.f32 %v2131_v7, %v7873_v14  ;;  %v6426_v53 = vld [vmem:[%s7343_s10 + $0x128] sm:$0xff]  ;;  %v6432_v54 = vld [vmem:[%s7343_s10 + $0x138] sm:$0xff]  ;;  %v6486_v14 = vld [vmem:[%s7343_s10 + $0xe0] sm:$0xff] }
 0x675   :  { %v2062_v58 = vpop.f32.mrf.mxu1  ;;  %v2133_v8 = vpop.f32.mrf.mxu0  ;;  %v6456_v7 = vld [vmem:[%s7343_s10 + $0x118] sm:$0xff] }
 0x676   :  { %v3167_v61 = vmul.f32 -1.442695, %v2136_v55  ;;  %v2137_v62 = vadd.f32 %v2062_v58, %v7871_v15  ;;  %v2139_v19 = vadd.f32 %v2133_v8, %v7872_v20  ;;  %v6438_v55 = vld [vmem:[%s7343_s10 + $0x120] sm:$0xff]  ;;  %v6444_v58 = vld [vmem:[%s7343_s10 + $0x130] sm:$0xff]  ;;  %v6474_v20 = vld [vmem:[%s7343_s10 + $0xe8] sm:$0xff] }
 0x677   :  { %v6468_v8 = vld [vmem:[%s7343_s10 + $0x110] sm:$0xff] }
 0x678   :  { %3488 = vpow2.f32 %v3167_v61  ;;  %v3168_v13 = vmul.f32 -1.442695, %v2137_v62  ;;  %v3169_v38 = vmul.f32 -1.442695, %v2139_v19  ;;  %v6450_v62 = vld [vmem:[%s7343_s10 + $0x108] sm:$0xff]  ;;  %v6480_v19 = vld [vmem:[%s7343_s10 + $0xf8] sm:$0xff] }
 0x67a   :  { %3490 = vpow2.f32 %v3168_v13  ;;  %v6462_v13 = vld [vmem:[%s7343_s10 + $0x100] sm:$0xff] }
 0x67b   :  { %3492 = vtanh.f32 %v2138_v29  ;;  %v6492_v29 = vld [vmem:[%s7343_s10 + $0xf0] sm:$0xff] }
 0x67c   :  { %3494 = vpow2.f32 %v3169_v38 }
 0x685   :  { %v3489_v56 = vpop.eup %3488 }
 0x686   :  { %v2143_v23 = vadd.f32 1.0, %v3489_v56  ;;  %v6498_v56 = vld [vmem:[%s7343_s10 + $0xc8] sm:$0xff] }
 0x687   :  { %v3491_v27 = vpop.eup %3490 }
 0x688   :  { %3496 = vrcp.f32 %v2143_v23  ;;  %v2149_v0 = vadd.f32 1.0, %v3491_v27  ;;  %v3493_v9 = vpop.eup %3492  ;;  %v6504_v23 = vld [vmem:[%s7343_s10 + $0xd8] sm:$0xff]  ;;  %v6510_v27 = vld [vmem:[%s7343_s10 + $0xc0] sm:$0xff] }
 0x689   :  { %v3495_v59 = vpop.eup %3494 }
 0x68a   :  { %3498 = vrcp.f32 %v2149_v0  ;;  %v2156_v17 = vadd.f32 1.0, %v3495_v59  ;;  %v6516_v0 = vld [vmem:[%s7343_s10 + $0xd0] sm:$0xff]  ;;  %v6528_v59 = vld [vmem:[%s7343_s10 + $0xb8] sm:$0xff] }
 0x68c   :  { %3500 = vrcp.f32 %v2156_v17  ;;  %v6547_v17 = vld [vmem:[%s7343_s10 + $0x88] sm:$0xff] }
 0x695   :  { %v3497_v11 = vpop.eup %3496 }
 0x696   :  { %v2160_v34 = vmul.f32 %v3497_v11, %v3493_v9  ;;  %v6522_v9 = vld [vmem:[%s7343_s10 + $0xa8] sm:$0xff] }
 0x697   :  { %v3499_v57 = vpop.eup %3498 }
 0x698   :  { %v2159_v24 = vmul.f32 %v3499_v57, %v5974_v5  ;;  %v6298_v5 = vld [vmem:[%s7343_s10 + $0x1f0] sm:$0xff] }
 0x699   :  { %v3501_v31 = vpop.eup %3500  ;;  %v6541_v57 = vld [vmem:[%s7343_s10 + $0xb0] sm:$0xff] }
 0x69a   :  { %v6282_v12 = vadd.f32 %v2160_v34, %v2159_v24  ;;  %v6535_v34 = vld [vmem:[%s7343_s10 + $0xa0] sm:$0xff]  ;;  %v6553_v24 = vld [vmem:[%s7343_s10 + $0x98] sm:$0xff] }
 0x69c   :  { %7874 = vst [vmem:[#allocation16_spill] sm:$0xff] %v6282_v12  ;;  %3502 = vtanh.f32 %v6282_v12 }
 0x6a9   :  { %v3503_v32 = vpop.eup %3502 }
 0x6aa   :  { %v6285_v21 = vmul.f32 %v3503_v32, %v3501_v31  ;;  %v6559_v31 = vld [vmem:[%s7343_s10 + $0x80] sm:$0xff]  ;;  %v6565_v32 = vld [vmem:[%s7343_s10 + $0x90] sm:$0xff] }
 0x6ac   :  { %2402 = vmatmul.mubr.f32.vlgmr.msra.gmra.mxu1 %v6285_v21  ;;  %2473 = vmatmul.mubr.f32.vlgmr.msra.gmra.mxu0 %v6285_v21 }
 0x6ad   :  { %2508 = vmatpush1.msra.mxu1 %v6292_v28  ;;  %2579 = vmatpush1.msra.mxu0 %v6298_v5 }
 0x6ae   :  { %2509 = vmatprep.subr.mxu1 %v6304_v30  ;;  %2580 = vmatprep.subr.mxu0 %v6310_v3 }
 0x6af   :  { %2510 = vmatpush1.msra.mxu1 %v6316_v33  ;;  %2581 = vmatpush1.msra.mxu0 %v6322_v2 }
 0x6b0   :  { %2511 = vmatprep.subr.mxu1 %v6328_v16  ;;  %2582 = vmatprep.subr.mxu0 %v6334_v26 }
 0x6b1   :  { %2512 = vmatpush1.msra.mxu1 %v6340_v1  ;;  %2583 = vmatpush1.msra.mxu0 %v6346_v60 }
 0x6b2   :  { %2513 = vmatprep.subr.mxu1 %v6352_v35  ;;  %2584 = vmatprep.subr.mxu0 %v6358_v36 }
 0x6b3   :  { %2514 = vmatpush1.msra.mxu1 %v6364_v39  ;;  %2585 = vmatpush1.msra.mxu0 %v6370_v40 }
 0x6b4   :  { %2515 = vmatprep.subr.mxu1 %v6376_v41  ;;  %2586 = vmatprep.subr.mxu0 %v6382_v42 }
 0x6b5   :  { %v2230_v43 = vpop.f32.mrf.mxu1  ;;  %2516 = vmatpush1.msra.mxu1 %v6388_v44  ;;  %2587 = vmatpush1.msra.mxu0 %v6394_v45  ;;  %v2301_v61 = vpop.f32.mrf.mxu0 }
 0x6b6   :  { %v2231_v46 = vadd.f32 %v2230_v43, %v5996_v25  ;;  %2517 = vmatprep.subr.mxu1 %v6401_v47  ;;  %2588 = vmatprep.subr.mxu0 %v6407_v48  ;;  %v6571_v43 = vld [vmem:[%s7343_s10 + $0x68] sm:$0xff]  ;;  %v6614_v25 = vld [vmem:[%s7343_s10 + $0x50] sm:$0xff] }
 0x6b7   :  { %v2232_v49 = vpop.f32.mrf.mxu1  ;;  %2518 = vmatpush1.msra.mxu1 %v6413_v50  ;;  %2589 = vmatpush1.msra.mxu0 %v6419_v51  ;;  %v2303_v38 = vpop.f32.mrf.mxu0  ;;  %7878 = vst [vmem:[#allocation20_spill] sm:$0xff] %v6614_v25 }
 0x6b8   :  { %v3170_v63 = vmul.f32 -1.442695, %v2231_v46  ;;  %v2233_v6 = vadd.f32 %v2232_v49, %v6004_v37  ;;  %2519 = vmatprep.subr.mxu1 %v6426_v53  ;;  %2590 = vmatprep.subr.mxu0 %v6432_v54  ;;  %v2304_v11 = vadd.f32 %v2303_v38, %v6026_v4  ;;  %v6577_v46 = vld [vmem:[%s7343_s10 + $0x78] sm:$0xff]  ;;  %v2302_v4 = vadd.f32 %v2301_v61, %v6043_v52  ;;  %v6608_v37 = vld [vmem:[%s7343_s10 + $0x40] sm:$0xff] }
 0x6b9   :  { %2520 = vmatpush1.msra.mxu1 %v6438_v55  ;;  %2591 = vmatpush1.msra.mxu0 %v6444_v58  ;;  %v6601_v38 = vld [vmem:[%s7343_s10 + $0x58] sm:$0xff]  ;;  %7877 = vst [vmem:[#allocation19_spill] sm:$0xff] %v6608_v37 }
 0x6ba   :  { %3504 = vpow2.f32 %v3170_v63  ;;  %v3171_v15 = vmul.f32 -1.442695, %v2233_v6  ;;  %2521 = vmatprep.subr.mxu1 %v6450_v62  ;;  %2592 = vmatprep.subr.mxu0 %v6456_v7  ;;  %v3172_v49 = vmul.f32 -1.442695, %v2304_v11  ;;  %v6583_v63 = vld [vmem:[%s7343_s10 + $0x60] sm:$0xff]  ;;  %v6589_v6 = vld [vmem:[%s7343_s10 + $0x70] sm:$0xff] }
 0x6bb   :  { %2522 = vmatpush1.msra.mxu1 %v6462_v13  ;;  %2593 = vmatpush1.msra.mxu0 %v6468_v8  ;;  %7876 = vst [vmem:[#allocation18_spill] sm:$0xff] %v6601_v38  ;;  %v6626_v61 = vld [vmem:[%s7343_s10 + $0x38] sm:$0xff] }
 0x6bc   :  { %3506 = vpow2.f32 %v3171_v15  ;;  %2523 = vmatprep.subr.mxu1 %v6474_v20  ;;  %2594 = vmatprep.subr.mxu0 %v6480_v19  ;;  %v6595_v15 = vld [vmem:[%s7343_s10 + $0x48] sm:$0xff]  ;;  %7880 = vst [vmem:[#allocation22_spill] sm:$0xff] %v6626_v61 }
 0x6bd   :  { %2524 = vmatpush1.msra.mxu1 %v6486_v14  ;;  %2595 = vmatpush1.msra.mxu0 %v6492_v29  ;;  %7875 = vst [vmem:[#allocation17_spill] sm:$0xff] %v6595_v15  ;;  %3508 = vpow2.f32 %v3172_v49  ;;  %v6644_v49 = vld [vmem:[%s7343_s10 + $0x8] sm:$0xff] }
 0x6be   :  { %2525 = vmatprep.subr.mxu1 %v6498_v56  ;;  %2596 = vmatprep.subr.mxu0 %v6504_v23  ;;  %7883 = vst [vmem:[#allocation25_spill] sm:$0xff] %v6644_v49 }
 0x6bf   :  { %2526 = vmatpush1.msra.mxu1 %v6510_v27  ;;  %2597 = vmatpush1.msra.mxu0 %v6516_v0 }
 0x6c0   :  { %2527 = vmatprep.subr.mxu1 %v6522_v9  ;;  %2598 = vmatprep.subr.mxu0 %v6528_v59 }
 0x6c1   :  { %2528 = vmatpush1.msra.mxu1 %v6535_v34  ;;  %2599 = vmatpush1.msra.mxu0 %v6541_v57 }
 0x6c2   :  { %2529 = vmatprep.subr.mxu1 %v6547_v17  ;;  %2600 = vmatprep.subr.mxu0 %v6553_v24 }
 0x6c3   :  { %2530 = vmatpush1.msra.mxu1 %v6559_v31  ;;  %2601 = vmatpush1.msra.mxu0 %v6565_v32 }
 0x6c4   :  { %2531 = vmatprep.subr.mxu1 %v6571_v43  ;;  %2602 = vmatprep.subr.mxu0 %v6577_v46 }
 0x6c5   :  { %2532 = vmatpush1.msra.mxu1 %v6583_v63  ;;  %2603 = vmatpush1.msra.mxu0 %v6589_v6 }
 0x6c6   :  { %2533 = vmatprep.subr.mxu1 %v6595_v15  ;;  %2604 = vmatprep.subr.mxu0 %v6601_v38  ;;  %v6620_v38 = vld [vmem:[%s7343_s10 + $0x28] sm:$0xff] }
 0x6c7   :  { %v3505_v11 = vpop.eup %3504  ;;  %2534 = vmatpush1.msra.mxu1 %v6608_v37  ;;  %2605 = vmatpush1.msra.mxu0 %v6614_v25  ;;  %7879 = vst [vmem:[#allocation21_spill] sm:$0xff] %v6620_v38 }
 0x6c8   :  { %v2309_v12 = vadd.f32 1.0, %v3505_v11  ;;  %2535 = vmatprep.subr.mxu1 %v6620_v38  ;;  %2606 = vmatprep.subr.mxu0 %v6626_v61  ;;  %v6632_v11 = vld [vmem:[%s7343_s10 + $0x20] sm:$0xff]  ;;  %v6638_v38 = vld [vmem:[%s7343_s10 + $0x30] sm:$0xff] }
 0x6c9   :  { %v3507_v52 = vpop.eup %3506  ;;  %7881 = vst [vmem:[#allocation23_spill] sm:$0xff] %v6632_v11  ;;  %2536 = vmatpush1.msra.mxu1 %v6632_v11  ;;  %7882 = vst [vmem:[#allocation24_spill] sm:$0xff] %v6638_v38  ;;  %2607 = vmatpush1.msra.mxu0 %v6638_v38  ;;  %v6650_v11 = vld [vmem:[%s7343_s10 + $0x18] sm:$0xff] }
 0x6ca   :  { %3510 = vrcp.f32 %v2309_v12  ;;  %v2315_v25 = vadd.f32 1.0, %v3507_v52  ;;  %2537 = vmatprep.subr.mxu1 %v6644_v49  ;;  %7884 = vst [vmem:[#allocation26_spill] sm:$0xff] %v6650_v11  ;;  %2608 = vmatprep.subr.mxu0 %v6650_v11  ;;  %v6656_v12 = vld [vmem:[%s7343_s10] sm:$0xff]  ;;  %v6662_v52 = vld [vmem:[%s7343_s10 + $0x10] sm:$0xff]  ;;  %v6668_v11 = vld [vmem:[%s7343_s10 + $0x3e8] sm:$0xff] }
 0x6cb   :  { %3512 = vtanh.f32 %v2302_v4  ;;  %7885 = vst [vmem:[#allocation27_spill] sm:$0xff] %v6656_v12  ;;  %2538 = vmatpush1.msra.mxu1 %v6656_v12  ;;  %7886 = vst [vmem:[#allocation28_spill] sm:$0xff] %v6662_v52  ;;  %2609 = vmatpush1.msra.mxu0 %v6662_v52  ;;  %v6674_v4 = vld [vmem:[%s7343_s10 + $0x3f8] sm:$0xff]  ;;  %v6680_v12 = vld [vmem:[%s7343_s10 + $0x3e0] sm:$0xff] }
 0x6cc   :  { %3514 = vrcp.f32 %v2315_v25  ;;  %7887 = vst [vmem:[#allocation29_spill] sm:$0xff] %v6668_v11  ;;  %2539 = vmatprep.subr.mxu1 %v6668_v11  ;;  %7888 = vst [vmem:[#allocation30_spill] sm:$0xff] %v6674_v4  ;;  %2610 = vmatprep.subr.mxu0 %v6674_v4  ;;  %v6686_v25 = vld [vmem:[%s7343_s10 + $0x3f0] sm:$0xff]  ;;  %v6692_v11 = vld [vmem:[%s7343_s10 + $0x3c8] sm:$0xff] }
 0x6cd   :  { %7889 = vst [vmem:[#allocation31_spill] sm:$0xff] %v6680_v12  ;;  %2540 = vmatpush2.msra.mxu1 %v6680_v12  ;;  %7890 = vst [vmem:[#allocation32_spill] sm:$0xff] %v6686_v25  ;;  %2611 = vmatpush2.msra.mxu0 %v6686_v25  ;;  %v6698_v4 = vld [vmem:[%s7343_s10 + $0x3d8] sm:$0xff]  ;;  %v6704_v12 = vld [vmem:[%s7343_s10 + $0x3c0] sm:$0xff] }
 0x6ce   :  { %7891 = vst [vmem:[#allocation33_spill] sm:$0xff] %v6692_v11  ;;  %2541 = vmatprep.subr.mxu1 %v6692_v11  ;;  %7892 = vst [vmem:[#allocation34_spill] sm:$0xff] %v6698_v4  ;;  %2612 = vmatprep.subr.mxu0 %v6698_v4  ;;  %v6710_v25 = vld [vmem:[%s7343_s10 + $0x3d0] sm:$0xff]  ;;  %v6716_v11 = vld [vmem:[%s7343_s10 + $0x3a8] sm:$0xff] }
 0x6cf   :  { %7893 = vst [vmem:[#allocation35_spill] sm:$0xff] %v6704_v12  ;;  %2542 = vmatpush2.msra.mxu1 %v6704_v12  ;;  %7894 = vst [vmem:[#allocation36_spill] sm:$0xff] %v6710_v25  ;;  %2613 = vmatpush2.msra.mxu0 %v6710_v25  ;;  %v6722_v4 = vld [vmem:[%s7343_s10 + $0x3b8] sm:$0xff]  ;;  %v6728_v12 = vld [vmem:[%s7343_s10 + $0x3a0] sm:$0xff] }
 0x6d0   :  { %7895 = vst [vmem:[#allocation37_spill] sm:$0xff] %v6716_v11  ;;  %2543 = vmatprep.subr.mxu1 %v6716_v11  ;;  %7896 = vst [vmem:[#allocation38_spill] sm:$0xff] %v6722_v4  ;;  %2614 = vmatprep.subr.mxu0 %v6722_v4  ;;  %v6734_v25 = vld [vmem:[%s7343_s10 + $0x3b0] sm:$0xff]  ;;  %v6740_v11 = vld [vmem:[%s7343_s10 + $0x388] sm:$0xff] }
 0x6d1   :  { %7897 = vst [vmem:[#allocation39_spill] sm:$0xff] %v6728_v12  ;;  %2544 = vmatpush2.msra.mxu1 %v6728_v12  ;;  %7898 = vst [vmem:[#allocation40_spill] sm:$0xff] %v6734_v25  ;;  %2615 = vmatpush2.msra.mxu0 %v6734_v25  ;;  %v6746_v4 = vld [vmem:[%s7343_s10 + $0x398] sm:$0xff]  ;;  %v6752_v12 = vld [vmem:[%s7343_s10 + $0x380] sm:$0xff] }
 0x6d2   :  { %7899 = vst [vmem:[#allocation41_spill] sm:$0xff] %v6740_v11  ;;  %2545 = vmatprep.subr.mxu1 %v6740_v11  ;;  %7900 = vst [vmem:[#allocation42_spill] sm:$0xff] %v6746_v4  ;;  %2616 = vmatprep.subr.mxu0 %v6746_v4  ;;  %v6758_v25 = vld [vmem:[%s7343_s10 + $0x390] sm:$0xff]  ;;  %v6764_v11 = vld [vmem:[%s7343_s10 + $0x368] sm:$0xff] }
 0x6d3   :  { %7901 = vst [vmem:[#allocation43_spill] sm:$0xff] %v6752_v12  ;;  %2546 = vmatpush2.msra.mxu1 %v6752_v12  ;;  %7902 = vst [vmem:[#allocation44_spill] sm:$0xff] %v6758_v25  ;;  %2617 = vmatpush2.msra.mxu0 %v6758_v25  ;;  %v6770_v4 = vld [vmem:[%s7343_s10 + $0x378] sm:$0xff]  ;;  %v6776_v12 = vld [vmem:[%s7343_s10 + $0x360] sm:$0xff] }
 0x6d4   :  { %7903 = vst [vmem:[#allocation45_spill] sm:$0xff] %v6764_v11  ;;  %2547 = vmatprep.subr.mxu1 %v6764_v11  ;;  %7904 = vst [vmem:[#allocation46_spill] sm:$0xff] %v6770_v4  ;;  %2618 = vmatprep.subr.mxu0 %v6770_v4  ;;  %v6782_v25 = vld [vmem:[%s7343_s10 + $0x370] sm:$0xff]  ;;  %v3509_v11 = vpop.eup %3508  ;;  %v6788_v52 = vld [vmem:[%s7343_s10 + $0x348] sm:$0xff] }
 0x6d5   :  { %7905 = vst [vmem:[#allocation47_spill] sm:$0xff] %v6776_v12  ;;  %2548 = vmatpush2.msra.mxu1 %v6776_v12  ;;  %7906 = vst [vmem:[#allocation48_spill] sm:$0xff] %v6782_v25  ;;  %2619 = vmatpush2.msra.mxu0 %v6782_v25  ;;  %v6794_v4 = vld [vmem:[%s7343_s10 + $0x358] sm:$0xff]  ;;  %v6800_v25 = vld [vmem:[%s7343_s10 + $0x340] sm:$0xff]  ;;  %v2322_v61 = vadd.f32 1.0, %v3509_v11 }
 0x6d6   :  { %7907 = vst [vmem:[#allocation49_spill] sm:$0xff] %v6788_v52  ;;  %2549 = vmatprep.subr.mxu1 %v6788_v52  ;;  %7908 = vst [vmem:[#allocation50_spill] sm:$0xff] %v6794_v4  ;;  %2620 = vmatprep.subr.mxu0 %v6794_v4  ;;  %v6806_v49 = vld [vmem:[%s7343_s10 + $0x350] sm:$0xff]  ;;  %v6812_v4 = vld [vmem:[%s7343_s10 + $0x328] sm:$0xff] }
 0x6d7   :  { %v3511_v12 = vpop.eup %3510  ;;  %7909 = vst [vmem:[#allocation51_spill] sm:$0xff] %v6800_v25  ;;  %2550 = vmatpush2.msra.mxu1 %v6800_v25  ;;  %7910 = vst [vmem:[#allocation52_spill] sm:$0xff] %v6806_v49  ;;  %2621 = vmatpush2.msra.mxu0 %v6806_v49  ;;  %v6818_v38 = vld [vmem:[%s7343_s10 + $0x338] sm:$0xff]  ;;  %v6824_v49 = vld [vmem:[%s7343_s10 + $0x320] sm:$0xff]  ;;  %3516 = vrcp.f32 %v2322_v61 }
 0x6d8   :  { %v3513_v52 = vpop.eup %3512  ;;  %7911 = vst [vmem:[#allocation53_spill] sm:$0xff] %v6812_v4  ;;  %2551 = vmatprep.subr.mxu1 %v6812_v4  ;;  %2622 = vmatprep.subr.mxu0 %v6818_v38  ;;  %7912 = vst [vmem:[#allocation54_spill] sm:$0xff] %v6824_v49  ;;  %v6830_v4 = vld [vmem:[%s7343_s10 + $0x330] sm:$0xff]  ;;  %v6837_v11 = vld [vmem:[%s7343_s10 + $0x308] sm:$0xff] }
 0x6d9   :  { %v3515_v25 = vpop.eup %3514  ;;  %2552 = vmatpush2.msra.mxu1 %v6824_v49  ;;  %2623 = vmatpush2.msra.mxu0 %v6830_v4  ;;  %v2326_v37 = vmul.f32 %v3513_v52, %v3511_v12  ;;  %v6843_v49 = vld [vmem:[%s7343_s10 + $0x318] sm:$0xff]  ;;  %v6849_v12 = vld [vmem:[%s7343_s10 + $0x300] sm:$0xff]  ;;  %v6861_v52 = vld [vmem:[%s7343_s10 + $0x2e8] sm:$0xff] }
 0x6da   :  { %v2325_v15 = vmul.f32 %v3515_v25, %v6096_v22  ;;  %2553 = vmatprep.subr.mxu1 %v6837_v11  ;;  %2624 = vmatprep.subr.mxu0 %v6843_v49  ;;  %7913 = vst [vmem:[#allocation55_spill] sm:$0xff] %v6849_v12  ;;  %v6855_v22 = vld [vmem:[%s7343_s10 + $0x310] sm:$0xff]  ;;  %7915 = vst [vmem:[#allocation57_spill] sm:$0xff] %v6861_v52  ;;  %v6867_v25 = vld [vmem:[%s7343_s10 + $0x2f8] sm:$0xff] }
 0x6db   :  { %2554 = vmatpush2.msra.mxu1 %v6849_v12  ;;  %7914 = vst [vmem:[#allocation56_spill] sm:$0xff] %v6855_v22  ;;  %2625 = vmatpush2.msra.mxu0 %v6855_v22  ;;  %v6875_v22 = vld [vmem:[%s7343_s10 + $0x2e0] sm:$0xff] }
 0x6dc   :  { %2555 = vmatprep.subr.mxu1 %v6861_v52  ;;  %2626 = vmatprep.subr.mxu0 %v6867_v25  ;;  %v6870_v12 = vadd.f32 %v2326_v37, %v2325_v15  ;;  %7917 = vst [vmem:[#allocation59_spill] sm:$0xff] %v6875_v22  ;;  %v6881_v52 = vld [vmem:[%s7343_s10 + $0x2f0] sm:$0xff]  ;;  %v6887_v37 = vld [vmem:[%s7343_s10 + $0x2c8] sm:$0xff]  ;;  %v6893_v15 = vld [vmem:[%s7343_s10 + $0x2d8] sm:$0xff] }
 0x6dd   :  { %2556 = vmatpush2.msra.mxu1 %v6875_v22  ;;  %7918 = vst [vmem:[#allocation60_spill] sm:$0xff] %v6881_v52  ;;  %2627 = vmatpush2.msra.mxu0 %v6881_v52  ;;  %7919 = vst [vmem:[#allocation61_spill] sm:$0xff] %v6887_v37  ;;  %v6900_v61 = vld [vmem:[%s7343_s10 + $0x2c0] sm:$0xff]  ;;  %v7032_v52 = vld [vmem:[%s7343_s10 + $0x208] sm:$0xff] }
 0x6de   :  { %7916 = vst [vmem:[#allocation58_spill] sm:$0xff] %v6870_v12  ;;  %2557 = vmatprep.subr.mxu1 %v6887_v37  ;;  %7920 = vst [vmem:[#allocation62_spill] sm:$0xff] %v6893_v15  ;;  %2628 = vmatprep.subr.mxu0 %v6893_v15  ;;  %3518 = vtanh.f32 %v6870_v12  ;;  %v6906_v37 = vld [vmem:[%s7343_s10 + $0x2d0] sm:$0xff]  ;;  %v6912_v15 = vld [vmem:[%s7343_s10 + $0x2a8] sm:$0xff] }
 0x6df   :  { %7921 = vst [vmem:[#allocation63_spill] sm:$0xff] %v6900_v61  ;;  %2558 = vmatpush2.msra.mxu1 %v6900_v61  ;;  %7922 = vst [vmem:[#allocation64_spill] sm:$0xff] %v6906_v37  ;;  %2629 = vmatpush2.msra.mxu0 %v6906_v37  ;;  %v6918_v12 = vld [vmem:[%s7343_s10 + $0x2b8] sm:$0xff]  ;;  %v6924_v61 = vld [vmem:[%s7343_s10 + $0x2a0] sm:$0xff] }
 0x6e0   :  { %7923 = vst [vmem:[#allocation65_spill] sm:$0xff] %v6912_v15  ;;  %2559 = vmatprep.subr.mxu1 %v6912_v15  ;;  %7924 = vst [vmem:[#allocation66_spill] sm:$0xff] %v6918_v12  ;;  %2630 = vmatprep.subr.mxu0 %v6918_v12  ;;  %v6930_v37 = vld [vmem:[%s7343_s10 + $0x2b0] sm:$0xff]  ;;  %v6936_v15 = vld [vmem:[%s7343_s10 + $0x288] sm:$0xff] }
 0x6e1   :  { %7925 = vst [vmem:[#allocation67_spill] sm:$0xff] %v6924_v61  ;;  %2560 = vmatpush2.msra.mxu1 %v6924_v61  ;;  %7926 = vst [vmem:[#allocation68_spill] sm:$0xff] %v6930_v37  ;;  %2631 = vmatpush2.msra.mxu0 %v6930_v37  ;;  %v6942_v12 = vld [vmem:[%s7343_s10 + $0x298] sm:$0xff]  ;;  %v6948_v61 = vld [vmem:[%s7343_s10 + $0x280] sm:$0xff] }
 0x6e2   :  { %7927 = vst [vmem:[#allocation69_spill] sm:$0xff] %v6936_v15  ;;  %2561 = vmatprep.subr.mxu1 %v6936_v15  ;;  %7928 = vst [vmem:[#allocation70_spill] sm:$0xff] %v6942_v12  ;;  %2632 = vmatprep.subr.mxu0 %v6942_v12  ;;  %v6954_v37 = vld [vmem:[%s7343_s10 + $0x290] sm:$0xff]  ;;  %v6960_v15 = vld [vmem:[%s7343_s10 + $0x268] sm:$0xff] }
 0x6e3   :  { %7929 = vst [vmem:[#allocation71_spill] sm:$0xff] %v6948_v61  ;;  %2562 = vmatpush2.msra.mxu1 %v6948_v61  ;;  %7930 = vst [vmem:[#allocation72_spill] sm:$0xff] %v6954_v37  ;;  %2633 = vmatpush2.msra.mxu0 %v6954_v37  ;;  %v6966_v12 = vld [vmem:[%s7343_s10 + $0x278] sm:$0xff]  ;;  %v6972_v61 = vld [vmem:[%s7343_s10 + $0x260] sm:$0xff] }
 0x6e4   :  { %7931 = vst [vmem:[#allocation73_spill] sm:$0xff] %v6960_v15  ;;  %2563 = vmatprep.subr.mxu1 %v6960_v15  ;;  %7932 = vst [vmem:[#allocation74_spill] sm:$0xff] %v6966_v12  ;;  %2634 = vmatprep.subr.mxu0 %v6966_v12  ;;  %v6978_v37 = vld [vmem:[%s7343_s10 + $0x270] sm:$0xff]  ;;  %v6984_v15 = vld [vmem:[%s7343_s10 + $0x248] sm:$0xff] }
 0x6e5   :  { %7933 = vst [vmem:[#allocation75_spill] sm:$0xff] %v6972_v61  ;;  %2564 = vmatpush2.msra.mxu1 %v6972_v61  ;;  %7934 = vst [vmem:[#allocation76_spill] sm:$0xff] %v6978_v37  ;;  %2635 = vmatpush2.msra.mxu0 %v6978_v37  ;;  %v6990_v12 = vld [vmem:[%s7343_s10 + $0x258] sm:$0xff]  ;;  %v6996_v61 = vld [vmem:[%s7343_s10 + $0x240] sm:$0xff] }
 0x6e6   :  { %7935 = vst [vmem:[#allocation77_spill] sm:$0xff] %v6984_v15  ;;  %2565 = vmatprep.subr.mxu1 %v6984_v15  ;;  %7936 = vst [vmem:[#allocation78_spill] sm:$0xff] %v6990_v12  ;;  %2636 = vmatprep.subr.mxu0 %v6990_v12  ;;  %v7002_v37 = vld [vmem:[%s7343_s10 + $0x250] sm:$0xff]  ;;  %v7008_v15 = vld [vmem:[%s7343_s10 + $0x228] sm:$0xff] }
 0x6e7   :  { %7937 = vst [vmem:[#allocation79_spill] sm:$0xff] %v6996_v61  ;;  %2566 = vmatpush2.msra.mxu1 %v6996_v61  ;;  %7938 = vst [vmem:[#allocation80_spill] sm:$0xff] %v7002_v37  ;;  %2637 = vmatpush2.msra.mxu0 %v7002_v37  ;;  %v7014_v12 = vld [vmem:[%s7343_s10 + $0x238] sm:$0xff]  ;;  %v7020_v61 = vld [vmem:[%s7343_s10 + $0x220] sm:$0xff] }
 0x6e8   :  { %7939 = vst [vmem:[#allocation81_spill] sm:$0xff] %v7008_v15  ;;  %2567 = vmatprep.subr.mxu1 %v7008_v15  ;;  %7940 = vst [vmem:[#allocation82_spill] sm:$0xff] %v7014_v12  ;;  %2638 = vmatprep.subr.mxu0 %v7014_v12  ;;  %v7026_v37 = vld [vmem:[%s7343_s10 + $0x230] sm:$0xff]  ;;  %v3517_v15 = vpop.eup %3516  ;;  %v7038_v12 = vld [vmem:[%s7343_s10 + $0x218] sm:$0xff] }
 0x6e9   :  { %7941 = vst [vmem:[#allocation83_spill] sm:$0xff] %v7020_v61  ;;  %2568 = vmatpush2.msra.mxu1 %v7020_v61  ;;  %7942 = vst [vmem:[#allocation84_spill] sm:$0xff] %v7026_v37  ;;  %2639 = vmatpush2.msra.mxu0 %v7026_v37  ;;  %v7044_v37 = vld [vmem:[%s7343_s10 + $0x200] sm:$0xff]  ;;  %v7050_v22 = vld [vmem:[%s7343_s10 + $0x210] sm:$0xff] }
 0x6ea   :  { %7943 = vst [vmem:[#allocation85_spill] sm:$0xff] %v7032_v52  ;;  %2569 = vmatprep.subr.mxu1 %v7032_v52  ;;  %2640 = vmatprep.subr.mxu0 %v7038_v12 }
 0x6eb   :  { %v3519_v61 = vpop.eup %3518  ;;  %2570 = vmatpush2.msra.mxu1 %v7044_v37  ;;  %2641 = vmatpush2.msra.mxu0 %v7050_v22 }
 0x6ec   :  { %v2329_v52 = vmul.f32 %v3519_v61, %v3517_v15  ;;  %2673 = vmatprep.subr.mxu1 %v6268_v10  ;;  %2744 = vmatprep.subr.mxu0 %v6274_v18  ;;  %v7944_v10 = vld [vmem:[#allocation17_spill] sm:$0xff]  ;;  %v7945_v18 = vld [vmem:[#allocation18_spill] sm:$0xff] }
 0x6ed   :  { %v8003_v15 = vld [vmem:[#allocation77_spill] sm:$0xff]  ;;  %v8004_v61 = vld [vmem:[#allocation78_spill] sm:$0xff] }
 0x6ee   :  { %2571 = vmatprep.mubr.f32.mxu1 %v2329_v52  ;;  %2642 = vmatprep.mubr.f32.mxu0 %v2329_v52  ;;  %v8001_v52 = vld [vmem:[#allocation75_spill] sm:$0xff] }
 0x6ef   :  { %2572 = vmatmul.mubr.f32.vlgmr.msra.gmra.mxu1 %v6285_v21  ;;  %2643 = vmatmul.mubr.f32.vlgmr.msra.gmra.mxu0 %v6285_v21  ;;  %v7946_v21 = vld [vmem:[#allocation19_spill] sm:$0xff] }
 0x6f0   :  { %2674 = vmatpush1.msra.mxu1 %v6292_v28  ;;  %2745 = vmatpush1.msra.mxu0 %v6298_v5  ;;  %v7947_v28 = vld [vmem:[#allocation20_spill] sm:$0xff]  ;;  %v7948_v5 = vld [vmem:[#allocation21_spill] sm:$0xff] }
 0x6f1   :  { %2675 = vmatprep.subr.mxu1 %v6304_v30  ;;  %2746 = vmatprep.subr.mxu0 %v6310_v3  ;;  %v7949_v30 = vld [vmem:[#allocation22_spill] sm:$0xff]  ;;  %v7950_v3 = vld [vmem:[#allocation23_spill] sm:$0xff] }
 0x6f2   :  { %2676 = vmatpush1.msra.mxu1 %v6316_v33  ;;  %2747 = vmatpush1.msra.mxu0 %v6322_v2  ;;  %v7951_v33 = vld [vmem:[#allocation24_spill] sm:$0xff]  ;;  %v7952_v2 = vld [vmem:[#allocation25_spill] sm:$0xff] }
 0x6f3   :  { %2677 = vmatprep.subr.mxu1 %v6328_v16  ;;  %2748 = vmatprep.subr.mxu0 %v6334_v26  ;;  %v7953_v16 = vld [vmem:[#allocation26_spill] sm:$0xff]  ;;  %v7954_v26 = vld [vmem:[#allocation27_spill] sm:$0xff] }
 0x6f4   :  { %2678 = vmatpush1.msra.mxu1 %v6340_v1  ;;  %2749 = vmatpush1.msra.mxu0 %v6346_v60  ;;  %v7955_v1 = vld [vmem:[#allocation28_spill] sm:$0xff]  ;;  %v7956_v60 = vld [vmem:[#allocation29_spill] sm:$0xff] }
 0x6f5   :  { %2679 = vmatprep.subr.mxu1 %v6352_v35  ;;  %2750 = vmatprep.subr.mxu0 %v6358_v36  ;;  %v7957_v35 = vld [vmem:[#allocation30_spill] sm:$0xff]  ;;  %v7958_v36 = vld [vmem:[#allocation31_spill] sm:$0xff] }
 0x6f6   :  { %2680 = vmatpush1.msra.mxu1 %v6364_v39  ;;  %2751 = vmatpush1.msra.mxu0 %v6370_v40  ;;  %v7959_v39 = vld [vmem:[#allocation32_spill] sm:$0xff]  ;;  %v7960_v40 = vld [vmem:[#allocation33_spill] sm:$0xff] }
 0x6f7   :  { %2681 = vmatprep.subr.mxu1 %v6376_v41  ;;  %2752 = vmatprep.subr.mxu0 %v6382_v42  ;;  %v7961_v41 = vld [vmem:[#allocation34_spill] sm:$0xff]  ;;  %v7962_v42 = vld [vmem:[#allocation35_spill] sm:$0xff] }
 0x6f8   :  { %2682 = vmatpush1.msra.mxu1 %v6388_v44  ;;  %2753 = vmatpush1.msra.mxu0 %v6394_v45  ;;  %v7963_v44 = vld [vmem:[#allocation36_spill] sm:$0xff]  ;;  %v7964_v45 = vld [vmem:[#allocation37_spill] sm:$0xff] }
 0x6f9   :  { %2683 = vmatprep.subr.mxu1 %v6401_v47  ;;  %2754 = vmatprep.subr.mxu0 %v6407_v48  ;;  %v7965_v47 = vld [vmem:[#allocation38_spill] sm:$0xff]  ;;  %v7966_v48 = vld [vmem:[#allocation39_spill] sm:$0xff] }
 0x6fa   :  { %2684 = vmatpush1.msra.mxu1 %v6413_v50  ;;  %2755 = vmatpush1.msra.mxu0 %v6419_v51  ;;  %v7967_v50 = vld [vmem:[#allocation40_spill] sm:$0xff]  ;;  %v7968_v51 = vld [vmem:[#allocation41_spill] sm:$0xff] }
 0x6fb   :  { %2685 = vmatprep.subr.mxu1 %v6426_v53  ;;  %2756 = vmatprep.subr.mxu0 %v6432_v54  ;;  %v7969_v53 = vld [vmem:[#allocation42_spill] sm:$0xff]  ;;  %v7970_v54 = vld [vmem:[#allocation43_spill] sm:$0xff] }
 0x6fc   :  { %2686 = vmatpush1.msra.mxu1 %v6438_v55  ;;  %2757 = vmatpush1.msra.mxu0 %v6444_v58  ;;  %v7971_v55 = vld [vmem:[#allocation44_spill] sm:$0xff]  ;;  %v7972_v58 = vld [vmem:[#allocation45_spill] sm:$0xff] }
 0x6fd   :  { %2687 = vmatprep.subr.mxu1 %v6450_v62  ;;  %2758 = vmatprep.subr.mxu0 %v6456_v7  ;;  %v7973_v62 = vld [vmem:[#allocation46_spill] sm:$0xff]  ;;  %v7974_v7 = vld [vmem:[#allocation47_spill] sm:$0xff] }
 0x6fe   :  { %2688 = vmatpush1.msra.mxu1 %v6462_v13  ;;  %2759 = vmatpush1.msra.mxu0 %v6468_v8  ;;  %v7975_v13 = vld [vmem:[#allocation48_spill] sm:$0xff]  ;;  %v7976_v8 = vld [vmem:[#allocation49_spill] sm:$0xff] }
 0x6ff   :  { %2689 = vmatprep.subr.mxu1 %v6474_v20  ;;  %2760 = vmatprep.subr.mxu0 %v6480_v19  ;;  %v7977_v20 = vld [vmem:[#allocation50_spill] sm:$0xff]  ;;  %v7978_v19 = vld [vmem:[#allocation51_spill] sm:$0xff] }
 0x700   :  { %2690 = vmatpush1.msra.mxu1 %v6486_v14  ;;  %2761 = vmatpush1.msra.mxu0 %v6492_v29  ;;  %v7979_v14 = vld [vmem:[#allocation52_spill] sm:$0xff]  ;;  %v7980_v29 = vld [vmem:[#allocation53_spill] sm:$0xff] }
 0x701   :  { %2691 = vmatprep.subr.mxu1 %v6498_v56  ;;  %2762 = vmatprep.subr.mxu0 %v6504_v23  ;;  %v7981_v56 = vld [vmem:[#allocation54_spill] sm:$0xff]  ;;  %v7982_v23 = vld [vmem:[#allocation55_spill] sm:$0xff] }
 0x702   :  { %2692 = vmatpush1.msra.mxu1 %v6510_v27  ;;  %2763 = vmatpush1.msra.mxu0 %v6516_v0  ;;  %v7983_v27 = vld [vmem:[#allocation56_spill] sm:$0xff]  ;;  %v7984_v0 = vld [vmem:[#allocation57_spill] sm:$0xff] }
 0x703   :  { %2693 = vmatprep.subr.mxu1 %v6522_v9  ;;  %2764 = vmatprep.subr.mxu0 %v6528_v59  ;;  %v7985_v9 = vld [vmem:[#allocation59_spill] sm:$0xff]  ;;  %v7986_v59 = vld [vmem:[#allocation60_spill] sm:$0xff] }
 0x704   :  { %2694 = vmatpush1.msra.mxu1 %v6535_v34  ;;  %2765 = vmatpush1.msra.mxu0 %v6541_v57  ;;  %v7987_v34 = vld [vmem:[#allocation61_spill] sm:$0xff]  ;;  %v7988_v57 = vld [vmem:[#allocation62_spill] sm:$0xff] }
 0x705   :  { %2695 = vmatprep.subr.mxu1 %v6547_v17  ;;  %2766 = vmatprep.subr.mxu0 %v6553_v24  ;;  %v7989_v17 = vld [vmem:[#allocation63_spill] sm:$0xff]  ;;  %v7990_v24 = vld [vmem:[#allocation64_spill] sm:$0xff] }
 0x706   :  { %2696 = vmatpush1.msra.mxu1 %v6559_v31  ;;  %2767 = vmatpush1.msra.mxu0 %v6565_v32  ;;  %v7991_v31 = vld [vmem:[#allocation65_spill] sm:$0xff]  ;;  %v7992_v32 = vld [vmem:[#allocation66_spill] sm:$0xff] }
 0x707   :  { %2697 = vmatprep.subr.mxu1 %v6571_v43  ;;  %2768 = vmatprep.subr.mxu0 %v6577_v46  ;;  %v7993_v43 = vld [vmem:[#allocation67_spill] sm:$0xff]  ;;  %v7994_v46 = vld [vmem:[#allocation68_spill] sm:$0xff] }
 0x708   :  { %2698 = vmatpush1.msra.mxu1 %v6583_v63  ;;  %2769 = vmatpush1.msra.mxu0 %v6589_v6  ;;  %v7995_v63 = vld [vmem:[#allocation69_spill] sm:$0xff]  ;;  %v7996_v6 = vld [vmem:[#allocation70_spill] sm:$0xff] }
 0x709   :  { %2699 = vmatprep.subr.mxu1 %v7944_v10  ;;  %2770 = vmatprep.subr.mxu0 %v7945_v18  ;;  %v8005_v10 = vld [vmem:[#allocation79_spill] sm:$0xff]  ;;  %v8006_v18 = vld [vmem:[#allocation80_spill] sm:$0xff] }
 0x70a   :  { %2700 = vmatpush1.msra.mxu1 %v7946_v21  ;;  %2771 = vmatpush1.msra.mxu0 %v7947_v28  ;;  %v8007_v21 = vld [vmem:[#allocation81_spill] sm:$0xff]  ;;  %v8008_v28 = vld [vmem:[#allocation82_spill] sm:$0xff] }
 0x70b   :  { %2701 = vmatprep.subr.mxu1 %v7948_v5  ;;  %2772 = vmatprep.subr.mxu0 %v7949_v30  ;;  %v8009_v5 = vld [vmem:[#allocation83_spill] sm:$0xff]  ;;  %v8010_v30 = vld [vmem:[#allocation84_spill] sm:$0xff] }
 0x70c   :  { %2702 = vmatpush1.msra.mxu1 %v7950_v3  ;;  %2773 = vmatpush1.msra.mxu0 %v7951_v33  ;;  %v8011_v3 = vld [vmem:[#allocation85_spill] sm:$0xff] }
 0x70d   :  { %2703 = vmatprep.subr.mxu1 %v7952_v2  ;;  %2774 = vmatprep.subr.mxu0 %v7953_v16  ;;  %v7183_v33 = vld [vmem:[#allocation2 + $0x70] sm:$0xff]  ;;  %v8012_v16 = vld [vmem:[#allocation10_spill] sm:$0xff] }
 0x70e   :  { %2704 = vmatpush1.msra.mxu1 %v7954_v26  ;;  %2775 = vmatpush1.msra.mxu0 %v7955_v1 }
 0x70f   :  { %2705 = vmatprep.subr.mxu1 %v7956_v60  ;;  %2776 = vmatprep.subr.mxu0 %v7957_v35  ;;  %v8013_v35 = vld [vmem:[#allocation12_spill] sm:$0xff] }
 0x710   :  { %2706 = vmatpush2.msra.mxu1 %v7958_v36  ;;  %2777 = vmatpush2.msra.mxu0 %v7959_v39 }
 0x711   :  { %2707 = vmatprep.subr.mxu1 %v7960_v40  ;;  %2778 = vmatprep.subr.mxu0 %v7961_v41  ;;  %v8014_v40 = vld [vmem:[#allocation13_spill] sm:$0xff]  ;;  %v8015_v41 = vld [vmem:[#allocation11_spill] sm:$0xff] }
 0x712   :  { %2708 = vmatpush2.msra.mxu1 %v7962_v42  ;;  %2779 = vmatpush2.msra.mxu0 %v7963_v44 }
 0x713   :  { %2709 = vmatprep.subr.mxu1 %v7964_v45  ;;  %2780 = vmatprep.subr.mxu0 %v7965_v47 }
 0x714   :  { %2710 = vmatpush2.msra.mxu1 %v7966_v48  ;;  %2781 = vmatpush2.msra.mxu0 %v7967_v50 }
 0x715   :  { %2711 = vmatprep.subr.mxu1 %v7968_v51  ;;  %2782 = vmatprep.subr.mxu0 %v7969_v53 }
 0x716   :  { %2712 = vmatpush2.msra.mxu1 %v7970_v54  ;;  %2783 = vmatpush2.msra.mxu0 %v7971_v55 }
 0x717   :  { %2713 = vmatprep.subr.mxu1 %v7972_v58  ;;  %2784 = vmatprep.subr.mxu0 %v7973_v62 }
 0x718   :  { %2714 = vmatpush2.msra.mxu1 %v7974_v7  ;;  %2785 = vmatpush2.msra.mxu0 %v7975_v13  ;;  %v8016_v7 = vld [vmem:[#allocation16_spill] sm:$0xff] }
 0x719   :  { %2715 = vmatprep.subr.mxu1 %v7976_v8  ;;  %2786 = vmatprep.subr.mxu0 %v7977_v20 }
 0x71a   :  { %2716 = vmatpush2.msra.mxu1 %v7978_v19  ;;  %2787 = vmatpush2.msra.mxu0 %v7979_v14 }
 0x71b   :  { %2717 = vmatprep.subr.mxu1 %v7980_v29  ;;  %2788 = vmatprep.subr.mxu0 %v6818_v38  ;;  %v7997_v38 = vld [vmem:[#allocation71_spill] sm:$0xff] }
 0x71c   :  { %2718 = vmatpush2.msra.mxu1 %v7981_v56  ;;  %2789 = vmatpush2.msra.mxu0 %v6830_v4  ;;  %v7999_v4 = vld [vmem:[#allocation73_spill] sm:$0xff] }
 0x71d   :  { %2719 = vmatprep.subr.mxu1 %v6837_v11  ;;  %2790 = vmatprep.subr.mxu0 %v6843_v49  ;;  %v7998_v49 = vld [vmem:[#allocation72_spill] sm:$0xff]  ;;  %v8000_v11 = vld [vmem:[#allocation74_spill] sm:$0xff]  ;;  %v8017_v56 = vld [vmem:[#allocation5_spill] sm:$0xff] }
 0x71e   :  { %2720 = vmatpush2.msra.mxu1 %v7982_v23  ;;  %2791 = vmatpush2.msra.mxu0 %v7983_v27 }
 0x71f   :  { %2721 = vmatprep.subr.mxu1 %v7984_v0  ;;  %2792 = vmatprep.subr.mxu0 %v6867_v25  ;;  %v8002_v25 = vld [vmem:[#allocation76_spill] sm:$0xff] }
 0x720   :  { %2722 = vmatpush2.msra.mxu1 %v7985_v9  ;;  %2793 = vmatpush2.msra.mxu0 %v7986_v59  ;;  %v8018_v9 = vld [vmem:[#allocation148_spill] sm:$0xff] }
 0x721   :  { %2723 = vmatprep.subr.mxu1 %v7987_v34  ;;  %2794 = vmatprep.subr.mxu0 %v7988_v57 }
 0x722   :  { %2724 = vmatpush2.msra.mxu1 %v7989_v17  ;;  %2795 = vmatpush2.msra.mxu0 %v7990_v24  ;;  %v8019_v24 = vld [vmem:[#allocation14_spill] sm:$0xff] }
 0x723   :  { %2725 = vmatprep.subr.mxu1 %v7991_v31  ;;  %2796 = vmatprep.subr.mxu0 %v7992_v32 }
 0x724   :  { %2726 = vmatpush2.msra.mxu1 %v7993_v43  ;;  %2797 = vmatpush2.msra.mxu0 %v7994_v46  ;;  %v8020_v46 = vld [vmem:[#allocation15_spill] sm:$0xff] }
 0x725   :  { %2727 = vmatprep.subr.mxu1 %v7995_v63  ;;  %2798 = vmatprep.subr.mxu0 %v7996_v6 }
 0x726   :  { %2728 = vmatpush2.msra.mxu1 %v7997_v38  ;;  %2799 = vmatpush2.msra.mxu0 %v7998_v49 }
 0x727   :  { %2729 = vmatprep.subr.mxu1 %v7999_v4  ;;  %2800 = vmatprep.subr.mxu0 %v8000_v11 }
 0x728   :  { %2730 = vmatpush2.msra.mxu1 %v8001_v52  ;;  %2801 = vmatpush2.msra.mxu0 %v8002_v25 }
 0x729   :  { %2731 = vmatprep.subr.mxu1 %v8003_v15  ;;  %2802 = vmatprep.subr.mxu0 %v8004_v61 }
 0x72a   :  { %2732 = vmatpush2.msra.mxu1 %v8005_v10  ;;  %2803 = vmatpush2.msra.mxu0 %v8006_v18  ;;  %v8021_v10 = vld [vmem:[#allocation58_spill] sm:$0xff] }
 0x72b   :  { %2733 = vmatprep.subr.mxu1 %v8007_v21  ;;  %2804 = vmatprep.subr.mxu0 %v8008_v28 }
 0x72c   :  { %2734 = vmatpush2.msra.mxu1 %v8009_v5  ;;  %2805 = vmatpush2.msra.mxu0 %v8010_v30 }
 0x72d   :  { %2735 = vmatprep.subr.mxu1 %v8011_v3  ;;  %2806 = vmatprep.subr.mxu0 %v7038_v12  ;;  %v2854_v3 = vld [vmem:[%s7346_s12 + $0x78] sm:$0xff] }
 0x72e   :  { %2736 = vmatpush2.msra.mxu1 %v7044_v37  ;;  %2807 = vmatpush2.msra.mxu0 %v7050_v22 }
 0x72f   :  { %3370 = vmatprep.subr.mxu1 %v7183_v33  ;;  %3405 = vmatprep.subr.mxu0 %v7183_v33 }
 0x76c   :  { %v2403_v2 = vpop.f32.mrf.mxu1  ;;  %v2474_v39 = vpop.f32.mrf.mxu0 }
 0x76d   :  { %v2479_v26 = vadd.f32 %v2403_v2, %v8012_v16  ;;  %v2481_v42 = vadd.f32 %v2474_v39, %v8015_v41  ;;  %v2853_v2 = vld [vmem:[%s7346_s12 + $0x70] sm:$0xff]  ;;  %v2852_v16 = vld [vmem:[%s7346_s12 + $0x68] sm:$0xff]  ;;  %v2846_v39 = vld [vmem:[%s7346_s12 + $0x38] sm:$0xff] }
 0x76e   :  { %v2405_v1 = vpop.f32.mrf.mxu1  ;;  %v2476_v37 = vpop.f32.mrf.mxu0  ;;  %v2841_v41 = vld [vmem:[%s7346_s12 + $0x10] sm:$0xff] }
 0x76f   :  { %v3173_v60 = vmul.f32 -1.442695, %v2479_v26  ;;  %v2480_v36 = vadd.f32 %v2405_v1, %v8013_v35  ;;  %v2482_v22 = vadd.f32 %v2476_v37, %v8014_v40  ;;  %v2851_v26 = vld [vmem:[%s7346_s12 + $0x60] sm:$0xff]  ;;  %v2850_v1 = vld [vmem:[%s7346_s12 + $0x58] sm:$0xff]  ;;  %v2848_v35 = vld [vmem:[%s7346_s12 + $0x48] sm:$0xff] }
 0x770   :  { %v2844_v37 = vld [vmem:[%s7346_s12 + $0x28] sm:$0xff]  ;;  %v2843_v40 = vld [vmem:[%s7346_s12 + $0x20] sm:$0xff] }
 0x771   :  { %3520 = vpow2.f32 %v3173_v60  ;;  %v3174_v12 = vmul.f32 -1.442695, %v2480_v36  ;;  %v3175_v44 = vmul.f32 -1.442695, %v2482_v22  ;;  %v2849_v60 = vld [vmem:[%s7346_s12 + $0x50] sm:$0xff]  ;;  %v2847_v36 = vld [vmem:[%s7346_s12 + $0x40] sm:$0xff] }
 0x772   :  { %v2842_v22 = vld [vmem:[%s7346_s12 + $0x18] sm:$0xff] }
 0x773   :  { %3522 = vpow2.f32 %v3174_v12  ;;  %v2845_v12 = vld [vmem:[%s7346_s12 + $0x30] sm:$0xff] }
 0x774   :  { %3524 = vtanh.f32 %v2481_v42  ;;  %v2840_v42 = vld [vmem:[%s7346_s12 + $0x8] sm:$0xff] }
 0x775   :  { %3526 = vpow2.f32 %v3175_v44  ;;  %v2839_v44 = vld [vmem:[%s7346_s12] sm:$0xff] }
 0x77e   :  { %v3521_v45 = vpop.eup %3520 }
 0x77f   :  { %v2486_v47 = vadd.f32 1.0, %v3521_v45  ;;  %v2940_v45 = vld [vmem:[%s7347_s14 + $0x38] sm:$0xff] }
 0x780   :  { %v3523_v48 = vpop.eup %3522 }
 0x781   :  { %3528 = vrcp.f32 %v2486_v47  ;;  %v2492_v50 = vadd.f32 1.0, %v3523_v48  ;;  %v3525_v51 = vpop.eup %3524  ;;  %v2939_v47 = vld [vmem:[%s7347_s14 + $0x30] sm:$0xff]  ;;  %v2938_v48 = vld [vmem:[%s7347_s14 + $0x28] sm:$0xff] }
 0x782   :  { %v3527_v53 = vpop.eup %3526 }
 0x783   :  { %3530 = vrcp.f32 %v2492_v50  ;;  %v2499_v62 = vadd.f32 1.0, %v3527_v53  ;;  %v2937_v50 = vld [vmem:[%s7347_s14 + $0x20] sm:$0xff] }
 0x785   :  { %3532 = vrcp.f32 %v2499_v62 }
 0x78e   :  { %v3529_v54 = vpop.eup %3528 }
 0x78f   :  { %v2503_v55 = vmul.f32 %v3529_v54, %v3525_v51  ;;  %v2936_v51 = vld [vmem:[%s7347_s14 + $0x18] sm:$0xff] }
 0x790   :  { %v3531_v58 = vpop.eup %3530 }
 0x791   :  { %v2502_v13 = vmul.f32 %v3531_v58, %v8016_v7 }
 0x792   :  { %v3533_v20 = vpop.eup %3532 }
 0x793   :  { %v2504_v8 = vadd.f32 %v2503_v55, %v2502_v13 }
 0x795   :  { %3534 = vtanh.f32 %v2504_v8 }
 0x7a2   :  { %v3535_v19 = vpop.eup %3534 }
 0x7a3   :  { %v2506_v14 = vmul.f32 %v3535_v19, %v3533_v20 }
 0x7af   :  { %v2573_v29 = vpop.f32.mrf.mxu1  ;;  %v2644_v34 = vpop.f32.mrf.mxu0 }
 0x7b0   :  { %v2574_v23 = vadd.f32 %v2573_v29, %v8017_v56  ;;  %v2645_v63 = vadd.f32 %v2644_v34, %v8020_v46 }
 0x7b1   :  { %v2575_v27 = vpop.f32.mrf.mxu1  ;;  %v2646_v17 = vpop.f32.mrf.mxu0 }
 0x7b2   :  { %v3176_v0 = vmul.f32 -1.442695, %v2574_v23  ;;  %v2576_v59 = vadd.f32 %v2575_v27, %v8018_v9  ;;  %v2647_v31 = vadd.f32 %v2646_v17, %v8019_v24 }
 0x7b4   :  { %3536 = vpow2.f32 %v3176_v0  ;;  %v3177_v57 = vmul.f32 -1.442695, %v2576_v59  ;;  %v3178_v32 = vmul.f32 -1.442695, %v2647_v31 }
 0x7b6   :  { %3538 = vpow2.f32 %v3177_v57 }
 0x7b7   :  { %3540 = vpow2.f32 %v3178_v32 }
 0x7c1   :  { %v3537_v43 = vpop.eup %3536 }
 0x7c2   :  { %v2652_v6 = vadd.f32 1.0, %v3537_v43 }
 0x7c3   :  { %v3539_v38 = vpop.eup %3538 }
 0x7c4   :  { %3542 = vrcp.f32 %v2652_v6  ;;  %v2658_v49 = vadd.f32 1.0, %v3539_v38  ;;  %v3541_v4 = vpop.eup %3540  ;;  %v2934_v6 = vld [vmem:[%s7347_s14 + $0x8] sm:$0xff]  ;;  %v2933_v38 = vld [vmem:[%s7347_s14] sm:$0xff] }
 0x7c5   :  { %3544 = vtanh.f32 %v2645_v63  ;;  %v2665_v15 = vadd.f32 1.0, %v3541_v4  ;;  %v2935_v63 = vld [vmem:[%s7347_s14 + $0x10] sm:$0xff] }
 0x7c6   :  { %3546 = vrcp.f32 %v2658_v49  ;;  %v3182_v49 = vld [vmem:[%s7348_s13] ss:$0 sm:$0xff] }
 0x7c7   :  { %3548 = vrcp.f32 %v2665_v15  ;;  %v3025_v15 = vld [vmem:[%s7349_s16 + $0x18] sm:$0xff] }
 0x7d1   :  { %v3543_v11 = vpop.eup %3542 }
 0x7d2   :  { %v3545_v52 = vpop.eup %3544 }
 0x7d3   :  { %v3547_v25 = vpop.eup %3546  ;;  %v2669_v61 = vmul.f32 %v3545_v52, %v3543_v11 }
 0x7d4   :  { %v2668_v18 = vmul.f32 %v3547_v25, %v8021_v10  ;;  %v3549_v28 = vpop.eup %3548  ;;  %v3023_v10 = vld [vmem:[%s7349_s16 + $0x8] sm:$0xff] }
 0x7d6   :  { %v7197_v21 = vadd.f32 %v2669_v61, %v2668_v18  ;;  %v3024_v61 = vld [vmem:[%s7349_s16 + $0x10] sm:$0xff]  ;;  %v3022_v18 = vld [vmem:[%s7349_s16] sm:$0xff] }
 0x7d8   :  { %3550 = vtanh.f32 %v7197_v21 }
 0x7e5   :  { %v3551_v5 = vpop.eup %3550 }
 0x7e6   :  { %v2672_v30 = vmul.f32 %v3551_v5, %v3549_v28  ;;  %v3183_v28 = vld [vmem:[%s7351_s15] ss:$0 sm:$0xff] }
 0x7e8   :  { %2737 = vmatprep.mubr.f32.mxu1 %v2672_v30  ;;  %2808 = vmatprep.mubr.f32.mxu0 %v2672_v30 }
 0x7e9   :  { %2738 = vmatmul.mubr.f32.vlgmr.msra.gmra.mxu1 %v2506_v14  ;;  %2809 = vmatmul.mubr.f32.vlgmr.msra.gmra.mxu0 %v2506_v14 }
 0x7ea   :  { %3371 = vmatpush3.msra.mxu1 %v2854_v3  ;;  %3402 = vmatprep.mubr.msk.f32.mxu1 %vm3771_vm7, %v7183_v33 }
 0x7eb   :  { %3372 = vmatprep.subr.mxu1 %v7183_v33  ;;  %3421 = vmatprep.mubr.msk.f32.mxu0 %vm3771_vm7, %v7183_v33 }
 0x7ec   :  { %3373 = vmatpush3.msra.mxu1 %v2853_v2  ;;  %3406 = vmatpush3.msra.mxu0 %v2940_v45 }
 0x7ed   :  { %3374 = vmatprep.subr.mxu1 %v7183_v33  ;;  %3407 = vmatprep.subr.mxu0 %v7183_v33 }
 0x7ee   :  { %3375 = vmatpush3.msra.mxu1 %v2852_v16  ;;  %3408 = vmatpush3.msra.mxu0 %v2939_v47  ;;  %v176_v16 = vpop.permute.xlu1 %175 }
 0x7ef   :  { %3376 = vmatprep.subr.mxu1 %v7183_v33  ;;  %3409 = vmatprep.subr.mxu0 %v7183_v33 }
 0x7f0   :  { %3377 = vmatpush3.msra.mxu1 %v2851_v26  ;;  %3410 = vmatpush3.msra.mxu0 %v2938_v48 }
 0x7f1   :  { %3378 = vmatprep.subr.mxu1 %v7183_v33  ;;  %3411 = vmatprep.subr.mxu0 %v7183_v33 }
 0x7f2   :  { %3379 = vmatpush3.msra.mxu1 %v2850_v1  ;;  %3412 = vmatpush3.msra.mxu0 %v2937_v50 }
 0x7f3   :  { %3380 = vmatprep.subr.mxu1 %v7183_v33  ;;  %3413 = vmatprep.subr.mxu0 %v7183_v33 }
 0x7f4   :  { %3381 = vmatpush3.msra.mxu1 %v2849_v60  ;;  %3414 = vmatpush3.msra.mxu0 %v2936_v51 }
 0x7f5   :  { %3382 = vmatprep.subr.mxu1 %v7183_v33  ;;  %3415 = vmatprep.subr.mxu0 %v7183_v33 }
 0x7f6   :  { %3383 = vmatpush3.msra.mxu1 %v2848_v35  ;;  %3416 = vmatpush3.msra.mxu0 %v2935_v63 }
 0x7f7   :  { %3384 = vmatprep.subr.mxu1 %v7183_v33  ;;  %3417 = vmatprep.subr.mxu0 %v7183_v33 }
 0x7f8   :  { %3385 = vmatpush3.msra.mxu1 %v2847_v36  ;;  %3418 = vmatpush3.msra.mxu0 %v2934_v6 }
 0x7f9   :  { %3386 = vmatprep.subr.mxu1 %v7183_v33  ;;  %3419 = vmatprep.subr.mxu0 %v7183_v33 }
 0x7fa   :  { %3387 = vmatpush3.msra.mxu1 %v2846_v39  ;;  %3420 = vmatpush3.msra.mxu0 %v2933_v38 }
 0x7fb   :  { %3388 = vmatprep.subr.mxu1 %v7183_v33  ;;  %3424 = vmatprep.subr.mxu0 %v7183_v33 }
 0x7fc   :  { %3389 = vmatpush3.msra.mxu1 %v2845_v12 }
 0x7fd   :  { %3390 = vmatprep.subr.mxu1 %v7183_v33 }
 0x7fe   :  { %3391 = vmatpush3.msra.mxu1 %v2844_v37 }
 0x7ff   :  { %3392 = vmatprep.subr.mxu1 %v7183_v33 }
 0x800   :  { %3393 = vmatpush3.msra.mxu1 %v2843_v40 }
 0x801   :  { %3394 = vmatprep.subr.mxu1 %v7183_v33 }
 0x802   :  { %3395 = vmatpush3.msra.mxu1 %v2842_v22 }
 0x803   :  { %3396 = vmatprep.subr.mxu1 %v7183_v33 }
 0x804   :  { %3397 = vmatpush3.msra.mxu1 %v2841_v41 }
 0x805   :  { %3398 = vmatprep.subr.mxu1 %v7183_v33 }
 0x806   :  { %3399 = vmatpush3.msra.mxu1 %v2840_v42 }
 0x807   :  { %3400 = vmatprep.subr.mxu1 %v7183_v33 }
 0x808   :  { %3401 = vmatpush3.msra.mxu1 %v2839_v44 }
 0x8a9   :  { %v2739_v53 = vpop.f32.mrf.mxu1  ;;  %v2810_v7 = vpop.f32.mrf.mxu0 }
 0x8aa   :  { %v2740_v54 = vadd.f32 %v2739_v53, %v8017_v56  ;;  %v2811_v29 = vadd.f32 %v2810_v7, %v8020_v46 }
 0x8ab   :  { %v2741_v55 = vpop.f32.mrf.mxu1  ;;  %v2812_v8 = vpop.f32.mrf.mxu0 }
 0x8ac   :  { %v3179_v58 = vmul.f32 -1.442695, %v2740_v54  ;;  %v2742_v62 = vadd.f32 %v2741_v55, %v8018_v9  ;;  %v2813_v20 = vadd.f32 %v2812_v8, %v8019_v24 }
 0x8ae   :  { %3552 = vpow2.f32 %v3179_v58  ;;  %v3180_v13 = vmul.f32 -1.442695, %v2742_v62  ;;  %v3181_v19 = vmul.f32 -1.442695, %v2813_v20 }
 0x8b0   :  { %3554 = vpow2.f32 %v3180_v13 }
 0x8b1   :  { %3556 = vpow2.f32 %v3181_v19 }
 0x8bb   :  { %v3553_v14 = vpop.eup %3552 }
 0x8bc   :  { %v2818_v23 = vadd.f32 1.0, %v3553_v14 }
 0x8bd   :  { %v3555_v27 = vpop.eup %3554 }
 0x8be   :  { %3558 = vrcp.f32 %v2818_v23  ;;  %v2824_v56 = vadd.f32 1.0, %v3555_v27  ;;  %v3557_v0 = vpop.eup %3556 }
 0x8bf   :  { %3560 = vtanh.f32 %v2811_v29  ;;  %v2831_v57 = vadd.f32 1.0, %v3557_v0 }
 0x8c0   :  { %3562 = vrcp.f32 %v2824_v56 }
 0x8c1   :  { %3564 = vrcp.f32 %v2831_v57 }
 0x8cb   :  { %v3559_v9 = vpop.eup %3558 }
 0x8cc   :  { %v3561_v59 = vpop.eup %3560 }
 0x8cd   :  { %v3563_v34 = vpop.eup %3562  ;;  %v2835_v17 = vmul.f32 %v3561_v59, %v3559_v9 }
 0x8ce   :  { %v2834_v31 = vmul.f32 %v3563_v34, %v7197_v21  ;;  %v3565_v32 = vpop.eup %3564  ;;  %v23_v21 = vstv %s7350_s17 }
 0x8cf   :  { %24 = vst [vmem:[#allocation4] sm:$0x1] %v23_v21 }
 0x8d0   :  { %v2836_v24 = vadd.f32 %v2835_v17, %v2834_v31 }
 0x8d2   :  { %3566 = vtanh.f32 %v2836_v24 }
 0x8d6   :  { %v3185_v26 = vld [vmem:[#allocation4] ss:$0 sm:$0xff] }
 0x8df   :  { %v3567_v43 = vpop.eup %3566 }
 0x8e0   :  { %v2838_v46 = vmul.f32 %v3567_v43, %v3565_v32 }
 0x8e2   :  { %3403 = vmatmul.mubr.f32.vlgmr.msra.gmra.mxu1 %v2838_v46 }
 0x9a2   :  { %v2928_v4 = vpop.f32.mrf.mxu1 }
 0x9a3   :  { %v2929_v11 = vadd.f32 %v3182_v49, %v2928_v4 }
 0x9a4   :  { %v3404_v52 = vpop.f32.mrf.mxu1 }
 0x9a5   :  { %v2932_v25 = vmax.f32 %v2929_v11, 0.0 }
 0x9a7   :  { %3422 = vmatmul.mubr.msk.f32.vlgmr.msra.gmra.mxu0 %vm490_vm5, %v2932_v25 }
 0x9a8   :  { %3425 = vmatpush3.msra.mxu0 %v3025_v15  ;;  %3432 = vmatprep.mubr.msk.f32.mxu0 %vm3771_vm7, %v7183_v33 }
 0x9a9   :  { %3426 = vmatprep.subr.mxu0 %v7183_v33 }
 0x9aa   :  { %3427 = vmatpush3.msra.mxu0 %v3024_v61 }
 0x9ab   :  { %3428 = vmatprep.subr.mxu0 %v7183_v33 }
 0x9ac   :  { %3429 = vmatpush3.msra.mxu0 %v3023_v10 }
 0x9ad   :  { %3430 = vmatprep.subr.mxu0 %v7183_v33 }
 0x9ae   :  { %3431 = vmatpush3.msra.mxu0 %v3022_v18 }
 0xa67   :  { %v3017_v5 = vpop.f32.mrf.mxu0 }
 0xa68   :  { %v3018_v30 = vadd.f32 %v3183_v28, %v3017_v5 }
 0xa69   :  { %v3423_v3 = vpop.f32.mrf.mxu0 }
 0xa6a   :  { %v3021_v2 = vmax.f32 %v3018_v30, 0.0 }
 0xa6c   :  { %3433 = vmatmul.mubr.msk.f32.vlgmr.msra.gmra.mxu0 %vm3033_vm8, %v3021_v2 }
 0xb2c   :  { %v3103_v1 = vpop.f32.mrf.mxu0 }
 0xb2d   :  { %v3104_v33 = vadd.f32 %v3185_v26, %v3103_v1 }
 0xb2e   :  { %v3434_v60 = vpop.f32.mrf.mxu0 }
 0xb2f   :  { %v3187_v35 = vmul.f32 -1.442695, %v3104_v33 }
 0xb31   :  { %3568 = vpow2.f32 %v3187_v35 }
 0xb3e   :  { %v3569_v36 = vpop.eup %3568 }
 0xb3f   :  { %v3110_v39 = vadd.f32 1.0, %v3569_v36 }
 0xb41   :  { %3570 = vrcp.f32 %v3110_v39 }
 0xb4e   :  { %v3571_v12 = vpop.eup %3570 }
 0xb4f   :  { %3114 = vst.msk [vmem:[%s7352_s18] sm:$0xff] %vm3113_vm9, %v3571_v12 }

</bundles_post_ra>
